<compile_context>
chip_gen: v7x
topology: tpu7x:2x2x1
jax: 0.10.0
libtpu: 0.0.40
codegen_flags: <defaults>
</compile_context>

<pallas_src>
import jax
import jax.numpy as jnp
from jax import lax
from jax.experimental import pallas as pl
from jax.experimental.pallas import tpu as pltpu

EPS = 1e-5

# (Cin, Cout, kernel, stride, padding, dilation) — mirrors the nn.Sequential
LAYERS = [
    (1, 16, 9, 1, 1, 1),
    (16, 32, 5, 1, 1, 1),
    (32, 64, 3, 2, 1, 1),
    (64, 64, 3, 1, 2, 2),
    (64, 128, 3, 2, 1, 1),
]


# ----------------------------- Pallas kernels ------------------------------

def conv_bn_relu_kernel(p_ref, w_ref, scale_ref, shift_ref, o_ref):
    """Conv-as-matmul (im2col patches @ W) + folded BatchNorm + ReLU."""
    y = jnp.dot(p_ref[...], w_ref[...], preferred_element_type=jnp.float32)
    o_ref[...] = jnp.maximum(y * scale_ref[...] + shift_ref[...], 0.0)


def conv0_bn_pool_relu_kernel(p_ref, w_ref, scale_ref, shift_ref, o_ref):
    """Layer 0 fused: conv matmul per pooling tap, BN, 2x2 max-pool, ReLU.

    p_ref: (4, M_pooled, K) tap-major im2col patches. Max over the leading tap
    axis == MaxPool2d(2,2).  BN is applied per tap (before the max) so the
    result is exact even for negative BN scales; ReLU commutes with max.
    """
    acc = None
    for t in range(p_ref.shape[0]):                 # static unroll over 4 taps
        z = jnp.dot(p_ref[t], w_ref[...], preferred_element_type=jnp.float32)
        z = z * scale_ref[...] + shift_ref[...]
        acc = z if acc is None else jnp.maximum(acc, z)
    o_ref[...] = jnp.maximum(acc, 0.0)


def conv_bn_relu_head_kernel(p_ref, w_ref, scale_ref, shift_ref, pool_ref,
                             wfc_ref, bfc_ref, o_ref):
    """Layer 4 fused: conv + BN + ReLU + AdaptiveAvgPool2d((1,1)) + Linear.

    pool_ref: (N, N*HW) block-diagonal averaging matrix (entries 1/HW), so the
    GAP is an MXU matmul.  Dropout(0.3) is inference-mode identity.
    """
    y = jnp.dot(p_ref[...], w_ref[...], preferred_element_type=jnp.float32)
    y = jnp.maximum(y * scale_ref[...] + shift_ref[...], 0.0)          # (N*HW, C)
    g = jnp.dot(pool_ref[...], y, preferred_element_type=jnp.float32)  # (N, C)
    o_ref[...] = jnp.dot(g, wfc_ref[...],
                         preferred_element_type=jnp.float32) + bfc_ref[...]


# ----------------------------- Pallas wrappers ------------------------------

def _vmem():
    return pl.BlockSpec(memory_space=pltpu.MemorySpace.VMEM)


def conv_bn_relu_pallas(patches, w2d, scale, shift):
    """patches: (M, K); w2d: (K, Cout); scale/shift: (Cout,) -> (M, Cout)."""
    M = patches.shape[0]
    Cout = w2d.shape[1]
    return pl.pallas_call(
        conv_bn_relu_kernel,
        out_shape=jax.ShapeDtypeStruct((M, Cout), jnp.float32),
        in_specs=[_vmem()] * 4,
        out_specs=_vmem(),
    )(patches, w2d, scale.reshape(1, Cout), shift.reshape(1, Cout))


def conv0_bn_relu_pool_pallas(patches_taps, w2d, scale, shift):
    """patches_taps: (4, M_pooled, K) -> (M_pooled, Cout)."""
    _, M, _ = patches_taps.shape
    Cout = w2d.shape[1]
    return pl.pallas_call(
        conv0_bn_pool_relu_kernel,
        out_shape=jax.ShapeDtypeStruct((M, Cout), jnp.float32),
        in_specs=[_vmem()] * 4,
        out_specs=_vmem(),
    )(patches_taps, w2d, scale.reshape(1, Cout), shift.reshape(1, Cout))


def conv_head_pallas(patches, w2d, scale, shift, pool_mat, wfc, bfc):
    """patches: (N*HW, K) -> logits (N, num_classes)."""
    Cout = w2d.shape[1]
    N = pool_mat.shape[0]
    NC = wfc.shape[1]
    return pl.pallas_call(
        conv_bn_relu_head_kernel,
        out_shape=jax.ShapeDtypeStruct((N, NC), jnp.float32),
        in_specs=[_vmem()] * 7,
        out_specs=_vmem(),
    )(patches, w2d, scale.reshape(1, Cout), shift.reshape(1, Cout),
      pool_mat, wfc, bfc.reshape(1, NC))


# --------------------------------- Glue -------------------------------------

def im2col(x, k, stride, padding, dilation):
    """x: (N, H, W, C) -> patches (N, Ho, Wo, k*k*C) in (kh, kw, c) order."""
    N, H, W, C = x.shape
    xp = jnp.pad(x, ((0, 0), (padding, padding), (padding, padding), (0, 0)))
    Ho = (H + 2 * padding - dilation * (k - 1) - 1) // stride + 1
    Wo = (W + 2 * padding - dilation * (k - 1) - 1) // stride + 1
    cols = []
    for i in range(k):
        for j in range(k):
            a, b = i * dilation, j * dilation
            cols.append(xp[:, a:a + stride * (Ho - 1) + 1:stride,
                              b:b + stride * (Wo - 1) + 1:stride, :])
    patches = jnp.stack(cols, axis=3)                # (N, Ho, Wo, k*k, C)
    return patches.reshape(N, Ho, Wo, k * k * C)


def fold_bn(P, i):
    """Fold eval-mode BatchNorm (running stats) and conv bias into scale/shift."""
    scale = P[f'gamma{i}'] / jnp.sqrt(P[f'var{i}'] + EPS)
    shift = (P[f'cb{i}'] - P[f'mean{i}']) * scale + P[f'beta{i}']
    return scale, shift


def forward_pallas(x_nchw, P):
    y = jnp.transpose(x_nchw, (0, 2, 3, 1))                      # NCHW -> NHWC

    # -- layer 0: Conv(1->16,k9,p1) + BN + ReLU + MaxPool(2,2) in ONE kernel --
    cin, cout, k, s, p, d = LAYERS[0]
    scale, shift = fold_bn(P, 0)
    pat = im2col(y, k, s, p, d)                                  # (N, 26, 26, 81)
    N, Ho, Wo, KK = pat.shape
    Hp, Wp = Ho // 2, Wo // 2                                    # MaxPool2d floor
    pat = pat[:, :Hp * 2, :Wp * 2, :]                            # drop odd row/col (floor)
    pat = pat.reshape(N, Hp, 2, Wp, 2, KK).transpose(2, 4, 0, 1, 3, 5)
    pat = pat.reshape(4, N * Hp * Wp, KK)                        # tap-major layout
    w2d = P['w0'].reshape(k * k * cin, cout)
    y = conv0_bn_relu_pool_pallas(pat, w2d, scale, shift).reshape(N, Hp, Wp, cout)

    # -- layers 1..3: Conv + BN + ReLU, one single-block kernel each --
    for i in (1, 2, 3):
        cin, cout, k, s, p, d = LAYERS[i]
        scale, shift = fold_bn(P, i)
        pat = im2col(y, k, s, p, d)
        N, Ho, Wo, KK = pat.shape
        w2d = P[f'w{i}'].reshape(k * k * cin, cout)
        y = conv_bn_relu_pallas(pat.reshape(N * Ho * Wo, KK), w2d,
                                scale, shift).reshape(N, Ho, Wo, cout)

    # -- layer 4 + GAP + Flatten + Dropout(eval: identity) + Linear, ONE kernel --
    cin, cout, k, s, p, d = LAYERS[4]
    scale, shift = fold_bn(P, 4)
    pat = im2col(y, k, s, p, d)
    N, Ho, Wo, KK = pat.shape
    w2d = P['w4'].reshape(k * k * cin, cout)
    HW = Ho * Wo
    pool = jnp.kron(jnp.eye(N, dtype=jnp.float32),
                    jnp.full((1, HW), 1.0 / HW, jnp.float32))    # (N, N*HW)
    return conv_head_pallas(pat.reshape(N * HW, KK), w2d, scale, shift,
                            pool, P['wfc'], P['bfc'])


# ------------------------- Pure-JAX reference path --------------------------

def ref_forward(x_nchw, P):
    y = jnp.transpose(x_nchw, (0, 2, 3, 1))
    for i, (cin, cout, k, s, p, d) in enumerate(LAYERS):
        y = lax.conv_general_dilated(
            y, P[f'w{i}'], (s, s), [(p, p), (p, p)], rhs_dilation=(d, d),
            dimension_numbers=('NHWC', 'HWIO', 'NHWC'),
            precision=lax.Precision.HIGHEST) + P[f'cb{i}']
        y = (y - P[f'mean{i}']) / jnp.sqrt(P[f'var{i}'] + EPS) * P[f'gamma{i}'] + P[f'beta{i}']
        y = jnp.maximum(y, 0.0)
        if i == 0:
            y = lax.reduce_window(y, -jnp.inf, lax.max,
                                  (1, 2, 2, 1), (1, 2, 2, 1), 'VALID')
    g = jnp.mean(y, axis=(1, 2))
    return jnp.dot(g, P['wfc'], precision=lax.Precision.HIGHEST) + P['bfc']


# ------------------------------ Parameters -----------------------------------

def init_params(key):
    P = {}
    for i, (cin, cout, k, s, p, d) in enumerate(LAYERS):
        key, k1, k2, k3, k4, k5, k6 = jax.random.split(key, 7)
        fan_in = cin * k * k
        P[f'w{i}'] = jax.random.normal(k1, (k, k, cin, cout), jnp.float32) * jnp.sqrt(2.0 / fan_in)
        P[f'cb{i}'] = 0.05 * jax.random.normal(k2, (cout,), jnp.float32)
        P[f'gamma{i}'] = 1.0 + 0.1 * jax.random.normal(k3, (cout,), jnp.float32)
        P[f'beta{i}'] = 0.1 * jax.random.normal(k4, (cout,), jnp.float32)
        P[f'mean{i}'] = 0.1 * jax.random.normal(k5, (cout,), jnp.float32)
        P[f'var{i}'] = jax.random.uniform(k6, (cout,), jnp.float32, minval=0.5, maxval=1.5)
    key, k1, k2 = jax.random.split(key, 3)
    P['wfc'] = jax.random.normal(k1, (128, 1), jnp.float32) * jnp.sqrt(1.0 / 128)
    P['bfc'] = 0.05 * jax.random.normal(k2, (1,), jnp.float32)
    return P


# ---------------------------------- Main -------------------------------------

if __name__ == "__main__":
    key = jax.random.PRNGKey(0)
    kx, kp = jax.random.split(key)
    # PyTorch-style input: (batch=2, in_channels=1, H=32, W=32), NCHW.
    x = jax.random.normal(kx, (2, 1, 32, 32), jnp.float32)
    P = init_params(kp)

    out = jax.jit(forward_pallas)(x, P)
    out = jax.block_until_ready(out)

    ref = ref_forward(x, P)
    assert out.shape == (2, 1), out.shape
    assert jnp.allclose(out, ref, atol=1e-2, rtol=1e-2), (out, ref)
    print("KERNEL_OK")
</pallas_src>

<mosaic_0001>
module attributes {stable_mosaic.version = 11 : i64} {
  func.func @conv0_bn_pool_relu_kernel(%arg0: memref<4x338x81xf32, #tpu.memory_space<vmem>>, %arg1: memref<81x16xf32, #tpu.memory_space<vmem>>, %arg2: memref<1x16xf32, #tpu.memory_space<vmem>>, %arg3: memref<1x16xf32, #tpu.memory_space<vmem>>, %arg4: memref<338x16xf32, #tpu.memory_space<vmem>>) attributes {dimension_semantics = [], scalar_prefetch = 0 : i64, scratch_operands = 0 : i64, tpu.core_type = #tpu.core_type<tc>} {
    %c0 = arith.constant 0 : index
    %c0_0 = arith.constant 0 : index
    %c0_1 = arith.constant 0 : index
    %0 = vector.load %arg0[%c0, %c0_0, %c0_1] : memref<4x338x81xf32, #tpu.memory_space<vmem>>, vector<1x338x81xf32>
    %1 = vector.shape_cast %0 : vector<1x338x81xf32> to vector<338x81xf32>
    %c0_2 = arith.constant 0 : index
    %c0_3 = arith.constant 0 : index
    %2 = vector.load %arg1[%c0_2, %c0_3] : memref<81x16xf32, #tpu.memory_space<vmem>>, vector<81x16xf32>
    %cst = arith.constant dense<0.000000e+00> : vector<338x16xf32>
    %3 = tpu.matmul %1, %2, %cst {dimension_numbers = #tpu.dot_dimension_numbers<[1], [0], [0], [1], [0, 0, 1, 1], [], []>} : vector<338x81xf32>, vector<81x16xf32>, vector<338x16xf32> -> vector<338x16xf32>
    %c0_4 = arith.constant 0 : index
    %c0_5 = arith.constant 0 : index
    %4 = vector.load %arg2[%c0_4, %c0_5] : memref<1x16xf32, #tpu.memory_space<vmem>>, vector<1x16xf32>
    %5 = vector.broadcast %4 : vector<1x16xf32> to vector<338x16xf32>
    %6 = arith.mulf %3, %5 : vector<338x16xf32>
    %c0_6 = arith.constant 0 : index
    %c0_7 = arith.constant 0 : index
    %7 = vector.load %arg3[%c0_6, %c0_7] : memref<1x16xf32, #tpu.memory_space<vmem>>, vector<1x16xf32>
    %8 = vector.broadcast %7 : vector<1x16xf32> to vector<338x16xf32>
    %9 = arith.addf %6, %8 : vector<338x16xf32>
    %c1 = arith.constant 1 : index
    %c0_8 = arith.constant 0 : index
    %c0_9 = arith.constant 0 : index
    %10 = vector.load %arg0[%c1, %c0_8, %c0_9] : memref<4x338x81xf32, #tpu.memory_space<vmem>>, vector<1x338x81xf32>
    %11 = vector.shape_cast %10 : vector<1x338x81xf32> to vector<338x81xf32>
    %c0_10 = arith.constant 0 : index
    %c0_11 = arith.constant 0 : index
    %12 = vector.load %arg1[%c0_10, %c0_11] : memref<81x16xf32, #tpu.memory_space<vmem>>, vector<81x16xf32>
    %cst_12 = arith.constant dense<0.000000e+00> : vector<338x16xf32>
    %13 = tpu.matmul %11, %12, %cst_12 {dimension_numbers = #tpu.dot_dimension_numbers<[1], [0], [0], [1], [0, 0, 1, 1], [], []>} : vector<338x81xf32>, vector<81x16xf32>, vector<338x16xf32> -> vector<338x16xf32>
    %c0_13 = arith.constant 0 : index
    %c0_14 = arith.constant 0 : index
    %14 = vector.load %arg2[%c0_13, %c0_14] : memref<1x16xf32, #tpu.memory_space<vmem>>, vector<1x16xf32>
    %15 = vector.broadcast %14 : vector<1x16xf32> to vector<338x16xf32>
    %16 = arith.mulf %13, %15 : vector<338x16xf32>
    %c0_15 = arith.constant 0 : index
    %c0_16 = arith.constant 0 : index
    %17 = vector.load %arg3[%c0_15, %c0_16] : memref<1x16xf32, #tpu.memory_space<vmem>>, vector<1x16xf32>
    %18 = vector.broadcast %17 : vector<1x16xf32> to vector<338x16xf32>
    %19 = arith.addf %16, %18 : vector<338x16xf32>
    %20 = arith.maximumf %9, %19 : vector<338x16xf32>
    %c2 = arith.constant 2 : index
    %c0_17 = arith.constant 0 : index
    %c0_18 = arith.constant 0 : index
    %21 = vector.load %arg0[%c2, %c0_17, %c0_18] : memref<4x338x81xf32, #tpu.memory_space<vmem>>, vector<1x338x81xf32>
    %22 = vector.shape_cast %21 : vector<1x338x81xf32> to vector<338x81xf32>
    %c0_19 = arith.constant 0 : index
    %c0_20 = arith.constant 0 : index
    %23 = vector.load %arg1[%c0_19, %c0_20] : memref<81x16xf32, #tpu.memory_space<vmem>>, vector<81x16xf32>
    %cst_21 = arith.constant dense<0.000000e+00> : vector<338x16xf32>
    %24 = tpu.matmul %22, %23, %cst_21 {dimension_numbers = #tpu.dot_dimension_numbers<[1], [0], [0], [1], [0, 0, 1, 1], [], []>} : vector<338x81xf32>, vector<81x16xf32>, vector<338x16xf32> -> vector<338x16xf32>
    %c0_22 = arith.constant 0 : index
    %c0_23 = arith.constant 0 : index
    %25 = vector.load %arg2[%c0_22, %c0_23] : memref<1x16xf32, #tpu.memory_space<vmem>>, vector<1x16xf32>
    %26 = vector.broadcast %25 : vector<1x16xf32> to vector<338x16xf32>
    %27 = arith.mulf %24, %26 : vector<338x16xf32>
    %c0_24 = arith.constant 0 : index
    %c0_25 = arith.constant 0 : index
    %28 = vector.load %arg3[%c0_24, %c0_25] : memref<1x16xf32, #tpu.memory_space<vmem>>, vector<1x16xf32>
    %29 = vector.broadcast %28 : vector<1x16xf32> to vector<338x16xf32>
    %30 = arith.addf %27, %29 : vector<338x16xf32>
    %31 = arith.maximumf %20, %30 : vector<338x16xf32>
    %c3 = arith.constant 3 : index
    %c0_26 = arith.constant 0 : index
    %c0_27 = arith.constant 0 : index
    %32 = vector.load %arg0[%c3, %c0_26, %c0_27] : memref<4x338x81xf32, #tpu.memory_space<vmem>>, vector<1x338x81xf32>
    %33 = vector.shape_cast %32 : vector<1x338x81xf32> to vector<338x81xf32>
    %c0_28 = arith.constant 0 : index
    %c0_29 = arith.constant 0 : index
    %34 = vector.load %arg1[%c0_28, %c0_29] : memref<81x16xf32, #tpu.memory_space<vmem>>, vector<81x16xf32>
    %cst_30 = arith.constant dense<0.000000e+00> : vector<338x16xf32>
    %35 = tpu.matmul %33, %34, %cst_30 {dimension_numbers = #tpu.dot_dimension_numbers<[1], [0], [0], [1], [0, 0, 1, 1], [], []>} : vector<338x81xf32>, vector<81x16xf32>, vector<338x16xf32> -> vector<338x16xf32>
    %c0_31 = arith.constant 0 : index
    %c0_32 = arith.constant 0 : index
    %36 = vector.load %arg2[%c0_31, %c0_32] : memref<1x16xf32, #tpu.memory_space<vmem>>, vector<1x16xf32>
    %37 = vector.broadcast %36 : vector<1x16xf32> to vector<338x16xf32>
    %38 = arith.mulf %35, %37 : vector<338x16xf32>
    %c0_33 = arith.constant 0 : index
    %c0_34 = arith.constant 0 : index
    %39 = vector.load %arg3[%c0_33, %c0_34] : memref<1x16xf32, #tpu.memory_space<vmem>>, vector<1x16xf32>
    %40 = vector.broadcast %39 : vector<1x16xf32> to vector<338x16xf32>
    %41 = arith.addf %38, %40 : vector<338x16xf32>
    %42 = arith.maximumf %31, %41 : vector<338x16xf32>
    %cst_35 = arith.constant 0.000000e+00 : f32
    %43 = vector.broadcast %cst_35 : f32 to vector<338x16xf32>
    %44 = arith.maximumf %42, %43 : vector<338x16xf32>
    %c0_36 = arith.constant 0 : index
    %c0_37 = arith.constant 0 : index
    %45 = vector.load %arg4[%c0_36, %c0_37] : memref<338x16xf32, #tpu.memory_space<vmem>>, vector<338x16xf32>
    tpu.vector_store %arg4[%c0_36, %c0_37], %44 {strides = array<i32>} : memref<338x16xf32, #tpu.memory_space<vmem>>, vector<338x16xf32>,
    return
  }
}

module attributes {stable_mosaic.version = 11 : i64} {
  func.func @conv_bn_relu_kernel(%arg0: memref<242x400xf32, #tpu.memory_space<vmem>>, %arg1: memref<400x32xf32, #tpu.memory_space<vmem>>, %arg2: memref<1x32xf32, #tpu.memory_space<vmem>>, %arg3: memref<1x32xf32, #tpu.memory_space<vmem>>, %arg4: memref<242x32xf32, #tpu.memory_space<vmem>>) attributes {dimension_semantics = [], scalar_prefetch = 0 : i64, scratch_operands = 0 : i64, tpu.core_type = #tpu.core_type<tc>} {
    %c0 = arith.constant 0 : index
    %c0_0 = arith.constant 0 : index
    %0 = vector.load %arg0[%c0, %c0_0] : memref<242x400xf32, #tpu.memory_space<vmem>>, vector<242x400xf32>
    %c0_1 = arith.constant 0 : index
    %c0_2 = arith.constant 0 : index
    %1 = vector.load %arg1[%c0_1, %c0_2] : memref<400x32xf32, #tpu.memory_space<vmem>>, vector<400x32xf32>
    %cst = arith.constant dense<0.000000e+00> : vector<242x32xf32>
    %2 = tpu.matmul %0, %1, %cst {dimension_numbers = #tpu.dot_dimension_numbers<[1], [0], [0], [1], [0, 0, 1, 1], [], []>} : vector<242x400xf32>, vector<400x32xf32>, vector<242x32xf32> -> vector<242x32xf32>
    %c0_3 = arith.constant 0 : index
    %c0_4 = arith.constant 0 : index
    %3 = vector.load %arg2[%c0_3, %c0_4] : memref<1x32xf32, #tpu.memory_space<vmem>>, vector<1x32xf32>
    %4 = vector.broadcast %3 : vector<1x32xf32> to vector<242x32xf32>
    %5 = arith.mulf %2, %4 : vector<242x32xf32>
    %c0_5 = arith.constant 0 : index
    %c0_6 = arith.constant 0 : index
    %6 = vector.load %arg3[%c0_5, %c0_6] : memref<1x32xf32, #tpu.memory_space<vmem>>, vector<1x32xf32>
    %7 = vector.broadcast %6 : vector<1x32xf32> to vector<242x32xf32>
    %8 = arith.addf %5, %7 : vector<242x32xf32>
    %cst_7 = arith.constant 0.000000e+00 : f32
    %9 = vector.broadcast %cst_7 : f32 to vector<242x32xf32>
    %10 = arith.maximumf %8, %9 : vector<242x32xf32>
    %c0_8 = arith.constant 0 : index
    %c0_9 = arith.constant 0 : index
    %11 = vector.load %arg4[%c0_8, %c0_9] : memref<242x32xf32, #tpu.memory_space<vmem>>, vector<242x32xf32>
    tpu.vector_store %arg4[%c0_8, %c0_9], %10 {strides = array<i32>} : memref<242x32xf32, #tpu.memory_space<vmem>>, vector<242x32xf32>,
    return
  }
}

module attributes {stable_mosaic.version = 11 : i64} {
  func.func @conv_bn_relu_kernel(%arg0: memref<72x288xf32, #tpu.memory_space<vmem>>, %arg1: memref<288x64xf32, #tpu.memory_space<vmem>>, %arg2: memref<1x64xf32, #tpu.memory_space<vmem>>, %arg3: memref<1x64xf32, #tpu.memory_space<vmem>>, %arg4: memref<72x64xf32, #tpu.memory_space<vmem>>) attributes {dimension_semantics = [], scalar_prefetch = 0 : i64, scratch_operands = 0 : i64, tpu.core_type = #tpu.core_type<tc>} {
    %c0 = arith.constant 0 : index
    %c0_0 = arith.constant 0 : index
    %0 = vector.load %arg0[%c0, %c0_0] : memref<72x288xf32, #tpu.memory_space<vmem>>, vector<72x288xf32>
    %c0_1 = arith.constant 0 : index
    %c0_2 = arith.constant 0 : index
    %1 = vector.load %arg1[%c0_1, %c0_2] : memref<288x64xf32, #tpu.memory_space<vmem>>, vector<288x64xf32>
    %cst = arith.constant dense<0.000000e+00> : vector<72x64xf32>
    %2 = tpu.matmul %0, %1, %cst {dimension_numbers = #tpu.dot_dimension_numbers<[1], [0], [0], [1], [0, 0, 1, 1], [], []>} : vector<72x288xf32>, vector<288x64xf32>, vector<72x64xf32> -> vector<72x64xf32>
    %c0_3 = arith.constant 0 : index
    %c0_4 = arith.constant 0 : index
    %3 = vector.load %arg2[%c0_3, %c0_4] : memref<1x64xf32, #tpu.memory_space<vmem>>, vector<1x64xf32>
    %4 = vector.broadcast %3 : vector<1x64xf32> to vector<72x64xf32>
    %5 = arith.mulf %2, %4 : vector<72x64xf32>
    %c0_5 = arith.constant 0 : index
    %c0_6 = arith.constant 0 : index
    %6 = vector.load %arg3[%c0_5, %c0_6] : memref<1x64xf32, #tpu.memory_space<vmem>>, vector<1x64xf32>
    %7 = vector.broadcast %6 : vector<1x64xf32> to vector<72x64xf32>
    %8 = arith.addf %5, %7 : vector<72x64xf32>
    %cst_7 = arith.constant 0.000000e+00 : f32
    %9 = vector.broadcast %cst_7 : f32 to vector<72x64xf32>
    %10 = arith.maximumf %8, %9 : vector<72x64xf32>
    %c0_8 = arith.constant 0 : index
    %c0_9 = arith.constant 0 : index
    %11 = vector.load %arg4[%c0_8, %c0_9] : memref<72x64xf32, #tpu.memory_space<vmem>>, vector<72x64xf32>
    tpu.vector_store %arg4[%c0_8, %c0_9], %10 {strides = array<i32>} : memref<72x64xf32, #tpu.memory_space<vmem>>, vector<72x64xf32>,
    return
  }
}

module attributes {stable_mosaic.version = 11 : i64} {
  func.func @conv_bn_relu_kernel(%arg0: memref<72x576xf32, #tpu.memory_space<vmem>>, %arg1: memref<576x64xf32, #tpu.memory_space<vmem>>, %arg2: memref<1x64xf32, #tpu.memory_space<vmem>>, %arg3: memref<1x64xf32, #tpu.memory_space<vmem>>, %arg4: memref<72x64xf32, #tpu.memory_space<vmem>>) attributes {dimension_semantics = [], scalar_prefetch = 0 : i64, scratch_operands = 0 : i64, tpu.core_type = #tpu.core_type<tc>} {
    %c0 = arith.constant 0 : index
    %c0_0 = arith.constant 0 : index
    %0 = vector.load %arg0[%c0, %c0_0] : memref<72x576xf32, #tpu.memory_space<vmem>>, vector<72x576xf32>
    %c0_1 = arith.constant 0 : index
    %c0_2 = arith.constant 0 : index
    %1 = vector.load %arg1[%c0_1, %c0_2] : memref<576x64xf32, #tpu.memory_space<vmem>>, vector<576x64xf32>
    %cst = arith.constant dense<0.000000e+00> : vector<72x64xf32>
    %2 = tpu.matmul %0, %1, %cst {dimension_numbers = #tpu.dot_dimension_numbers<[1], [0], [0], [1], [0, 0, 1, 1], [], []>} : vector<72x576xf32>, vector<576x64xf32>, vector<72x64xf32> -> vector<72x64xf32>
    %c0_3 = arith.constant 0 : index
    %c0_4 = arith.constant 0 : index
    %3 = vector.load %arg2[%c0_3, %c0_4] : memref<1x64xf32, #tpu.memory_space<vmem>>, vector<1x64xf32>
    %4 = vector.broadcast %3 : vector<1x64xf32> to vector<72x64xf32>
    %5 = arith.mulf %2, %4 : vector<72x64xf32>
    %c0_5 = arith.constant 0 : index
    %c0_6 = arith.constant 0 : index
    %6 = vector.load %arg3[%c0_5, %c0_6] : memref<1x64xf32, #tpu.memory_space<vmem>>, vector<1x64xf32>
    %7 = vector.broadcast %6 : vector<1x64xf32> to vector<72x64xf32>
    %8 = arith.addf %5, %7 : vector<72x64xf32>
    %cst_7 = arith.constant 0.000000e+00 : f32
    %9 = vector.broadcast %cst_7 : f32 to vector<72x64xf32>
    %10 = arith.maximumf %8, %9 : vector<72x64xf32>
    %c0_8 = arith.constant 0 : index
    %c0_9 = arith.constant 0 : index
    %11 = vector.load %arg4[%c0_8, %c0_9] : memref<72x64xf32, #tpu.memory_space<vmem>>, vector<72x64xf32>
    tpu.vector_store %arg4[%c0_8, %c0_9], %10 {strides = array<i32>} : memref<72x64xf32, #tpu.memory_space<vmem>>, vector<72x64xf32>,
    return
  }
}

module attributes {stable_mosaic.version = 11 : i64} {
  func.func @conv_bn_relu_head_kernel(%arg0: memref<18x576xf32, #tpu.memory_space<vmem>>, %arg1: memref<576x128xf32, #tpu.memory_space<vmem>>, %arg2: memref<1x128xf32, #tpu.memory_space<vmem>>, %arg3: memref<1x128xf32, #tpu.memory_space<vmem>>, %arg4: memref<2x18xf32, #tpu.memory_space<vmem>>, %arg5: memref<128x1xf32, #tpu.memory_space<vmem>>, %arg6: memref<1x1xf32, #tpu.memory_space<vmem>>, %arg7: memref<2x1xf32, #tpu.memory_space<vmem>>) attributes {dimension_semantics = [], scalar_prefetch = 0 : i64, scratch_operands = 0 : i64, tpu.core_type = #tpu.core_type<tc>} {
    %c0 = arith.constant 0 : index
    %c0_0 = arith.constant 0 : index
    %0 = vector.load %arg0[%c0, %c0_0] : memref<18x576xf32, #tpu.memory_space<vmem>>, vector<18x576xf32>
    %c0_1 = arith.constant 0 : index
    %c0_2 = arith.constant 0 : index
    %1 = vector.load %arg1[%c0_1, %c0_2] : memref<576x128xf32, #tpu.memory_space<vmem>>, vector<576x128xf32>
    %cst = arith.constant dense<0.000000e+00> : vector<18x128xf32>
    %2 = tpu.matmul %0, %1, %cst {dimension_numbers = #tpu.dot_dimension_numbers<[1], [0], [0], [1], [0, 0, 1, 1], [], []>} : vector<18x576xf32>, vector<576x128xf32>, vector<18x128xf32> -> vector<18x128xf32>
    %c0_3 = arith.constant 0 : index
    %c0_4 = arith.constant 0 : index
    %3 = vector.load %arg2[%c0_3, %c0_4] : memref<1x128xf32, #tpu.memory_space<vmem>>, vector<1x128xf32>
    %4 = vector.broadcast %3 : vector<1x128xf32> to vector<18x128xf32>
    %5 = arith.mulf %2, %4 : vector<18x128xf32>
    %c0_5 = arith.constant 0 : index
    %c0_6 = arith.constant 0 : index
    %6 = vector.load %arg3[%c0_5, %c0_6] : memref<1x128xf32, #tpu.memory_space<vmem>>, vector<1x128xf32>
    %7 = vector.broadcast %6 : vector<1x128xf32> to vector<18x128xf32>
    %8 = arith.addf %5, %7 : vector<18x128xf32>
    %cst_7 = arith.constant 0.000000e+00 : f32
    %9 = vector.broadcast %cst_7 : f32 to vector<18x128xf32>
    %10 = arith.maximumf %8, %9 : vector<18x128xf32>
    %c0_8 = arith.constant 0 : index
    %c0_9 = arith.constant 0 : index
    %11 = vector.load %arg4[%c0_8, %c0_9] : memref<2x18xf32, #tpu.memory_space<vmem>>, vector<2x18xf32>
    %cst_10 = arith.constant dense<0.000000e+00> : vector<2x128xf32>
    %12 = tpu.matmul %11, %10, %cst_10 {dimension_numbers = #tpu.dot_dimension_numbers<[1], [0], [0], [1], [0, 0, 1, 1], [], []>} : vector<2x18xf32>, vector<18x128xf32>, vector<2x128xf32> -> vector<2x128xf32>
    %c0_11 = arith.constant 0 : index
    %c0_12 = arith.constant 0 : index
    %13 = vector.load %arg5[%c0_11, %c0_12] : memref<128x1xf32, #tpu.memory_space<vmem>>, vector<128x1xf32>
    %cst_13 = arith.constant dense<0.000000e+00> : vector<2x1xf32>
    %14 = tpu.matmul %12, %13, %cst_13 {dimension_numbers = #tpu.dot_dimension_numbers<[1], [0], [0], [1], [0, 0, 1, 1], [], []>} : vector<2x128xf32>, vector<128x1xf32>, vector<2x1xf32> -> vector<2x1xf32>
    %c0_14 = arith.constant 0 : index
    %c0_15 = arith.constant 0 : index
    %15 = vector.load %arg6[%c0_14, %c0_15] : memref<1x1xf32, #tpu.memory_space<vmem>>, vector<1x1xf32>
    %16 = vector.broadcast %15 : vector<1x1xf32> to vector<2x1xf32>
    %17 = arith.addf %14, %16 : vector<2x1xf32>
    %c0_16 = arith.constant 0 : index
    %c0_17 = arith.constant 0 : index
    %18 = vector.load %arg7[%c0_16, %c0_17] : memref<2x1xf32, #tpu.memory_space<vmem>>, vector<2x1xf32>
    tpu.vector_store %arg7[%c0_16, %c0_17], %17 {strides = array<i32>} : memref<2x1xf32, #tpu.memory_space<vmem>>, vector<2x1xf32>,
    return
  }
}

</mosaic_0001>

<bundles_post_ra>
// kernel: forward_pallas.5
= control target key start
LH: loop header
LB: loop body
LE: loop exit
PB: predicated region body
PF: predicated region fallthrough
CT: control target
= control target key end

     0   :  { %v3617_v0 = vmov 0.0|0.0   ;;  %vm3618_vm0 = vmmov 0   ;;  %v5679_v6 = vmov 0.0   ;;  %vm201_vm1 = vcmask 1040384   ;;  %s5674_s1 = inlined_call_operand.vmem [shape: f32[81,16], index: 1, kind: input, shape index: {}]   ;;  %s5675_s0 = inlined_call_operand.vmem [shape: f32[4,338,81], index: 0, kind: input, shape index: {}]   ;;  %s5676_s2 = inlined_call_operand.vmem [shape: f32[1,16], index: 2, kind: input, shape index: {}]   ;;  %s5677_s3 = inlined_call_operand.vmem [shape: f32[1,16], index: 3, kind: input, shape index: {}]   ;;  %s5678_s4 = inlined_call_operand.vmem [shape: f32[338,16], index: 4, kind: output, shape index: {}]  }
   0x1   :  { %3550 = vmatprep.subr.bf16.mxu0 %v3617_v0  ;;  %v60_v1 = vld [vmem:[%s5674_s1] sm:$0xff]  ;;  %v61_v2 = vld [vmem:[%s5674_s1 + $0x8] sm:$0xff]  ;;  %3565 = vmatprep.subr.bf16.mxu1 %v3617_v0  ;;  %v62_v3 = vld [vmem:[%s5674_s1 + $0x10] sm:$0xff]  ;;  %vm71_vm2 = vcmask 662528   ;;  %vm2374_vm3 = vcmask 130048   ;;  %vm2417_vm4 = vcmask 123904  }
   0x2   :  { %v3551_v4 = vpack.c.bf16 %v61_v2, %v60_v1  ;;  %v63_v5 = vld [vmem:[%s5674_s1 + $0x18] sm:$0xff]  ;;  %2968 = vmatprep.mubr.msk.f32.mxu0 %vm3618_vm0, %v5679_v6  ;;  %3119 = vmatprep.mubr.msk.f32.mxu1 %vm3618_vm0, %v5679_v6  ;;  %v64_v8 = vld [vmem:[%s5674_s1 + $0x20] sm:$0xff]  ;;  %v65_v9 = vld [vmem:[%s5674_s1 + $0x28] sm:$0xff] }
   0x3   :  { %v3554_v7 = vpack.c.bf16 %v63_v5, %v62_v3  ;;  %v3557_v10 = vpack.c.bf16 %v65_v9, %v64_v8  ;;  %v66_v11 = vld [vmem:[%s5674_s1 + $0x30] sm:$0xff]  ;;  %v67_v12 = vld [vmem:[%s5674_s1 + $0x38] sm:$0xff]  ;;  %v68_v14 = vld [vmem:[%s5674_s1 + $0x40] sm:$0xff] }
   0x4   :  { %3552 = vmatpush3.bf16.msra.mxu0 %v3551_v4  ;;  %3567 = vmatpush3.bf16.msra.mxu1 %v3551_v4  ;;  %v3679_v13 = vpack.c.bf16 %v67_v12, %v66_v11  ;;  %v69_v15 = vld [vmem:[%s5674_s1 + $0x48] sm:$0xff]  ;;  %v3701_v17 = vld [vmem:[%s5674_s1 + $0x50] sm:$0x1]  ;;  %v17_v18 = vld [vmem:[%s5675_s0] sm:$0xff] }
   0x5   :  { %3553 = vmatprep.subr.bf16.mxu0 %v3617_v0  ;;  %3568 = vmatprep.subr.bf16.mxu1 %v3617_v0  ;;  %v3691_v16 = vpack.c.bf16 %v69_v15, %v68_v14  ;;  %v2469_v19 = vld [vmem:[%s5675_s0 + $0x158] sm:$0xff]  ;;  %v18_v20 = vld [vmem:[%s5675_s0 + $0x8] sm:$0xff]  ;;  %v2470_v21 = vld [vmem:[%s5675_s0 + $0x160] sm:$0xff] }
   0x6   :  { %v19_v22 = vld [vmem:[%s5675_s0 + $0x10] sm:$0xff]  ;;  %v2471_v23 = vld [vmem:[%s5675_s0 + $0x168] sm:$0xff]  ;;  %v20_v24 = vld [vmem:[%s5675_s0 + $0x18] sm:$0xff] }
   0x7   :  { %v2472_v25 = vld [vmem:[%s5675_s0 + $0x170] sm:$0xff]  ;;  %v21_v26 = vld [vmem:[%s5675_s0 + $0x20] sm:$0xff]  ;;  %v2473_v27 = vld [vmem:[%s5675_s0 + $0x178] sm:$0xff] }
   0x8   :  { %3555 = vmatpush3.bf16.msra.mxu0 %v3554_v7  ;;  %3570 = vmatpush3.bf16.msra.mxu1 %v3554_v7  ;;  %v22_v28 = vld [vmem:[%s5675_s0 + $0x28] sm:$0xff]  ;;  %v2474_v29 = vld [vmem:[%s5675_s0 + $0x180] sm:$0xff]  ;;  %v23_v30 = vld [vmem:[%s5675_s0 + $0x30] sm:$0xff] }
   0x9   :  { %3556 = vmatprep.subr.bf16.mxu0 %v3617_v0  ;;  %3571 = vmatprep.subr.bf16.mxu1 %v3617_v0  ;;  %v2475_v31 = vld [vmem:[%s5675_s0 + $0x188] sm:$0xff]  ;;  %v24_v32 = vld [vmem:[%s5675_s0 + $0x38] sm:$0xff]  ;;  %v2476_v33 = vld [vmem:[%s5675_s0 + $0x190] sm:$0xff] }
   0xa   :  { %v25_v34 = vld [vmem:[%s5675_s0 + $0x40] sm:$0xff]  ;;  %v2477_v35 = vld [vmem:[%s5675_s0 + $0x198] sm:$0xff]  ;;  %v26_v36 = vld [vmem:[%s5675_s0 + $0x48] sm:$0xff] }
   0xb   :  { %v2478_v37 = vld [vmem:[%s5675_s0 + $0x1a0] sm:$0xff]  ;;  %v27_v38 = vld [vmem:[%s5675_s0 + $0x50] sm:$0xff]  ;;  %v2479_v39 = vld [vmem:[%s5675_s0 + $0x1a8] sm:$0xff] }
   0xc   :  { %3558 = vmatpush3.bf16.msra.mxu0 %v3557_v10  ;;  %3573 = vmatpush3.bf16.msra.mxu1 %v3557_v10  ;;  %v28_v40 = vld [vmem:[%s5675_s0 + $0x58] sm:$0xff]  ;;  %v2480_v41 = vld [vmem:[%s5675_s0 + $0x1b0] sm:$0xff]  ;;  %v29_v42 = vld [vmem:[%s5675_s0 + $0x60] sm:$0xff] }
   0xd   :  { %3559 = vmatprep.subr.bf16.mxu0 %v3617_v0  ;;  %3574 = vmatprep.subr.bf16.mxu1 %v3617_v0  ;;  %v2481_v43 = vld [vmem:[%s5675_s0 + $0x1b8] sm:$0xff]  ;;  %v30_v44 = vld [vmem:[%s5675_s0 + $0x68] sm:$0xff]  ;;  %v2482_v45 = vld [vmem:[%s5675_s0 + $0x1c0] sm:$0xff] }
   0xe   :  { %v31_v46 = vld [vmem:[%s5675_s0 + $0x70] sm:$0xff]  ;;  %v2483_v47 = vld [vmem:[%s5675_s0 + $0x1c8] sm:$0xff]  ;;  %v32_v48 = vld [vmem:[%s5675_s0 + $0x78] sm:$0xff] }
   0xf   :  { %v2484_v49 = vld [vmem:[%s5675_s0 + $0x1d0] sm:$0xff]  ;;  %v33_v50 = vld [vmem:[%s5675_s0 + $0x80] sm:$0xff]  ;;  %v2485_v51 = vld [vmem:[%s5675_s0 + $0x1d8] sm:$0xff] }
  0x10   :  { %3561 = vmatpush3.bf16.msra.mxu0 %v3679_v13  ;;  %3576 = vmatpush3.bf16.msra.mxu1 %v3679_v13  ;;  %v34_v52 = vld [vmem:[%s5675_s0 + $0x88] sm:$0xff]  ;;  %v2486_v53 = vld [vmem:[%s5675_s0 + $0x1e0] sm:$0xff]  ;;  %v35_v54 = vld [vmem:[%s5675_s0 + $0x90] sm:$0xff] }
  0x11   :  { %3562 = vmatprep.subr.bf16.mxu0 %v3617_v0  ;;  %3577 = vmatprep.subr.bf16.mxu1 %v3617_v0  ;;  %v2487_v55 = vld [vmem:[%s5675_s0 + $0x1e8] sm:$0xff]  ;;  %v36_v56 = vld [vmem:[%s5675_s0 + $0x98] sm:$0xff]  ;;  %v2488_v57 = vld [vmem:[%s5675_s0 + $0x1f0] sm:$0xff] }
  0x12   :  { %v37_v58 = vld [vmem:[%s5675_s0 + $0xa0] sm:$0xff]  ;;  %v2489_v59 = vld [vmem:[%s5675_s0 + $0x1f8] sm:$0xff]  ;;  %v38_v60 = vld [vmem:[%s5675_s0 + $0xa8] sm:$0xff] }
  0x13   :  { %v2490_v61 = vld [vmem:[%s5675_s0 + $0x200] sm:$0xff]  ;;  %v39_v62 = vld [vmem:[%s5675_s0 + $0xb0] sm:$0xff]  ;;  %v2491_v63 = vld [vmem:[%s5675_s0 + $0x208] sm:$0xff] }
  0x14   :  { %3564 = vmatpush3.bf16.msra.mxu0 %v3691_v16  ;;  %3579 = vmatpush3.bf16.msra.mxu1 %v3691_v16  ;;  %v2492_v1 = vld [vmem:[%s5675_s0 + $0x210] sm:$0xff]  ;;  %v41_v2 = vld [vmem:[%s5675_s0 + $0xc0] sm:$0xff]  ;;  %v2493_v3 = vld [vmem:[%s5675_s0 + $0x218] sm:$0xff] }
  0x15   :  { %2966 = vmatprep.subr.mxu0 %v5679_v6  ;;  %3117 = vmatprep.subr.mxu1 %v5679_v6  ;;  %v2494_v5 = vld [vmem:[%s5675_s0 + $0x220] sm:$0xff]  ;;  %v2495_v8 = vld [vmem:[%s5675_s0 + $0x228] sm:$0xff]  ;;  %v44_v9 = vld [vmem:[%s5675_s0 + $0xd8] sm:$0xff] }
  0x16   :  { %v45_v11 = vld [vmem:[%s5675_s0 + $0xe0] sm:$0xff]  ;;  %v2497_v12 = vld [vmem:[%s5675_s0 + $0x238] sm:$0xff]  ;;  %v47_v15 = vld [vmem:[%s5675_s0 + $0xf0] sm:$0xff] }
  0x17   :  { %v2498_v14 = vld [vmem:[%s5675_s0 + $0x240] sm:$0xff] }
  0x18   :  { %2967 = vmatpush3.msk.msra.mxu0 %vm201_vm1, %v3701_v17  ;;  %3118 = vmatpush3.msk.msra.mxu1 %vm201_vm1, %v3701_v17 }
  0x19   :  { %2969 = vmatmul.mubr.msk.f32.vlgmr.msra.gmra.mrb[0].mxu0 %vm71_vm2, %v17_v18  ;;  %3580 = vmatprep.subr.bf16.mxu0 %v3617_v0  ;;  %v2500_v18 = vld [vmem:[%s5675_s0 + $0x250] sm:$0xff] }
  0x1a   :  { %3120 = vmatmul.mubr.msk.f32.vlgmr.msra.gmra.mrb[0].mxu1 %vm71_vm2, %v2469_v19  ;;  %3582 = vmatpush3.bf16.msra.mxu0 %v3551_v4  ;;  %v49_v19 = vld [vmem:[%s5675_s0 + $0x100] sm:$0xff] }
  0x1b   :  { %3595 = vmatprep.subr.bf16.mxu1 %v3617_v0  ;;  %2971 = vmatprep.mubr.msk.f32.mxu0 %vm3618_vm0, %v5679_v6 }
  0x1c   :  { %3597 = vmatpush3.bf16.msra.mxu1 %v3551_v4  ;;  %3122 = vmatprep.mubr.msk.f32.mxu1 %vm3618_vm0, %v5679_v6  ;;  %v42_v4 = vld [vmem:[%s5675_s0 + $0xc8] sm:$0xff] }
  0x1d   :  { %2972 = vmatmul.mubr.msk.f32.gmra.mrb[2].mxu0 %vm71_vm2, %v18_v20  ;;  %3583 = vmatprep.subr.bf16.mxu0 %v3617_v0  ;;  %v2501_v20 = vld [vmem:[%s5675_s0 + $0x258] sm:$0xff] }
  0x1e   :  { %3123 = vmatmul.mubr.msk.f32.gmra.mrb[2].mxu1 %vm71_vm2, %v2470_v21  ;;  %2974 = vmatprep.mubr.msk.f32.mxu0 %vm3618_vm0, %v5679_v6  ;;  %v50_v21 = vld [vmem:[%s5675_s0 + $0x108] sm:$0xff] }
  0x1f   :  { %3125 = vmatprep.mubr.msk.f32.mxu1 %vm3618_vm0, %v5679_v6  ;;  %3585 = vmatpush3.bf16.msra.mxu0 %v3554_v7 }
  0x20   :  { %3598 = vmatprep.subr.bf16.mxu1 %v3617_v0  ;;  %3586 = vmatprep.subr.bf16.mxu0 %v3617_v0 }
  0x21   :  { %2975 = vmatmul.mubr.msk.f32.gmra.mrb[4].mxu0 %vm71_vm2, %v19_v22  ;;  %3600 = vmatpush3.bf16.msra.mxu1 %v3554_v7  ;;  %v43_v7 = vld [vmem:[%s5675_s0 + $0xd0] sm:$0xff]  ;;  %v2502_v22 = vld [vmem:[%s5675_s0 + $0x260] sm:$0xff] }
  0x22   :  { %3126 = vmatmul.mubr.msk.f32.gmra.mrb[4].mxu1 %vm71_vm2, %v2471_v23  ;;  %2977 = vmatprep.mubr.msk.f32.mxu0 %vm3618_vm0, %v5679_v6  ;;  %v51_v23 = vld [vmem:[%s5675_s0 + $0x110] sm:$0xff] }
  0x23   :  { %3128 = vmatprep.mubr.msk.f32.mxu1 %vm3618_vm0, %v5679_v6  ;;  %3588 = vmatpush3.bf16.msra.mxu0 %v3557_v10 }
  0x24   :  { %3601 = vmatprep.subr.bf16.mxu1 %v3617_v0  ;;  %3589 = vmatprep.subr.bf16.mxu0 %v3617_v0 }
  0x25   :  { %2978 = vmatmul.mubr.msk.f32.gmra.mrb[6].mxu0 %vm71_vm2, %v20_v24  ;;  %3603 = vmatpush3.bf16.msra.mxu1 %v3557_v10  ;;  %v2496_v10 = vld [vmem:[%s5675_s0 + $0x230] sm:$0xff]  ;;  %v2503_v24 = vld [vmem:[%s5675_s0 + $0x268] sm:$0xff] }
  0x26   :  { %3129 = vmatmul.mubr.msk.f32.gmra.mrb[6].mxu1 %vm71_vm2, %v2472_v25  ;;  %2980 = vmatprep.mubr.msk.f32.mxu0 %vm3618_vm0, %v5679_v6  ;;  %v52_v25 = vld [vmem:[%s5675_s0 + $0x118] sm:$0xff] }
  0x27   :  { %3131 = vmatprep.mubr.msk.f32.mxu1 %vm3618_vm0, %v5679_v6  ;;  %3591 = vmatpush3.bf16.msra.mxu0 %v3679_v13 }
  0x28   :  { %3604 = vmatprep.subr.bf16.mxu1 %v3617_v0  ;;  %3592 = vmatprep.subr.bf16.mxu0 %v3617_v0 }
  0x29   :  { %2981 = vmatmul.mubr.msk.f32.gmra.mrb[8].mxu0 %vm71_vm2, %v21_v26  ;;  %3606 = vmatpush3.bf16.msra.mxu1 %v3679_v13  ;;  %v46_v13 = vld [vmem:[%s5675_s0 + $0xe8] sm:$0xff]  ;;  %v2504_v26 = vld [vmem:[%s5675_s0 + $0x270] sm:$0xff] }
  0x2a   :  { %3132 = vmatmul.mubr.msk.f32.gmra.mrb[8].mxu1 %vm71_vm2, %v2473_v27  ;;  %2983 = vmatprep.mubr.msk.f32.mxu0 %vm3618_vm0, %v5679_v6  ;;  %v53_v27 = vld [vmem:[%s5675_s0 + $0x120] sm:$0xff] }
  0x2b   :  { %3134 = vmatprep.mubr.msk.f32.mxu1 %vm3618_vm0, %v5679_v6  ;;  %3594 = vmatpush3.bf16.msra.mxu0 %v3691_v16 }
  0x2c   :  { %3607 = vmatprep.subr.bf16.mxu1 %v3617_v0  ;;  %3268 = vmatprep.subr.mxu0 %v5679_v6  ;;  %v40_v0 = vld [vmem:[%s5675_s0 + $0xb8] sm:$0xff] }
  0x2d   :  { %2984 = vmatmul.mubr.msk.f32.gmra.mrb[10].mxu0 %vm71_vm2, %v22_v28  ;;  %3609 = vmatpush3.bf16.msra.mxu1 %v3691_v16  ;;  %v2499_v16 = vld [vmem:[%s5675_s0 + $0x248] sm:$0xff]  ;;  %v2505_v28 = vld [vmem:[%s5675_s0 + $0x278] sm:$0xff] }
  0x2e   :  { %3135 = vmatmul.mubr.msk.f32.gmra.mrb[10].mxu1 %vm71_vm2, %v2474_v29  ;;  %2986 = vmatprep.mubr.msk.f32.mxu0 %vm3618_vm0, %v5679_v6  ;;  %v54_v29 = vld [vmem:[%s5675_s0 + $0x128] sm:$0xff] }
  0x2f   :  { %3137 = vmatprep.mubr.msk.f32.mxu1 %vm3618_vm0, %v5679_v6  ;;  %3269 = vmatpush3.msk.msra.mxu0 %vm201_vm1, %v3701_v17 }
  0x30   :  { %3419 = vmatprep.subr.mxu1 %v5679_v6 }
  0x31   :  { %2987 = vmatmul.mubr.msk.f32.gmra.mrb[12].mxu0 %vm71_vm2, %v23_v30  ;;  %3420 = vmatpush3.msk.msra.mxu1 %vm201_vm1, %v3701_v17  ;;  %v48_v17 = vld [vmem:[%s5675_s0 + $0xf8] sm:$0xff]  ;;  %v2506_v30 = vld [vmem:[%s5675_s0 + $0x280] sm:$0xff] }
  0x32   :  { %3138 = vmatmul.mubr.msk.f32.gmra.mrb[12].mxu1 %vm71_vm2, %v2475_v31  ;;  %2989 = vmatprep.mubr.msk.f32.mxu0 %vm3618_vm0, %v5679_v6  ;;  %v55_v31 = vld [vmem:[%s5675_s0 + $0x130] sm:$0xff] }
  0x33   :  { %3140 = vmatprep.mubr.msk.f32.mxu1 %vm3618_vm0, %v5679_v6 }
  0x35   :  { %2990 = vmatmul.mubr.msk.f32.gmra.mrb[14].mxu0 %vm71_vm2, %v24_v32  ;;  %v2507_v32 = vld [vmem:[%s5675_s0 + $0x288] sm:$0xff] }
  0x36   :  { %3141 = vmatmul.mubr.msk.f32.gmra.mrb[14].mxu1 %vm71_vm2, %v2476_v33  ;;  %2992 = vmatprep.mubr.msk.f32.mxu0 %vm3618_vm0, %v5679_v6  ;;  %v56_v33 = vld [vmem:[%s5675_s0 + $0x138] sm:$0xff] }
  0x37   :  { %3143 = vmatprep.mubr.msk.f32.mxu1 %vm3618_vm0, %v5679_v6 }
  0x39   :  { %2993 = vmatmul.mubr.msk.f32.gmra.mrb[16].mxu0 %vm71_vm2, %v25_v34  ;;  %v2508_v34 = vld [vmem:[%s5675_s0 + $0x290] sm:$0xff] }
  0x3a   :  { %3144 = vmatmul.mubr.msk.f32.gmra.mrb[16].mxu1 %vm71_vm2, %v2477_v35  ;;  %2995 = vmatprep.mubr.msk.f32.mxu0 %vm3618_vm0, %v5679_v6  ;;  %v57_v35 = vld [vmem:[%s5675_s0 + $0x140] sm:$0xff] }
  0x3b   :  { %3146 = vmatprep.mubr.msk.f32.mxu1 %vm3618_vm0, %v5679_v6 }
  0x3d   :  { %2996 = vmatmul.mubr.msk.f32.gmra.mrb[18].mxu0 %vm71_vm2, %v26_v36  ;;  %v2509_v36 = vld [vmem:[%s5675_s0 + $0x298] sm:$0xff] }
  0x3e   :  { %3147 = vmatmul.mubr.msk.f32.gmra.mrb[18].mxu1 %vm71_vm2, %v2478_v37  ;;  %2998 = vmatprep.mubr.msk.f32.mxu0 %vm3618_vm0, %v5679_v6  ;;  %v58_v37 = vld [vmem:[%s5675_s0 + $0x148] sm:$0xff] }
  0x3f   :  { %3149 = vmatprep.mubr.msk.f32.mxu1 %vm3618_vm0, %v5679_v6 }
  0x41   :  { %2999 = vmatmul.mubr.msk.f32.gmra.mrb[20].mxu0 %vm71_vm2, %v27_v38  ;;  %v2510_v38 = vld [vmem:[%s5675_s0 + $0x2a0] sm:$0xff] }
  0x42   :  { %3150 = vmatmul.mubr.msk.f32.gmra.mrb[20].mxu1 %vm71_vm2, %v2479_v39  ;;  %3001 = vmatprep.mubr.msk.f32.mxu0 %vm3618_vm0, %v5679_v6  ;;  %v59_v39 = vld [vmem:[%s5675_s0 + $0x150] sm:$0x3] }
  0x43   :  { %3152 = vmatprep.mubr.msk.f32.mxu1 %vm3618_vm0, %v5679_v6 }
  0x45   :  { %3002 = vmatmul.mubr.msk.f32.gmra.mrb[22].mxu0 %vm71_vm2, %v28_v40  ;;  %v2511_v40 = vld [vmem:[%s5675_s0 + $0x2a8] sm:$0x3] }
  0x46   :  { %3153 = vmatmul.mubr.msk.f32.gmra.mrb[22].mxu1 %vm71_vm2, %v2480_v41  ;;  %3004 = vmatprep.mubr.msk.f32.mxu0 %vm3618_vm0, %v5679_v6  ;;  %v2556_v41 = vld [vmem:[%s5675_s0 + $0x2b0] sm:$0xff] }
  0x47   :  { %3155 = vmatprep.mubr.msk.f32.mxu1 %vm3618_vm0, %v5679_v6 }
  0x49   :  { %3005 = vmatmul.mubr.msk.f32.gmra.mrb[24].mxu0 %vm71_vm2, %v29_v42  ;;  %v2643_v42 = vld [vmem:[%s5675_s0 + $0x408] sm:$0xff] }
  0x4a   :  { %3156 = vmatmul.mubr.msk.f32.gmra.mrb[24].mxu1 %vm71_vm2, %v2481_v43  ;;  %3007 = vmatprep.mubr.msk.f32.mxu0 %vm3618_vm0, %v5679_v6  ;;  %v2557_v43 = vld [vmem:[%s5675_s0 + $0x2b8] sm:$0xff] }
  0x4b   :  { %3158 = vmatprep.mubr.msk.f32.mxu1 %vm3618_vm0, %v5679_v6 }
  0x4d   :  { %3008 = vmatmul.mubr.msk.f32.gmra.mrb[26].mxu0 %vm71_vm2, %v30_v44  ;;  %v2644_v44 = vld [vmem:[%s5675_s0 + $0x410] sm:$0xff] }
  0x4e   :  { %3159 = vmatmul.mubr.msk.f32.gmra.mrb[26].mxu1 %vm71_vm2, %v2482_v45  ;;  %3010 = vmatprep.mubr.msk.f32.mxu0 %vm3618_vm0, %v5679_v6  ;;  %v2558_v45 = vld [vmem:[%s5675_s0 + $0x2c0] sm:$0xff] }
  0x4f   :  { %3161 = vmatprep.mubr.msk.f32.mxu1 %vm3618_vm0, %v5679_v6 }
  0x51   :  { %3011 = vmatmul.mubr.msk.f32.gmra.mrb[28].mxu0 %vm71_vm2, %v31_v46  ;;  %v2645_v46 = vld [vmem:[%s5675_s0 + $0x418] sm:$0xff] }
  0x52   :  { %3162 = vmatmul.mubr.msk.f32.gmra.mrb[28].mxu1 %vm71_vm2, %v2483_v47  ;;  %3013 = vmatprep.mubr.msk.f32.mxu0 %vm3618_vm0, %v5679_v6  ;;  %v2559_v47 = vld [vmem:[%s5675_s0 + $0x2c8] sm:$0xff] }
  0x53   :  { %3164 = vmatprep.mubr.msk.f32.mxu1 %vm3618_vm0, %v5679_v6 }
  0x55   :  { %3014 = vmatmul.mubr.msk.f32.gmra.mrb[30].mxu0 %vm71_vm2, %v32_v48  ;;  %v2646_v48 = vld [vmem:[%s5675_s0 + $0x420] sm:$0xff] }
  0x56   :  { %3165 = vmatmul.mubr.msk.f32.gmra.mrb[30].mxu1 %vm71_vm2, %v2484_v49  ;;  %3016 = vmatprep.mubr.msk.f32.mxu0 %vm3618_vm0, %v5679_v6  ;;  %v2560_v49 = vld [vmem:[%s5675_s0 + $0x2d0] sm:$0xff] }
  0x57   :  { %3167 = vmatprep.mubr.msk.f32.mxu1 %vm3618_vm0, %v5679_v6 }
  0x59   :  { %3017 = vmatmul.mubr.msk.f32.gmra.mrb[32].mxu0 %vm71_vm2, %v33_v50  ;;  %v2647_v50 = vld [vmem:[%s5675_s0 + $0x428] sm:$0xff] }
  0x5a   :  { %3168 = vmatmul.mubr.msk.f32.gmra.mrb[32].mxu1 %vm71_vm2, %v2485_v51  ;;  %3019 = vmatprep.mubr.msk.f32.mxu0 %vm3618_vm0, %v5679_v6  ;;  %v2561_v51 = vld [vmem:[%s5675_s0 + $0x2d8] sm:$0xff] }
  0x5b   :  { %3170 = vmatprep.mubr.msk.f32.mxu1 %vm3618_vm0, %v5679_v6 }
  0x5d   :  { %3020 = vmatmul.mubr.msk.f32.gmra.mrb[34].mxu0 %vm71_vm2, %v34_v52  ;;  %v2648_v52 = vld [vmem:[%s5675_s0 + $0x430] sm:$0xff] }
  0x5e   :  { %3171 = vmatmul.mubr.msk.f32.gmra.mrb[34].mxu1 %vm71_vm2, %v2486_v53  ;;  %3022 = vmatprep.mubr.msk.f32.mxu0 %vm3618_vm0, %v5679_v6  ;;  %v2562_v53 = vld [vmem:[%s5675_s0 + $0x2e0] sm:$0xff] }
  0x5f   :  { %3173 = vmatprep.mubr.msk.f32.mxu1 %vm3618_vm0, %v5679_v6 }
  0x61   :  { %3023 = vmatmul.mubr.msk.f32.gmra.mrb[36].mxu0 %vm71_vm2, %v35_v54  ;;  %v2649_v54 = vld [vmem:[%s5675_s0 + $0x438] sm:$0xff] }
  0x62   :  { %3174 = vmatmul.mubr.msk.f32.gmra.mrb[36].mxu1 %vm71_vm2, %v2487_v55  ;;  %3025 = vmatprep.mubr.msk.f32.mxu0 %vm3618_vm0, %v5679_v6  ;;  %v2563_v55 = vld [vmem:[%s5675_s0 + $0x2e8] sm:$0xff] }
  0x63   :  { %3176 = vmatprep.mubr.msk.f32.mxu1 %vm3618_vm0, %v5679_v6 }
  0x65   :  { %3026 = vmatmul.mubr.msk.f32.gmra.mrb[38].mxu0 %vm71_vm2, %v36_v56  ;;  %v2650_v56 = vld [vmem:[%s5675_s0 + $0x440] sm:$0xff] }
  0x66   :  { %3177 = vmatmul.mubr.msk.f32.gmra.mrb[38].mxu1 %vm71_vm2, %v2488_v57  ;;  %3028 = vmatprep.mubr.msk.f32.mxu0 %vm3618_vm0, %v5679_v6  ;;  %v2564_v57 = vld [vmem:[%s5675_s0 + $0x2f0] sm:$0xff] }
  0x67   :  { %3179 = vmatprep.mubr.msk.f32.mxu1 %vm3618_vm0, %v5679_v6 }
  0x69   :  { %3029 = vmatmul.mubr.msk.f32.gmra.mrb[40].mxu0 %vm71_vm2, %v37_v58  ;;  %v2651_v58 = vld [vmem:[%s5675_s0 + $0x448] sm:$0xff] }
  0x6a   :  { %3180 = vmatmul.mubr.msk.f32.gmra.mrb[40].mxu1 %vm71_vm2, %v2489_v59  ;;  %3031 = vmatprep.mubr.msk.f32.mxu0 %vm3618_vm0, %v5679_v6  ;;  %v2565_v59 = vld [vmem:[%s5675_s0 + $0x2f8] sm:$0xff] }
  0x6b   :  { %3182 = vmatprep.mubr.msk.f32.mxu1 %vm3618_vm0, %v5679_v6 }
  0x6d   :  { %3032 = vmatmul.mubr.msk.f32.gmra.mrb[42].mxu0 %vm71_vm2, %v38_v60  ;;  %v2652_v60 = vld [vmem:[%s5675_s0 + $0x450] sm:$0xff] }
  0x6e   :  { %3183 = vmatmul.mubr.msk.f32.gmra.mrb[42].mxu1 %vm71_vm2, %v2490_v61  ;;  %3034 = vmatprep.mubr.msk.f32.mxu0 %vm3618_vm0, %v5679_v6  ;;  %v4363_v61 = vld [vmem:[%s5676_s2] ss:$0 sm:$0xff] }
  0x6f   :  { %3185 = vmatprep.mubr.msk.f32.mxu1 %vm3618_vm0, %v5679_v6 }
  0x71   :  { %3035 = vmatmul.mubr.msk.f32.gmra.mrb[44].mxu0 %vm71_vm2, %v39_v62  ;;  %v2566_v62 = vld [vmem:[%s5675_s0 + $0x300] sm:$0xff] }
  0x72   :  { %3186 = vmatmul.mubr.msk.f32.gmra.mrb[44].mxu1 %vm71_vm2, %v2491_v63  ;;  %3037 = vmatprep.mubr.msk.f32.mxu0 %vm3618_vm0, %v5679_v6  ;;  %v2653_v63 = vld [vmem:[%s5675_s0 + $0x458] sm:$0xff] }
  0x73   :  { %3188 = vmatprep.mubr.msk.f32.mxu1 %vm3618_vm0, %v5679_v6 }
  0x75   :  { %3038 = vmatmul.mubr.msk.f32.gmra.mrb[46].mxu0 %vm71_vm2, %v40_v0 }
  0x76   :  { %3189 = vmatmul.mubr.msk.f32.gmra.mrb[46].mxu1 %vm71_vm2, %v2492_v1  ;;  %3040 = vmatprep.mubr.msk.f32.mxu0 %vm3618_vm0, %v5679_v6  ;;  %v4378_v1 = vld [vmem:[%s5677_s3] ss:$0 sm:$0xff] }
  0x77   :  { %3191 = vmatprep.mubr.msk.f32.mxu1 %vm3618_vm0, %v5679_v6 }
  0x79   :  { %3041 = vmatmul.mubr.msk.f32.gmra.mrb[48].mxu0 %vm71_vm2, %v41_v2 }
  0x7a   :  { %3192 = vmatmul.mubr.msk.f32.gmra.mrb[48].mxu1 %vm71_vm2, %v2493_v3  ;;  %3043 = vmatprep.mubr.msk.f32.mxu0 %vm3618_vm0, %v5679_v6 }
  0x7b   :  { %3194 = vmatprep.mubr.msk.f32.mxu1 %vm3618_vm0, %v5679_v6 }
  0x7d   :  { %3044 = vmatmul.mubr.msk.f32.gmra.mrb[50].mxu0 %vm71_vm2, %v42_v4 }
  0x7e   :  { %3195 = vmatmul.mubr.msk.f32.gmra.mrb[50].mxu1 %vm71_vm2, %v2494_v5  ;;  %3046 = vmatprep.mubr.msk.f32.mxu0 %vm3618_vm0, %v5679_v6 }
  0x7f   :  { %3197 = vmatprep.mubr.msk.f32.mxu1 %vm3618_vm0, %v5679_v6 }
  0x81   :  { %3047 = vmatmul.mubr.msk.f32.gmra.mrb[52].mxu0 %vm71_vm2, %v43_v7 }
  0x82   :  { %3198 = vmatmul.mubr.msk.f32.gmra.mrb[52].mxu1 %vm71_vm2, %v2495_v8  ;;  %3049 = vmatprep.mubr.msk.f32.mxu0 %vm3618_vm0, %v5679_v6  ;;  %v2567_v8 = vld [vmem:[%s5675_s0 + $0x308] sm:$0xff] }
  0x83   :  { %3200 = vmatprep.mubr.msk.f32.mxu1 %vm3618_vm0, %v5679_v6 }
  0x85   :  { %3050 = vmatmul.mubr.msk.f32.gmra.mrb[54].mxu0 %vm71_vm2, %v44_v9 }
  0x86   :  { %3201 = vmatmul.mubr.msk.f32.gmra.mrb[54].mxu1 %vm71_vm2, %v2496_v10  ;;  %3052 = vmatprep.mubr.msk.f32.mxu0 %vm3618_vm0, %v5679_v6  ;;  %v2654_v10 = vld [vmem:[%s5675_s0 + $0x460] sm:$0xff] }
  0x87   :  { %3203 = vmatprep.mubr.msk.f32.mxu1 %vm3618_vm0, %v5679_v6 }
  0x89   :  { %3053 = vmatmul.mubr.msk.f32.gmra.mrb[56].mxu0 %vm71_vm2, %v45_v11 }
  0x8a   :  { %3204 = vmatmul.mubr.msk.f32.gmra.mrb[56].mxu1 %vm71_vm2, %v2497_v12  ;;  %3055 = vmatprep.mubr.msk.f32.mxu0 %vm3618_vm0, %v5679_v6 }
  0x8b   :  { %3206 = vmatprep.mubr.msk.f32.mxu1 %vm3618_vm0, %v5679_v6 }
  0x8d   :  { %3056 = vmatmul.mubr.msk.f32.gmra.mrb[58].mxu0 %vm71_vm2, %v46_v13 }
  0x8e   :  { %3207 = vmatmul.mubr.msk.f32.gmra.mrb[58].mxu1 %vm71_vm2, %v2498_v14  ;;  %3058 = vmatprep.mubr.msk.f32.mxu0 %vm3618_vm0, %v5679_v6 }
  0x8f   :  { %3209 = vmatprep.mubr.msk.f32.mxu1 %vm3618_vm0, %v5679_v6 }
  0x91   :  { %3059 = vmatmul.mubr.msk.f32.gmra.mrb[60].mxu0 %vm71_vm2, %v47_v15 }
  0x92   :  { %3210 = vmatmul.mubr.msk.f32.gmra.mrb[60].mxu1 %vm71_vm2, %v2499_v16  ;;  %3061 = vmatprep.mubr.msk.f32.mxu0 %vm3618_vm0, %v5679_v6 }
  0x93   :  { %3212 = vmatprep.mubr.msk.f32.mxu1 %vm3618_vm0, %v5679_v6 }
  0x95   :  { %3062 = vmatmul.mubr.msk.f32.gmra.mrb[62].mxu0 %vm71_vm2, %v48_v17 }
  0x96   :  { %3213 = vmatmul.mubr.msk.f32.gmra.mrb[62].mxu1 %vm71_vm2, %v2500_v18  ;;  %3064 = vmatprep.mubr.msk.f32.mxu0 %vm3618_vm0, %v5679_v6 }
  0x97   :  { %3215 = vmatprep.mubr.msk.f32.mxu1 %vm3618_vm0, %v5679_v6 }
  0x99   :  { %3065 = vmatmul.mubr.msk.f32.gmra.mrb[64].mxu0 %vm71_vm2, %v49_v19  ;;  %v2568_v19 = vld [vmem:[%s5675_s0 + $0x310] sm:$0xff] }
  0x9a   :  { %3216 = vmatmul.mubr.msk.f32.gmra.mrb[64].mxu1 %vm71_vm2, %v2501_v20  ;;  %3067 = vmatprep.mubr.msk.f32.mxu0 %vm3618_vm0, %v5679_v6 }
  0x9b   :  { %3218 = vmatprep.mubr.msk.f32.mxu1 %vm3618_vm0, %v5679_v6 }
  0x9d   :  { %3068 = vmatmul.mubr.msk.f32.gmra.mrb[66].mxu0 %vm71_vm2, %v50_v21  ;;  %v2655_v21 = vld [vmem:[%s5675_s0 + $0x468] sm:$0xff] }
  0x9e   :  { %3219 = vmatmul.mubr.msk.f32.gmra.mrb[66].mxu1 %vm71_vm2, %v2502_v22  ;;  %3070 = vmatprep.mubr.msk.f32.mxu0 %vm3618_vm0, %v5679_v6 }
  0x9f   :  { %3221 = vmatprep.mubr.msk.f32.mxu1 %vm3618_vm0, %v5679_v6 }
  0xa1   :  { %3071 = vmatmul.mubr.msk.f32.gmra.mrb[68].mxu0 %vm71_vm2, %v51_v23 }
  0xa2   :  { %3222 = vmatmul.mubr.msk.f32.gmra.mrb[68].mxu1 %vm71_vm2, %v2503_v24  ;;  %3073 = vmatprep.mubr.msk.f32.mxu0 %vm3618_vm0, %v5679_v6 }
  0xa3   :  { %3224 = vmatprep.mubr.msk.f32.mxu1 %vm3618_vm0, %v5679_v6 }
  0xa5   :  { %3074 = vmatmul.mubr.msk.f32.gmra.mrb[70].mxu0 %vm71_vm2, %v52_v25 }
  0xa6   :  { %3225 = vmatmul.mubr.msk.f32.gmra.mrb[70].mxu1 %vm71_vm2, %v2504_v26  ;;  %3076 = vmatprep.mubr.msk.f32.mxu0 %vm3618_vm0, %v5679_v6 }
  0xa7   :  { %3227 = vmatprep.mubr.msk.f32.mxu1 %vm3618_vm0, %v5679_v6 }
  0xa9   :  { %3077 = vmatmul.mubr.msk.f32.gmra.mrb[72].mxu0 %vm71_vm2, %v53_v27 }
  0xaa   :  { %3228 = vmatmul.mubr.msk.f32.gmra.mrb[72].mxu1 %vm71_vm2, %v2505_v28  ;;  %3079 = vmatprep.mubr.msk.f32.mxu0 %vm3618_vm0, %v5679_v6 }
  0xab   :  { %3230 = vmatprep.mubr.msk.f32.mxu1 %vm3618_vm0, %v5679_v6 }
  0xad   :  { %3080 = vmatmul.mubr.msk.f32.gmra.mrb[74].mxu0 %vm71_vm2, %v54_v29 }
  0xae   :  { %3231 = vmatmul.mubr.msk.f32.gmra.mrb[74].mxu1 %vm71_vm2, %v2506_v30  ;;  %3082 = vmatprep.mubr.msk.f32.mxu0 %vm3618_vm0, %v5679_v6  ;;  %v2569_v30 = vld [vmem:[%s5675_s0 + $0x318] sm:$0xff] }
  0xaf   :  { %3233 = vmatprep.mubr.msk.f32.mxu1 %vm3618_vm0, %v5679_v6 }
  0xb1   :  { %3083 = vmatmul.mubr.msk.f32.gmra.mrb[76].mxu0 %vm71_vm2, %v55_v31 }
  0xb2   :  { %3234 = vmatmul.mubr.msk.f32.gmra.mrb[76].mxu1 %vm71_vm2, %v2507_v32  ;;  %3085 = vmatprep.mubr.msk.f32.mxu0 %vm3618_vm0, %v5679_v6  ;;  %v2656_v32 = vld [vmem:[%s5675_s0 + $0x470] sm:$0xff] }
  0xb3   :  { %3236 = vmatprep.mubr.msk.f32.mxu1 %vm3618_vm0, %v5679_v6 }
  0xb5   :  { %3086 = vmatmul.mubr.msk.f32.gmra.mrb[78].mxu0 %vm71_vm2, %v56_v33 }
  0xb6   :  { %3237 = vmatmul.mubr.msk.f32.gmra.mrb[78].mxu1 %vm71_vm2, %v2508_v34  ;;  %3088 = vmatprep.mubr.msk.f32.mxu0 %vm3618_vm0, %v5679_v6 }
  0xb7   :  { %3239 = vmatprep.mubr.msk.f32.mxu1 %vm3618_vm0, %v5679_v6 }
  0xb9   :  { %3089 = vmatmul.mubr.msk.f32.gmra.mrb[80].mxu0 %vm71_vm2, %v57_v35 }
  0xba   :  { %3240 = vmatmul.mubr.msk.f32.gmra.mrb[80].mxu1 %vm71_vm2, %v2509_v36  ;;  %3091 = vmatprep.mubr.msk.f32.mxu0 %vm3618_vm0, %v5679_v6 }
  0xbb   :  { %3242 = vmatprep.mubr.msk.f32.mxu1 %vm3618_vm0, %v5679_v6 }
  0xbd   :  { %3092 = vmatmul.mubr.msk.f32.gmra.mrb[82].mxu0 %vm71_vm2, %v58_v37 }
  0xbe   :  { %3243 = vmatmul.mubr.msk.f32.gmra.mrb[82].mxu1 %vm71_vm2, %v2510_v38  ;;  %3094 = vmatprep.mubr.msk.f32.mxu0 %vm3618_vm0, %v5679_v6 }
  0xbf   :  { %3245 = vmatprep.mubr.msk.f32.mxu1 %vm3618_vm0, %v5679_v6 }
  0xc1   :  { %3095 = vmatmul.mubr.msk.f32.gmra.mrb[84].mxu0 %vm71_vm2, %v59_v39 }
  0xc2   :  { %3246 = vmatmul.mubr.msk.f32.gmra.mrb[84].mxu1 %vm71_vm2, %v2511_v40  ;;  %3270 = vmatprep.mubr.msk.f32.mxu0 %vm3618_vm0, %v5679_v6 }
  0xc3   :  { %3421 = vmatprep.mubr.msk.f32.mxu1 %vm3618_vm0, %v5679_v6 }
  0xc5   :  { %3271 = vmatmul.mubr.msk.f32.vlgmr.msra.gmra.mrb[86].mxu0 %vm71_vm2, %v2556_v41  ;;  %v2570_v41 = vld [vmem:[%s5675_s0 + $0x320] sm:$0xff] }
  0xc6   :  { %3422 = vmatmul.mubr.msk.f32.vlgmr.msra.gmra.mrb[86].mxu1 %vm71_vm2, %v2643_v42  ;;  %3273 = vmatprep.mubr.msk.f32.mxu0 %vm3618_vm0, %v5679_v6 }
  0xc7   :  { %3424 = vmatprep.mubr.msk.f32.mxu1 %vm3618_vm0, %v5679_v6 }
  0xc9   :  { %3274 = vmatmul.mubr.msk.f32.gmra.mrb[88].mxu0 %vm71_vm2, %v2557_v43  ;;  %v2657_v43 = vld [vmem:[%s5675_s0 + $0x478] sm:$0xff] }
  0xca   :  { %3425 = vmatmul.mubr.msk.f32.gmra.mrb[88].mxu1 %vm71_vm2, %v2644_v44  ;;  %3276 = vmatprep.mubr.msk.f32.mxu0 %vm3618_vm0, %v5679_v6 }
  0xcb   :  { %3427 = vmatprep.mubr.msk.f32.mxu1 %vm3618_vm0, %v5679_v6 }
  0xcd   :  { %3277 = vmatmul.mubr.msk.f32.gmra.mrb[90].mxu0 %vm71_vm2, %v2558_v45 }
  0xce   :  { %3428 = vmatmul.mubr.msk.f32.gmra.mrb[90].mxu1 %vm71_vm2, %v2645_v46  ;;  %3279 = vmatprep.mubr.msk.f32.mxu0 %vm3618_vm0, %v5679_v6 }
  0xcf   :  { %3430 = vmatprep.mubr.msk.f32.mxu1 %vm3618_vm0, %v5679_v6 }
  0xd1   :  { %3280 = vmatmul.mubr.msk.f32.gmra.mrb[92].mxu0 %vm71_vm2, %v2559_v47 }
  0xd2   :  { %3431 = vmatmul.mubr.msk.f32.gmra.mrb[92].mxu1 %vm71_vm2, %v2646_v48  ;;  %3282 = vmatprep.mubr.msk.f32.mxu0 %vm3618_vm0, %v5679_v6 }
  0xd3   :  { %3433 = vmatprep.mubr.msk.f32.mxu1 %vm3618_vm0, %v5679_v6 }
  0xd5   :  { %3283 = vmatmul.mubr.msk.f32.gmra.mrb[94].mxu0 %vm71_vm2, %v2560_v49 }
  0xd6   :  { %3434 = vmatmul.mubr.msk.f32.gmra.mrb[94].mxu1 %vm71_vm2, %v2647_v50  ;;  %3285 = vmatprep.mubr.msk.f32.mxu0 %vm3618_vm0, %v5679_v6 }
  0xd7   :  { %3436 = vmatprep.mubr.msk.f32.mxu1 %vm3618_vm0, %v5679_v6 }
  0xd9   :  { %3286 = vmatmul.mubr.msk.f32.gmra.mrb[96].mxu0 %vm71_vm2, %v2561_v51 }
  0xda   :  { %3437 = vmatmul.mubr.msk.f32.gmra.mrb[96].mxu1 %vm71_vm2, %v2648_v52  ;;  %3288 = vmatprep.mubr.msk.f32.mxu0 %vm3618_vm0, %v5679_v6  ;;  %v2571_v52 = vld [vmem:[%s5675_s0 + $0x328] sm:$0xff] }
  0xdb   :  { %3439 = vmatprep.mubr.msk.f32.mxu1 %vm3618_vm0, %v5679_v6 }
  0xdd   :  { %3289 = vmatmul.mubr.msk.f32.gmra.mrb[98].mxu0 %vm71_vm2, %v2562_v53 }
  0xde   :  { %3440 = vmatmul.mubr.msk.f32.gmra.mrb[98].mxu1 %vm71_vm2, %v2649_v54  ;;  %3291 = vmatprep.mubr.msk.f32.mxu0 %vm3618_vm0, %v5679_v6  ;;  %v2658_v54 = vld [vmem:[%s5675_s0 + $0x480] sm:$0xff] }
  0xdf   :  { %3442 = vmatprep.mubr.msk.f32.mxu1 %vm3618_vm0, %v5679_v6 }
  0xe1   :  { %3292 = vmatmul.mubr.msk.f32.gmra.mrb[100].mxu0 %vm71_vm2, %v2563_v55 }
  0xe2   :  { %3443 = vmatmul.mubr.msk.f32.gmra.mrb[100].mxu1 %vm71_vm2, %v2650_v56  ;;  %3294 = vmatprep.mubr.msk.f32.mxu0 %vm3618_vm0, %v5679_v6 }
  0xe3   :  { %3445 = vmatprep.mubr.msk.f32.mxu1 %vm3618_vm0, %v5679_v6 }
  0xe5   :  { %3295 = vmatmul.mubr.msk.f32.gmra.mrb[102].mxu0 %vm71_vm2, %v2564_v57 }
  0xe6   :  { %3446 = vmatmul.mubr.msk.f32.gmra.mrb[102].mxu1 %vm71_vm2, %v2651_v58  ;;  %3297 = vmatprep.mubr.msk.f32.mxu0 %vm3618_vm0, %v5679_v6 }
  0xe7   :  { %3448 = vmatprep.mubr.msk.f32.mxu1 %vm3618_vm0, %v5679_v6 }
  0xe9   :  { %3298 = vmatmul.mubr.msk.f32.gmra.mrb[104].mxu0 %vm71_vm2, %v2565_v59 }
  0xea   :  { %3449 = vmatmul.mubr.msk.f32.gmra.mrb[104].mxu1 %vm71_vm2, %v2652_v60  ;;  %3300 = vmatprep.mubr.msk.f32.mxu0 %vm3618_vm0, %v5679_v6 }
  0xeb   :  { %3451 = vmatprep.mubr.msk.f32.mxu1 %vm3618_vm0, %v5679_v6 }
  0xec   :  { %v271_v0 = vpop.f32.mrb[0].mxu0 }
  0xed   :  { %v492_v2 = vmul.f32 %v4363_v61, %v271_v0  ;;  %v2970_v3 = vpop.f32.mrb[1].mxu0  ;;  %v824_v4 = vpop.f32.mrb[0].mxu1  ;;  %3301 = vmatmul.mubr.msk.f32.gmra.mrb[106].mxu0 %vm71_vm2, %v2566_v62  ;;  %v2572_v0 = vld [vmem:[%s5675_s0 + $0x330] sm:$0xff] }
  0xee   :  { %v1038_v5 = vmul.f32 %v4363_v61, %v824_v4  ;;  %v3121_v7 = vpop.f32.mrb[1].mxu1  ;;  %3452 = vmatmul.mubr.msk.f32.gmra.mrb[106].mxu1 %vm71_vm2, %v2653_v63  ;;  %3303 = vmatprep.mubr.msk.f32.mxu0 %vm3618_vm0, %v5679_v6  ;;  %v2659_v3 = vld [vmem:[%s5675_s0 + $0x488] sm:$0xff] }
  0xef   :  { %v4390_v9 = vadd.f32 %v4378_v1, %v492_v2  ;;  %3454 = vmatprep.mubr.msk.f32.mxu1 %vm3618_vm0, %v5679_v6 }
  0xf0   :  { %v4398_v11 = vadd.f32 %v4378_v1, %v1038_v5  ;;  %v276_v12 = vpop.f32.mrb[2].mxu0 }
  0xf1   :  { %v493_v13 = vmul.f32 %v4363_v61, %v276_v12  ;;  %v2973_v14 = vpop.f32.mrb[3].mxu0  ;;  %v829_v15 = vpop.f32.mrb[2].mxu1  ;;  %3304 = vmatmul.mubr.msk.f32.gmra.mrb[108].mxu0 %vm71_vm2, %v2567_v8 }
  0xf2   :  { %v1039_v17 = vmul.f32 %v4363_v61, %v829_v15  ;;  %v3124_v18 = vpop.f32.mrb[3].mxu1  ;;  %3455 = vmatmul.mubr.msk.f32.gmra.mrb[108].mxu1 %vm71_vm2, %v2654_v10  ;;  %3306 = vmatprep.mubr.msk.f32.mxu0 %vm3618_vm0, %v5679_v6  ;;  %v2573_v15 = vld [vmem:[%s5675_s0 + $0x338] sm:$0xff] }
  0xf3   :  { %v4412_v20 = vadd.f32 %v4378_v1, %v493_v13  ;;  %3457 = vmatprep.mubr.msk.f32.mxu1 %vm3618_vm0, %v5679_v6  ;;  %v2660_v18 = vld [vmem:[%s5675_s0 + $0x490] sm:$0xff] }
  0xf4   :  { %v4420_v22 = vadd.f32 %v4378_v1, %v1039_v17  ;;  %v281_v23 = vpop.f32.mrb[4].mxu0 }
  0xf5   :  { %v494_v24 = vmul.f32 %v4363_v61, %v281_v23  ;;  %v2976_v25 = vpop.f32.mrb[5].mxu0  ;;  %v834_v26 = vpop.f32.mrb[4].mxu1  ;;  %3307 = vmatmul.mubr.msk.f32.gmra.mrb[110].mxu0 %vm71_vm2, %v2568_v19 }
  0xf6   :  { %v1040_v28 = vmul.f32 %v4363_v61, %v834_v26  ;;  %v3127_v29 = vpop.f32.mrb[5].mxu1  ;;  %3458 = vmatmul.mubr.msk.f32.gmra.mrb[110].mxu1 %vm71_vm2, %v2655_v21  ;;  %3309 = vmatprep.mubr.msk.f32.mxu0 %vm3618_vm0, %v5679_v6 }
  0xf7   :  { %v4434_v31 = vadd.f32 %v4378_v1, %v494_v24  ;;  %3460 = vmatprep.mubr.msk.f32.mxu1 %vm3618_vm0, %v5679_v6 }
  0xf8   :  { %v4442_v33 = vadd.f32 %v4378_v1, %v1040_v28  ;;  %v286_v34 = vpop.f32.mrb[6].mxu0 }
  0xf9   :  { %v495_v35 = vmul.f32 %v4363_v61, %v286_v34  ;;  %v2979_v36 = vpop.f32.mrb[7].mxu0  ;;  %v839_v37 = vpop.f32.mrb[6].mxu1  ;;  %3310 = vmatmul.mubr.msk.f32.gmra.mrb[112].mxu0 %vm71_vm2, %v2569_v30  ;;  %v2574_v30 = vld [vmem:[%s5675_s0 + $0x340] sm:$0xff]  ;;  %v2661_v34 = vld [vmem:[%s5675_s0 + $0x498] sm:$0xff] }
  0xfa   :  { %v1041_v39 = vmul.f32 %v4363_v61, %v839_v37  ;;  %v3130_v40 = vpop.f32.mrb[7].mxu1  ;;  %3461 = vmatmul.mubr.msk.f32.gmra.mrb[112].mxu1 %vm71_vm2, %v2656_v32  ;;  %3312 = vmatprep.mubr.msk.f32.mxu0 %vm3618_vm0, %v5679_v6 }
  0xfb   :  { %v4456_v42 = vadd.f32 %v4378_v1, %v495_v35  ;;  %3463 = vmatprep.mubr.msk.f32.mxu1 %vm3618_vm0, %v5679_v6 }
  0xfc   :  { %v4464_v44 = vadd.f32 %v4378_v1, %v1041_v39  ;;  %v291_v45 = vpop.f32.mrb[8].mxu0 }
  0xfd   :  { %v496_v46 = vmul.f32 %v4363_v61, %v291_v45  ;;  %v2982_v47 = vpop.f32.mrb[9].mxu0  ;;  %v844_v48 = vpop.f32.mrb[8].mxu1  ;;  %3313 = vmatmul.mubr.msk.f32.gmra.mrb[114].mxu0 %vm71_vm2, %v2570_v41 }
  0xfe   :  { %v1042_v50 = vmul.f32 %v4363_v61, %v844_v48  ;;  %v3133_v51 = vpop.f32.mrb[9].mxu1  ;;  %3464 = vmatmul.mubr.msk.f32.gmra.mrb[114].mxu1 %vm71_vm2, %v2657_v43  ;;  %3315 = vmatprep.mubr.msk.f32.mxu0 %vm3618_vm0, %v5679_v6  ;;  %v2662_v48 = vld [vmem:[%s5675_s0 + $0x4a0] sm:$0xff] }
  0xff   :  { %v4478_v53 = vadd.f32 %v4378_v1, %v496_v46  ;;  %3466 = vmatprep.mubr.msk.f32.mxu1 %vm3618_vm0, %v5679_v6  ;;  %v2575_v46 = vld [vmem:[%s5675_s0 + $0x348] sm:$0xff] }
 0x100   :  { %v4486_v55 = vadd.f32 %v4378_v1, %v1042_v50  ;;  %v296_v56 = vpop.f32.mrb[10].mxu0 }
 0x101   :  { %v497_v57 = vmul.f32 %v4363_v61, %v296_v56  ;;  %v2985_v58 = vpop.f32.mrb[11].mxu0  ;;  %v849_v59 = vpop.f32.mrb[10].mxu1  ;;  %3316 = vmatmul.mubr.msk.f32.gmra.mrb[116].mxu0 %vm71_vm2, %v2571_v52 }
 0x102   :  { %v1043_v62 = vmul.f32 %v4363_v61, %v849_v59  ;;  %v3136_v63 = vpop.f32.mrb[11].mxu1  ;;  %3467 = vmatmul.mubr.msk.f32.gmra.mrb[116].mxu1 %vm71_vm2, %v2658_v54  ;;  %3318 = vmatprep.mubr.msk.f32.mxu0 %vm3618_vm0, %v5679_v6 }
 0x103   :  { %v4500_v2 = vadd.f32 %v4378_v1, %v497_v57  ;;  %3469 = vmatprep.mubr.msk.f32.mxu1 %vm3618_vm0, %v5679_v6 }
 0x104   :  { %v4508_v4 = vadd.f32 %v4378_v1, %v1043_v62  ;;  %v301_v5 = vpop.f32.mrb[12].mxu0  ;;  %v2576_v62 = vld [vmem:[%s5675_s0 + $0x350] sm:$0xff] }
 0x105   :  { %v498_v7 = vmul.f32 %v4363_v61, %v301_v5  ;;  %v2988_v8 = vpop.f32.mrb[13].mxu0  ;;  %v854_v10 = vpop.f32.mrb[12].mxu1  ;;  %3319 = vmatmul.mubr.msk.f32.gmra.mrb[118].mxu0 %vm71_vm2, %v2572_v0  ;;  %v2663_v0 = vld [vmem:[%s5675_s0 + $0x4a8] sm:$0xff] }
 0x106   :  { %v1044_v13 = vmul.f32 %v4363_v61, %v854_v10  ;;  %v3139_v14 = vpop.f32.mrb[13].mxu1  ;;  %3470 = vmatmul.mubr.msk.f32.gmra.mrb[118].mxu1 %vm71_vm2, %v2659_v3  ;;  %3321 = vmatprep.mubr.msk.f32.mxu0 %vm3618_vm0, %v5679_v6 }
 0x107   :  { %v4522_v17 = vadd.f32 %v4378_v1, %v498_v7  ;;  %3472 = vmatprep.mubr.msk.f32.mxu1 %vm3618_vm0, %v5679_v6 }
 0x108   :  { %v4530_v19 = vadd.f32 %v4378_v1, %v1044_v13  ;;  %v306_v21 = vpop.f32.mrb[14].mxu0 }
 0x109   :  { %v499_v23 = vmul.f32 %v4363_v61, %v306_v21  ;;  %v2991_v24 = vpop.f32.mrb[15].mxu0  ;;  %v859_v25 = vpop.f32.mrb[14].mxu1  ;;  %3322 = vmatmul.mubr.msk.f32.gmra.mrb[120].mxu0 %vm71_vm2, %v2573_v15 }
 0x10a   :  { %v1045_v28 = vmul.f32 %v4363_v61, %v859_v25  ;;  %v3142_v29 = vpop.f32.mrb[15].mxu1  ;;  %3473 = vmatmul.mubr.msk.f32.gmra.mrb[120].mxu1 %vm71_vm2, %v2660_v18  ;;  %3324 = vmatprep.mubr.msk.f32.mxu0 %vm3618_vm0, %v5679_v6  ;;  %v2577_v18 = vld [vmem:[%s5675_s0 + $0x358] sm:$0xff] }
 0x10b   :  { %v4544_v32 = vadd.f32 %v4378_v1, %v499_v23  ;;  %3475 = vmatprep.mubr.msk.f32.mxu1 %vm3618_vm0, %v5679_v6  ;;  %v2664_v23 = vld [vmem:[%s5675_s0 + $0x4b0] sm:$0xff] }
 0x10c   :  { %v4552_v35 = vadd.f32 %v4378_v1, %v1045_v28  ;;  %v311_v36 = vpop.f32.mrb[16].mxu0 }
 0x10d   :  { %v500_v37 = vmul.f32 %v4363_v61, %v311_v36  ;;  %v2994_v39 = vpop.f32.mrb[17].mxu0  ;;  %v864_v40 = vpop.f32.mrb[16].mxu1  ;;  %3325 = vmatmul.mubr.msk.f32.gmra.mrb[122].mxu0 %vm71_vm2, %v2574_v30 }
 0x10e   :  { %v1046_v43 = vmul.f32 %v4363_v61, %v864_v40  ;;  %v3145_v45 = vpop.f32.mrb[17].mxu1  ;;  %3476 = vmatmul.mubr.msk.f32.gmra.mrb[122].mxu1 %vm71_vm2, %v2661_v34  ;;  %3327 = vmatprep.mubr.msk.f32.mxu0 %vm3618_vm0, %v5679_v6  ;;  %v2578_v39 = vld [vmem:[%s5675_s0 + $0x360] sm:$0xff] }
 0x10f   :  { %v4566_v47 = vadd.f32 %v4378_v1, %v500_v37  ;;  %3478 = vmatprep.mubr.msk.f32.mxu1 %vm3618_vm0, %v5679_v6 }
 0x110   :  { %v4574_v50 = vadd.f32 %v4378_v1, %v1046_v43  ;;  %v316_v51 = vpop.f32.mrb[18].mxu0  ;;  %v2665_v43 = vld [vmem:[%s5675_s0 + $0x4b8] sm:$0xff] }
 0x111   :  { %v501_v52 = vmul.f32 %v4363_v61, %v316_v51  ;;  %v2997_v54 = vpop.f32.mrb[19].mxu0  ;;  %v869_v56 = vpop.f32.mrb[18].mxu1  ;;  %3328 = vmatmul.mubr.msk.f32.gmra.mrb[124].mxu0 %vm71_vm2, %v2575_v46 }
 0x112   :  { %v1047_v58 = vmul.f32 %v4363_v61, %v869_v56  ;;  %v3148_v59 = vpop.f32.mrb[19].mxu1  ;;  %3479 = vmatmul.mubr.msk.f32.gmra.mrb[124].mxu1 %vm71_vm2, %v2662_v48  ;;  %3330 = vmatprep.mubr.msk.f32.mxu0 %vm3618_vm0, %v5679_v6 }
 0x113   :  { %v4588_v63 = vadd.f32 %v4378_v1, %v501_v52  ;;  %3481 = vmatprep.mubr.msk.f32.mxu1 %vm3618_vm0, %v5679_v6  ;;  %v2579_v59 = vld [vmem:[%s5675_s0 + $0x368] sm:$0xff] }
 0x114   :  { %v4596_v3 = vadd.f32 %v4378_v1, %v1047_v58  ;;  %v321_v5 = vpop.f32.mrb[20].mxu0 }
 0x115   :  { %v502_v7 = vmul.f32 %v4363_v61, %v321_v5  ;;  %v3000_v8 = vpop.f32.mrb[21].mxu0  ;;  %v874_v10 = vpop.f32.mrb[20].mxu1  ;;  %3331 = vmatmul.mubr.msk.f32.gmra.mrb[126].mxu0 %vm71_vm2, %v2576_v62 }
 0x116   :  { %v1048_v14 = vmul.f32 %v4363_v61, %v874_v10  ;;  %v3151_v15 = vpop.f32.mrb[21].mxu1  ;;  %3482 = vmatmul.mubr.msk.f32.gmra.mrb[126].mxu1 %vm71_vm2, %v2663_v0  ;;  %3333 = vmatprep.mubr.msk.f32.mxu0 %vm3618_vm0, %v5679_v6  ;;  %v2666_v0 = vld [vmem:[%s5675_s0 + $0x4c0] sm:$0xff] }
 0x117   :  { %v4610_v21 = vadd.f32 %v4378_v1, %v502_v7  ;;  %3484 = vmatprep.mubr.msk.f32.mxu1 %vm3618_vm0, %v5679_v6 }
 0x118   :  { %v4618_v24 = vadd.f32 %v4378_v1, %v1048_v14  ;;  %v326_v25 = vpop.f32.mrb[22].mxu0 }
 0x119   :  { %v503_v28 = vmul.f32 %v4363_v61, %v326_v25  ;;  %v3003_v29 = vpop.f32.mrb[23].mxu0  ;;  %v879_v30 = vpop.f32.mrb[22].mxu1  ;;  %3334 = vmatmul.mubr.msk.f32.gmra.mrb[128].mxu0 %vm71_vm2, %v2577_v18  ;;  %v2580_v25 = vld [vmem:[%s5675_s0 + $0x370] sm:$0xff] }
 0x11a   :  { %v1049_v36 = vmul.f32 %v4363_v61, %v879_v30  ;;  %v3154_v37 = vpop.f32.mrb[23].mxu1  ;;  %3485 = vmatmul.mubr.msk.f32.gmra.mrb[128].mxu1 %vm71_vm2, %v2664_v23  ;;  %3336 = vmatprep.mubr.msk.f32.mxu0 %vm3618_vm0, %v5679_v6  ;;  %v2667_v29 = vld [vmem:[%s5675_s0 + $0x4c8] sm:$0xff] }
 0x11b   :  { %v4632_v40 = vadd.f32 %v4378_v1, %v503_v28  ;;  %3487 = vmatprep.mubr.msk.f32.mxu1 %vm3618_vm0, %v5679_v6 }
 0x11c   :  { %v4640_v45 = vadd.f32 %v4378_v1, %v1049_v36  ;;  %v331_v46 = vpop.f32.mrb[24].mxu0 }
 0x11d   :  { %v504_v48 = vmul.f32 %v4363_v61, %v331_v46  ;;  %v3006_v51 = vpop.f32.mrb[25].mxu0  ;;  %v884_v52 = vpop.f32.mrb[24].mxu1  ;;  %3337 = vmatmul.mubr.msk.f32.gmra.mrb[130].mxu0 %vm71_vm2, %v2578_v39 }
 0x11e   :  { %v1050_v56 = vmul.f32 %v4363_v61, %v884_v52  ;;  %v3157_v58 = vpop.f32.mrb[25].mxu1  ;;  %3488 = vmatmul.mubr.msk.f32.gmra.mrb[130].mxu1 %vm71_vm2, %v2665_v43  ;;  %3339 = vmatprep.mubr.msk.f32.mxu0 %vm3618_vm0, %v5679_v6  ;;  %v2581_v52 = vld [vmem:[%s5675_s0 + $0x378] sm:$0xff] }
 0x11f   :  { %v4654_v62 = vadd.f32 %v4378_v1, %v504_v48  ;;  %3490 = vmatprep.mubr.msk.f32.mxu1 %vm3618_vm0, %v5679_v6  ;;  %v2668_v58 = vld [vmem:[%s5675_s0 + $0x4d0] sm:$0xff] }
 0x120   :  { %v4662_v5 = vadd.f32 %v4378_v1, %v1050_v56  ;;  %v336_v7 = vpop.f32.mrb[26].mxu0 }
 0x121   :  { %v505_v8 = vmul.f32 %v4363_v61, %v336_v7  ;;  %v3009_v10 = vpop.f32.mrb[27].mxu0  ;;  %v889_v14 = vpop.f32.mrb[26].mxu1  ;;  %3340 = vmatmul.mubr.msk.f32.gmra.mrb[132].mxu0 %vm71_vm2, %v2579_v59 }
 0x122   :  { %v1051_v18 = vmul.f32 %v4363_v61, %v889_v14  ;;  %v3160_v23 = vpop.f32.mrb[27].mxu1  ;;  %3491 = vmatmul.mubr.msk.f32.gmra.mrb[132].mxu1 %vm71_vm2, %v2666_v0  ;;  %3342 = vmatprep.mubr.msk.f32.mxu0 %vm3618_vm0, %v5679_v6 }
 0x123   :  { %v4676_v28 = vadd.f32 %v4378_v1, %v505_v8  ;;  %3493 = vmatprep.mubr.msk.f32.mxu1 %vm3618_vm0, %v5679_v6 }
 0x124   :  { %v4684_v30 = vadd.f32 %v4378_v1, %v1051_v18  ;;  %v341_v36 = vpop.f32.mrb[28].mxu0 }
 0x125   :  { %v506_v37 = vmul.f32 %v4363_v61, %v341_v36  ;;  %v3012_v39 = vpop.f32.mrb[29].mxu0  ;;  %v894_v43 = vpop.f32.mrb[28].mxu1  ;;  %3343 = vmatmul.mubr.msk.f32.gmra.mrb[134].mxu0 %vm71_vm2, %v2580_v25  ;;  %v2582_v25 = vld [vmem:[%s5675_s0 + $0x380] sm:$0xff]  ;;  %v2669_v36 = vld [vmem:[%s5675_s0 + $0x4d8] sm:$0xff] }
 0x126   :  { %v1052_v48 = vmul.f32 %v4363_v61, %v894_v43  ;;  %v3163_v51 = vpop.f32.mrb[29].mxu1  ;;  %3494 = vmatmul.mubr.msk.f32.gmra.mrb[134].mxu1 %vm71_vm2, %v2667_v29  ;;  %3345 = vmatprep.mubr.msk.f32.mxu0 %vm3618_vm0, %v5679_v6 }
 0x127   :  { %v4698_v56 = vadd.f32 %v4378_v1, %v506_v37  ;;  %3496 = vmatprep.mubr.msk.f32.mxu1 %vm3618_vm0, %v5679_v6 }
 0x128   :  { %v4706_v59 = vadd.f32 %v4378_v1, %v1052_v48  ;;  %v346_v0 = vpop.f32.mrb[30].mxu0 }
 0x129   :  { %v507_v7 = vmul.f32 %v4363_v61, %v346_v0  ;;  %v3015_v8 = vpop.f32.mrb[31].mxu0  ;;  %v899_v10 = vpop.f32.mrb[30].mxu1  ;;  %3346 = vmatmul.mubr.msk.f32.gmra.mrb[136].mxu0 %vm71_vm2, %v2581_v52 }
 0x12a   :  { %v1053_v18 = vmul.f32 %v4363_v61, %v899_v10  ;;  %v3166_v23 = vpop.f32.mrb[31].mxu1  ;;  %3497 = vmatmul.mubr.msk.f32.gmra.mrb[136].mxu1 %vm71_vm2, %v2668_v58  ;;  %3348 = vmatprep.mubr.msk.f32.mxu0 %vm3618_vm0, %v5679_v6  ;;  %v2670_v10 = vld [vmem:[%s5675_s0 + $0x4e0] sm:$0xff] }
 0x12b   :  { %v4720_v29 = vadd.f32 %v4378_v1, %v507_v7  ;;  %3499 = vmatprep.mubr.msk.f32.mxu1 %vm3618_vm0, %v5679_v6  ;;  %v2583_v7 = vld [vmem:[%s5675_s0 + $0x388] sm:$0xff] }
 0x12c   :  { %v4728_v37 = vadd.f32 %v4378_v1, %v1053_v18  ;;  %v351_v39 = vpop.f32.mrb[32].mxu0 }
 0x12d   :  { %v508_v43 = vmul.f32 %v4363_v61, %v351_v39  ;;  %v3018_v48 = vpop.f32.mrb[33].mxu0  ;;  %v904_v51 = vpop.f32.mrb[32].mxu1  ;;  %3349 = vmatmul.mubr.msk.f32.gmra.mrb[138].mxu0 %vm71_vm2, %v2582_v25 }
 0x12e   :  { %v1054_v58 = vmul.f32 %v4363_v61, %v904_v51  ;;  %v3169_v0 = vpop.f32.mrb[33].mxu1  ;;  %3500 = vmatmul.mubr.msk.f32.gmra.mrb[138].mxu1 %vm71_vm2, %v2669_v36  ;;  %3351 = vmatprep.mubr.msk.f32.mxu0 %vm3618_vm0, %v5679_v6 }
 0x12f   :  { %v4742_v8 = vadd.f32 %v4378_v1, %v508_v43  ;;  %3502 = vmatprep.mubr.msk.f32.mxu1 %vm3618_vm0, %v5679_v6 }
 0x130   :  { %v4750_v18 = vadd.f32 %v4378_v1, %v1054_v58  ;;  %v356_v23 = vpop.f32.mrb[34].mxu0  ;;  %v2584_v58 = vld [vmem:[%s5675_s0 + $0x390] sm:$0xff] }
 0x131   :  { %v509_v25 = vmul.f32 %v4363_v61, %v356_v23  ;;  %v3021_v36 = vpop.f32.mrb[35].mxu0  ;;  %v909_v39 = vpop.f32.mrb[34].mxu1  ;;  %3352 = vmatmul.mubr.msk.f32.gmra.mrb[140].mxu0 %vm71_vm2, %v2583_v7  ;;  %v2671_v7 = vld [vmem:[%s5675_s0 + $0x4e8] sm:$0xff] }
 0x132   :  { %v1055_v48 = vmul.f32 %v4363_v61, %v909_v39  ;;  %v3172_v51 = vpop.f32.mrb[35].mxu1  ;;  %3503 = vmatmul.mubr.msk.f32.gmra.mrb[140].mxu1 %vm71_vm2, %v2670_v10  ;;  %3354 = vmatprep.mubr.msk.f32.mxu0 %vm3618_vm0, %v5679_v6 }
 0x133   :  { %v4764_v0 = vadd.f32 %v4378_v1, %v509_v25  ;;  %3505 = vmatprep.mubr.msk.f32.mxu1 %vm3618_vm0, %v5679_v6 }
 0x134   :  { %v4772_v23 = vadd.f32 %v4378_v1, %v1055_v48  ;;  %v361_v10 = vpop.f32.mrb[36].mxu0  ;;  %v2585_v48 = vld [vmem:[%s5675_s0 + $0x398] sm:$0xff] }
 0x135   :  { %v510_v36 = vmul.f32 %v4363_v61, %v361_v10  ;;  %v3024_v39 = vpop.f32.mrb[37].mxu0  ;;  %v914_v51 = vpop.f32.mrb[36].mxu1  ;;  %3355 = vmatmul.mubr.msk.f32.gmra.mrb[142].mxu0 %vm71_vm2, %v2584_v58  ;;  %v2672_v58 = vld [vmem:[%s5675_s0 + $0x4f0] sm:$0xff] }
 0x136   :  { %v1056_v43 = vmul.f32 %v4363_v61, %v914_v51  ;;  %v3175_v52 = vpop.f32.mrb[37].mxu1  ;;  %3506 = vmatmul.mubr.msk.f32.gmra.mrb[142].mxu1 %vm71_vm2, %v2671_v7  ;;  %3357 = vmatprep.mubr.msk.f32.mxu0 %vm3618_vm0, %v5679_v6 }
 0x137   :  { %v4786_v10 = vadd.f32 %v4378_v1, %v510_v36  ;;  %3508 = vmatprep.mubr.msk.f32.mxu1 %vm3618_vm0, %v5679_v6 }
 0x138   :  { %v4794_v52 = vadd.f32 %v4378_v1, %v1056_v43  ;;  %v366_v7 = vpop.f32.mrb[38].mxu0  ;;  %v2586_v43 = vld [vmem:[%s5675_s0 + $0x3a0] sm:$0xff] }
 0x139   :  { %v511_v39 = vmul.f32 %v4363_v61, %v366_v7  ;;  %v3027_v51 = vpop.f32.mrb[39].mxu0  ;;  %v919_v25 = vpop.f32.mrb[38].mxu1  ;;  %3358 = vmatmul.mubr.msk.f32.gmra.mrb[144].mxu0 %vm71_vm2, %v2585_v48 }
 0x13a   :  { %v1057_v14 = vmul.f32 %v4363_v61, %v919_v25  ;;  %v3178_v46 = vpop.f32.mrb[39].mxu1  ;;  %3509 = vmatmul.mubr.msk.f32.gmra.mrb[144].mxu1 %vm71_vm2, %v2672_v58  ;;  %3360 = vmatprep.mubr.msk.f32.mxu0 %vm3618_vm0, %v5679_v6  ;;  %v2673_v25 = vld [vmem:[%s5675_s0 + $0x4f8] sm:$0xff] }
 0x13b   :  { %v4808_v7 = vadd.f32 %v4378_v1, %v511_v39  ;;  %3511 = vmatprep.mubr.msk.f32.mxu1 %vm3618_vm0, %v5679_v6 }
 0x13c   :  { %v4816_v46 = vadd.f32 %v4378_v1, %v1057_v14  ;;  %v371_v48 = vpop.f32.mrb[40].mxu0  ;;  %v2587_v14 = vld [vmem:[%s5675_s0 + $0x3a8] sm:$0xff] }
 0x13d   :  { %v512_v58 = vmul.f32 %v4363_v61, %v371_v48  ;;  %v3030_v51 = vpop.f32.mrb[41].mxu0  ;;  %v924_v36 = vpop.f32.mrb[40].mxu1  ;;  %3361 = vmatmul.mubr.msk.f32.gmra.mrb[146].mxu0 %vm71_vm2, %v2586_v43 }
 0x13e   :  { %v1058_v15 = vmul.f32 %v4363_v61, %v924_v36  ;;  %v3181_v54 = vpop.f32.mrb[41].mxu1  ;;  %3512 = vmatmul.mubr.msk.f32.gmra.mrb[146].mxu1 %vm71_vm2, %v2673_v25  ;;  %3363 = vmatprep.mubr.msk.f32.mxu0 %vm3618_vm0, %v5679_v6  ;;  %v2674_v36 = vld [vmem:[%s5675_s0 + $0x500] sm:$0xff] }
 0x13f   :  { %v4830_v48 = vadd.f32 %v4378_v1, %v512_v58  ;;  %3514 = vmatprep.mubr.msk.f32.mxu1 %vm3618_vm0, %v5679_v6 }
 0x140   :  { %v4838_v54 = vadd.f32 %v4378_v1, %v1058_v15  ;;  %v376_v43 = vpop.f32.mrb[42].mxu0  ;;  %v2588_v15 = vld [vmem:[%s5675_s0 + $0x3b0] sm:$0xff] }
 0x141   :  { %v513_v25 = vmul.f32 %v4363_v61, %v376_v43  ;;  %v3033_v51 = vpop.f32.mrb[43].mxu0  ;;  %v929_v39 = vpop.f32.mrb[42].mxu1  ;;  %3364 = vmatmul.mubr.msk.f32.gmra.mrb[148].mxu0 %vm71_vm2, %v2587_v14 }
 0x142   :  { %v1059_v34 = vmul.f32 %v4363_v61, %v929_v39  ;;  %v3184_v13 = vpop.f32.mrb[43].mxu1  ;;  %3515 = vmatmul.mubr.msk.f32.gmra.mrb[148].mxu1 %vm71_vm2, %v2674_v36  ;;  %3366 = vmatprep.mubr.msk.f32.mxu0 %vm3618_vm0, %v5679_v6  ;;  %v2675_v39 = vld [vmem:[%s5675_s0 + $0x508] sm:$0xff] }
 0x143   :  { %v4852_v43 = vadd.f32 %v4378_v1, %v513_v25  ;;  %3517 = vmatprep.mubr.msk.f32.mxu1 %vm3618_vm0, %v5679_v6 }
 0x144   :  { %v4860_v13 = vadd.f32 %v4378_v1, %v1059_v34  ;;  %v381_v14 = vpop.f32.mrb[44].mxu0  ;;  %v2589_v34 = vld [vmem:[%s5675_s0 + $0x3b8] sm:$0xff] }
 0x145   :  { %v514_v36 = vmul.f32 %v4363_v61, %v381_v14  ;;  %v3036_v51 = vpop.f32.mrb[45].mxu0  ;;  %v934_v58 = vpop.f32.mrb[44].mxu1  ;;  %3367 = vmatmul.mubr.msk.f32.gmra.mrb[150].mxu0 %vm71_vm2, %v2588_v15 }
 0x146   :  { %v1060_v57 = vmul.f32 %v4363_v61, %v934_v58  ;;  %v3187_v41 = vpop.f32.mrb[45].mxu1  ;;  %3518 = vmatmul.mubr.msk.f32.gmra.mrb[150].mxu1 %vm71_vm2, %v2675_v39  ;;  %3369 = vmatprep.mubr.msk.f32.mxu0 %vm3618_vm0, %v5679_v6  ;;  %v2676_v58 = vld [vmem:[%s5675_s0 + $0x510] sm:$0xff] }
 0x147   :  { %v4874_v14 = vadd.f32 %v4378_v1, %v514_v36  ;;  %3520 = vmatprep.mubr.msk.f32.mxu1 %vm3618_vm0, %v5679_v6 }
 0x148   :  { %v4882_v41 = vadd.f32 %v4378_v1, %v1060_v57  ;;  %v386_v15 = vpop.f32.mrb[46].mxu0  ;;  %v2590_v57 = vld [vmem:[%s5675_s0 + $0x3c0] sm:$0xff] }
 0x149   :  { %v515_v39 = vmul.f32 %v4363_v61, %v386_v15  ;;  %v3039_v51 = vpop.f32.mrb[47].mxu0  ;;  %v939_v25 = vpop.f32.mrb[46].mxu1  ;;  %3370 = vmatmul.mubr.msk.f32.gmra.mrb[152].mxu0 %vm71_vm2, %v2589_v34 }
 0x14a   :  { %5721 = vst [vmem:[#allocation2_spill] sm:$0xff] %v4882_v41  ;;  %v1061_v26 = vmul.f32 %v4363_v61, %v939_v25  ;;  %v3190_v12 = vpop.f32.mrb[47].mxu1  ;;  %3521 = vmatmul.mubr.msk.f32.gmra.mrb[152].mxu1 %vm71_vm2, %v2676_v58  ;;  %3372 = vmatprep.mubr.msk.f32.mxu0 %vm3618_vm0, %v5679_v6  ;;  %v2677_v25 = vld [vmem:[%s5675_s0 + $0x518] sm:$0xff] }
 0x14b   :  { %v4896_v15 = vadd.f32 %v4378_v1, %v515_v39  ;;  %3523 = vmatprep.mubr.msk.f32.mxu1 %vm3618_vm0, %v5679_v6 }
 0x14c   :  { %v4904_v12 = vadd.f32 %v4378_v1, %v1061_v26  ;;  %v391_v34 = vpop.f32.mrb[48].mxu0  ;;  %v2591_v26 = vld [vmem:[%s5675_s0 + $0x3c8] sm:$0xff] }
 0x14d   :  { %5722 = vst [vmem:[#allocation3_spill] sm:$0xff] %v4896_v15  ;;  %v516_v58 = vmul.f32 %v4363_v61, %v391_v34  ;;  %v3042_v51 = vpop.f32.mrb[49].mxu0  ;;  %v944_v36 = vpop.f32.mrb[48].mxu1  ;;  %3373 = vmatmul.mubr.msk.f32.gmra.mrb[154].mxu0 %vm71_vm2, %v2590_v57 }
 0x14e   :  { %5723 = vst [vmem:[#allocation4_spill] sm:$0xff] %v4904_v12  ;;  %v1062_v60 = vmul.f32 %v4363_v61, %v944_v36  ;;  %v3193_v49 = vpop.f32.mrb[49].mxu1  ;;  %3524 = vmatmul.mubr.msk.f32.gmra.mrb[154].mxu1 %vm71_vm2, %v2677_v25  ;;  %3375 = vmatprep.mubr.msk.f32.mxu0 %vm3618_vm0, %v5679_v6  ;;  %v2678_v36 = vld [vmem:[%s5675_s0 + $0x520] sm:$0xff] }
 0x14f   :  { %v4918_v34 = vadd.f32 %v4378_v1, %v516_v58  ;;  %3526 = vmatprep.mubr.msk.f32.mxu1 %vm3618_vm0, %v5679_v6 }
 0x150   :  { %v4926_v49 = vadd.f32 %v4378_v1, %v1062_v60  ;;  %v396_v57 = vpop.f32.mrb[50].mxu0  ;;  %v2592_v60 = vld [vmem:[%s5675_s0 + $0x3d0] sm:$0xff] }
 0x151   :  { %5724 = vst [vmem:[#allocation5_spill] sm:$0xff] %v4918_v34  ;;  %v517_v25 = vmul.f32 %v4363_v61, %v396_v57  ;;  %v3045_v51 = vpop.f32.mrb[51].mxu0  ;;  %v949_v39 = vpop.f32.mrb[50].mxu1  ;;  %3376 = vmatmul.mubr.msk.f32.gmra.mrb[156].mxu0 %vm71_vm2, %v2591_v26 }
 0x152   :  { %5725 = vst [vmem:[#allocation6_spill] sm:$0xff] %v4926_v49  ;;  %v1063_v38 = vmul.f32 %v4363_v61, %v949_v39  ;;  %v3196_v27 = vpop.f32.mrb[51].mxu1  ;;  %3527 = vmatmul.mubr.msk.f32.gmra.mrb[156].mxu1 %vm71_vm2, %v2678_v36  ;;  %3378 = vmatprep.mubr.msk.f32.mxu0 %vm3618_vm0, %v5679_v6  ;;  %v2679_v39 = vld [vmem:[%s5675_s0 + $0x528] sm:$0xff]  ;;  %v5728_v49 = vmov 0.0  }
 0x153   :  { %v4940_v57 = vadd.f32 %v4378_v1, %v517_v25  ;;  %3529 = vmatprep.mubr.msk.f32.mxu1 %vm3618_vm0, %v5679_v6 }
 0x154   :  { %v4948_v27 = vadd.f32 %v4378_v1, %v1063_v38  ;;  %v401_v26 = vpop.f32.mrb[52].mxu0  ;;  %v2593_v38 = vld [vmem:[%s5675_s0 + $0x3d8] sm:$0xff] }
 0x155   :  { %5726 = vst [vmem:[#allocation7_spill] sm:$0xff] %v4940_v57  ;;  %v518_v36 = vmul.f32 %v4363_v61, %v401_v26  ;;  %v3048_v51 = vpop.f32.mrb[53].mxu0  ;;  %v954_v58 = vpop.f32.mrb[52].mxu1  ;;  %3379 = vmatmul.mubr.msk.f32.gmra.mrb[158].mxu0 %vm71_vm2, %v2592_v60 }
 0x156   :  { %5727 = vst [vmem:[#allocation8_spill] sm:$0xff] %v4948_v27  ;;  %v1064_v16 = vmul.f32 %v4363_v61, %v954_v58  ;;  %v3199_v6 = vpop.f32.mrb[53].mxu1  ;;  %3530 = vmatmul.mubr.msk.f32.gmra.mrb[158].mxu1 %vm71_vm2, %v2679_v39  ;;  %3381 = vmatprep.mubr.msk.f32.mxu0 %vm3618_vm0, %v5728_v49  ;;  %v2680_v58 = vld [vmem:[%s5675_s0 + $0x530] sm:$0xff] }
 0x157   :  { %v4962_v26 = vadd.f32 %v4378_v1, %v518_v36  ;;  %3532 = vmatprep.mubr.msk.f32.mxu1 %vm3618_vm0, %v5728_v49 }
 0x158   :  { %v4970_v6 = vadd.f32 %v4378_v1, %v1064_v16  ;;  %v406_v60 = vpop.f32.mrb[54].mxu0  ;;  %v2594_v16 = vld [vmem:[%s5675_s0 + $0x3e0] sm:$0xff] }
 0x159   :  { %5729 = vst [vmem:[#allocation9_spill] sm:$0xff] %v4962_v26  ;;  %v519_v39 = vmul.f32 %v4363_v61, %v406_v60  ;;  %v3051_v51 = vpop.f32.mrb[55].mxu0  ;;  %v959_v25 = vpop.f32.mrb[54].mxu1  ;;  %3382 = vmatmul.mubr.msk.f32.gmra.mrb[160].mxu0 %vm71_vm2, %v2593_v38 }
 0x15a   :  { %5730 = vst [vmem:[#allocation10_spill] sm:$0xff] %v4970_v6  ;;  %v1065_v27 = vmul.f32 %v4363_v61, %v959_v25  ;;  %v3202_v57 = vpop.f32.mrb[55].mxu1  ;;  %3533 = vmatmul.mubr.msk.f32.gmra.mrb[160].mxu1 %vm71_vm2, %v2680_v58  ;;  %3384 = vmatprep.mubr.msk.f32.mxu0 %vm3618_vm0, %v5728_v49  ;;  %v2681_v25 = vld [vmem:[%s5675_s0 + $0x538] sm:$0xff] }
 0x15b   :  { %v4984_v60 = vadd.f32 %v4378_v1, %v519_v39  ;;  %3535 = vmatprep.mubr.msk.f32.mxu1 %vm3618_vm0, %v5728_v49 }
 0x15c   :  { %v4992_v57 = vadd.f32 %v4378_v1, %v1065_v27  ;;  %v411_v38 = vpop.f32.mrb[56].mxu0  ;;  %v2595_v27 = vld [vmem:[%s5675_s0 + $0x3e8] sm:$0xff] }
 0x15d   :  { %5731 = vst [vmem:[#allocation11_spill] sm:$0xff] %v4984_v60  ;;  %v520_v58 = vmul.f32 %v4363_v61, %v411_v38  ;;  %v3054_v51 = vpop.f32.mrb[57].mxu0  ;;  %v964_v36 = vpop.f32.mrb[56].mxu1  ;;  %3385 = vmatmul.mubr.msk.f32.gmra.mrb[162].mxu0 %vm71_vm2, %v2594_v16 }
 0x15e   :  { %5732 = vst [vmem:[#allocation12_spill] sm:$0xff] %v4992_v57  ;;  %v1066_v6 = vmul.f32 %v4363_v61, %v964_v36  ;;  %v3205_v26 = vpop.f32.mrb[57].mxu1  ;;  %3536 = vmatmul.mubr.msk.f32.gmra.mrb[162].mxu1 %vm71_vm2, %v2681_v25  ;;  %3387 = vmatprep.mubr.msk.f32.mxu0 %vm3618_vm0, %v5728_v49  ;;  %v2682_v36 = vld [vmem:[%s5675_s0 + $0x540] sm:$0xff] }
 0x15f   :  { %v5006_v38 = vadd.f32 %v4378_v1, %v520_v58  ;;  %3538 = vmatprep.mubr.msk.f32.mxu1 %vm3618_vm0, %v5728_v49 }
 0x160   :  { %v5014_v26 = vadd.f32 %v4378_v1, %v1066_v6  ;;  %v416_v16 = vpop.f32.mrb[58].mxu0  ;;  %v2596_v6 = vld [vmem:[%s5675_s0 + $0x3f0] sm:$0xff] }
 0x161   :  { %5733 = vst [vmem:[#allocation13_spill] sm:$0xff] %v5006_v38  ;;  %v521_v25 = vmul.f32 %v4363_v61, %v416_v16  ;;  %v3057_v51 = vpop.f32.mrb[59].mxu0  ;;  %v969_v39 = vpop.f32.mrb[58].mxu1  ;;  %3388 = vmatmul.mubr.msk.f32.gmra.mrb[164].mxu0 %vm71_vm2, %v2595_v27 }
 0x162   :  { %5734 = vst [vmem:[#allocation14_spill] sm:$0xff] %v5014_v26  ;;  %v1067_v57 = vmul.f32 %v4363_v61, %v969_v39  ;;  %v3208_v60 = vpop.f32.mrb[59].mxu1  ;;  %3539 = vmatmul.mubr.msk.f32.gmra.mrb[164].mxu1 %vm71_vm2, %v2682_v36  ;;  %3390 = vmatprep.mubr.msk.f32.mxu0 %vm3618_vm0, %v5728_v49  ;;  %v2683_v39 = vld [vmem:[%s5675_s0 + $0x548] sm:$0xff] }
 0x163   :  { %v5028_v16 = vadd.f32 %v4378_v1, %v521_v25  ;;  %3541 = vmatprep.mubr.msk.f32.mxu1 %vm3618_vm0, %v5728_v49 }
 0x164   :  { %v5036_v60 = vadd.f32 %v4378_v1, %v1067_v57  ;;  %v421_v27 = vpop.f32.mrb[60].mxu0  ;;  %v2597_v57 = vld [vmem:[%s5675_s0 + $0x3f8] sm:$0xff] }
 0x165   :  { %5735 = vst [vmem:[#allocation15_spill] sm:$0xff] %v5028_v16  ;;  %v522_v36 = vmul.f32 %v4363_v61, %v421_v27  ;;  %v3060_v51 = vpop.f32.mrb[61].mxu0  ;;  %v974_v58 = vpop.f32.mrb[60].mxu1  ;;  %3391 = vmatmul.mubr.msk.f32.gmra.mrb[166].mxu0 %vm71_vm2, %v2596_v6 }
 0x166   :  { %5736 = vst [vmem:[#allocation16_spill] sm:$0xff] %v5036_v60  ;;  %v1068_v26 = vmul.f32 %v4363_v61, %v974_v58  ;;  %v3211_v38 = vpop.f32.mrb[61].mxu1  ;;  %3542 = vmatmul.mubr.msk.f32.gmra.mrb[166].mxu1 %vm71_vm2, %v2683_v39  ;;  %3393 = vmatprep.mubr.msk.f32.mxu0 %vm3618_vm0, %v5728_v49  ;;  %v2684_v58 = vld [vmem:[%s5675_s0 + $0x550] sm:$0xff] }
 0x167   :  { %v5050_v27 = vadd.f32 %v4378_v1, %v522_v36  ;;  %3544 = vmatprep.mubr.msk.f32.mxu1 %vm3618_vm0, %v5728_v49 }
 0x168   :  { %v5058_v38 = vadd.f32 %v4378_v1, %v1068_v26  ;;  %v426_v6 = vpop.f32.mrb[62].mxu0  ;;  %v2598_v26 = vld [vmem:[%s5675_s0 + $0x400] sm:$0x3] }
 0x169   :  { %5737 = vst [vmem:[#allocation17_spill] sm:$0xff] %v5050_v27  ;;  %v523_v39 = vmul.f32 %v4363_v61, %v426_v6  ;;  %v3063_v51 = vpop.f32.mrb[63].mxu0  ;;  %v979_v25 = vpop.f32.mrb[62].mxu1  ;;  %3394 = vmatmul.mubr.msk.f32.gmra.mrb[168].mxu0 %vm71_vm2, %v2597_v57 }
 0x16a   :  { %5738 = vst [vmem:[#allocation18_spill] sm:$0xff] %v5058_v38  ;;  %v1069_v60 = vmul.f32 %v4363_v61, %v979_v25  ;;  %v3214_v16 = vpop.f32.mrb[63].mxu1  ;;  %3545 = vmatmul.mubr.msk.f32.gmra.mrb[168].mxu1 %vm71_vm2, %v2684_v58  ;;  %3396 = vmatprep.mubr.msk.f32.mxu0 %vm3618_vm0, %v5728_v49  ;;  %v2685_v25 = vld [vmem:[%s5675_s0 + $0x558] sm:$0x3] }
 0x16b   :  { %v5072_v6 = vadd.f32 %v4378_v1, %v523_v39  ;;  %3547 = vmatprep.mubr.msk.f32.mxu1 %vm3618_vm0, %v5728_v49 }
 0x16c   :  { %v5080_v16 = vadd.f32 %v4378_v1, %v1069_v60  ;;  %v431_v57 = vpop.f32.mrb[64].mxu0 }
 0x16d   :  { %5739 = vst [vmem:[#allocation19_spill] sm:$0xff] %v5072_v6  ;;  %v524_v58 = vmul.f32 %v4363_v61, %v431_v57  ;;  %v3066_v51 = vpop.f32.mrb[65].mxu0  ;;  %v984_v36 = vpop.f32.mrb[64].mxu1  ;;  %3397 = vmatmul.mubr.msk.f32.gmra.mrb[170].mxu0 %vm71_vm2, %v2598_v26 }
 0x16e   :  { %5740 = vst [vmem:[#allocation20_spill] sm:$0xff] %v5080_v16  ;;  %v1070_v38 = vmul.f32 %v4363_v61, %v984_v36  ;;  %v3217_v49 = vpop.f32.mrb[65].mxu1  ;;  %3548 = vmatmul.mubr.msk.f32.gmra.mrb[170].mxu1 %vm71_vm2, %v2685_v25 }
 0x16f   :  { %v5089_v27 = vadd.f32 %v4378_v1, %v524_v58 }
 0x170   :  { %v5092_v60 = vadd.f32 %v4378_v1, %v1070_v38  ;;  %v436_v34 = vpop.f32.mrb[66].mxu0 }
 0x171   :  { %5741 = vst [vmem:[#allocation21_spill] sm:$0xff] %v5089_v27  ;;  %v525_v57 = vmul.f32 %v4363_v61, %v436_v34  ;;  %v3069_v51 = vpop.f32.mrb[67].mxu0  ;;  %v989_v12 = vpop.f32.mrb[66].mxu1 }
 0x172   :  { %5742 = vst [vmem:[#allocation22_spill] sm:$0xff] %v5092_v60  ;;  %v1071_v39 = vmul.f32 %v4363_v61, %v989_v12  ;;  %v3220_v36 = vpop.f32.mrb[67].mxu1 }
 0x173   :  { %v5099_v49 = vadd.f32 %v4378_v1, %v525_v57 }
 0x174   :  { %v5102_v25 = vadd.f32 %v4378_v1, %v1071_v39  ;;  %v441_v58 = vpop.f32.mrb[68].mxu0  ;;  %v5117_v39 = vld [vmem:[%s5676_s2] ss:$0 sm:$0xff] }
 0x175   :  { %5743 = vst [vmem:[#allocation23_spill] sm:$0xff] %v5099_v49  ;;  %v526_v38 = vmul.f32 %v4363_v61, %v441_v58  ;;  %v3072_v16 = vpop.f32.mrb[69].mxu0  ;;  %v994_v6 = vpop.f32.mrb[68].mxu1 }
 0x176   :  { %5744 = vst [vmem:[#allocation24_spill] sm:$0xff] %v5102_v25  ;;  %v1072_v51 = vmul.f32 %v4363_v61, %v994_v6  ;;  %v3223_v26 = vpop.f32.mrb[69].mxu1 }
 0x177   :  { %v5109_v12 = vadd.f32 %v4378_v1, %v526_v38 }
 0x178   :  { %v5112_v57 = vadd.f32 %v4378_v1, %v1072_v51  ;;  %v446_v36 = vpop.f32.mrb[70].mxu0  ;;  %v5126_v1 = vld [vmem:[%s5677_s3] ss:$0 sm:$0xff] }
 0x179   :  { %5745 = vst [vmem:[#allocation25_spill] sm:$0xff] %v5109_v12  ;;  %v527_v16 = vmul.f32 %v5117_v39, %v446_v36  ;;  %v3075_v58 = vpop.f32.mrb[71].mxu0  ;;  %v999_v60 = vpop.f32.mrb[70].mxu1 }
 0x17a   :  { %5746 = vst [vmem:[#allocation26_spill] sm:$0xff] %v5112_v57  ;;  %v1073_v6 = vmul.f32 %v5117_v39, %v999_v60  ;;  %v3226_v26 = vpop.f32.mrb[71].mxu1 }
 0x17b   :  { %v5129_v38 = vadd.f32 %v5126_v1, %v527_v16 }
 0x17c   :  { %v5132_v51 = vadd.f32 %v5126_v1, %v1073_v6  ;;  %v451_v36 = vpop.f32.mrb[72].mxu0 }
 0x17d   :  { %5747 = vst [vmem:[#allocation27_spill] sm:$0xff] %v5129_v38  ;;  %v528_v58 = vmul.f32 %v5117_v39, %v451_v36  ;;  %v3078_v34 = vpop.f32.mrb[73].mxu0  ;;  %v1004_v25 = vpop.f32.mrb[72].mxu1 }
 0x17e   :  { %5748 = vst [vmem:[#allocation28_spill] sm:$0xff] %v5132_v51  ;;  %v1074_v26 = vmul.f32 %v5117_v39, %v1004_v25  ;;  %v3229_v61 = vpop.f32.mrb[73].mxu1 }
 0x17f   :  { %v5139_v57 = vadd.f32 %v5126_v1, %v528_v58 }
 0x180   :  { %v5142_v16 = vadd.f32 %v5126_v1, %v1074_v26  ;;  %v456_v12 = vpop.f32.mrb[74].mxu0 }
 0x181   :  { %5749 = vst [vmem:[#allocation29_spill] sm:$0xff] %v5139_v57  ;;  %v529_v6 = vmul.f32 %v5117_v39, %v456_v12  ;;  %v3081_v49 = vpop.f32.mrb[75].mxu0  ;;  %v1009_v27 = vpop.f32.mrb[74].mxu1 }
 0x182   :  { %5750 = vst [vmem:[#allocation30_spill] sm:$0xff] %v5142_v16  ;;  %v1075_v36 = vmul.f32 %v5117_v39, %v1009_v27  ;;  %v3232_v60 = vpop.f32.mrb[75].mxu1 }
 0x183   :  { %v5149_v25 = vadd.f32 %v5126_v1, %v529_v6 }
 0x184   :  { %v5152_v61 = vadd.f32 %v5126_v1, %v1075_v36  ;;  %v461_v58 = vpop.f32.mrb[76].mxu0 }
 0x185   :  { %5751 = vst [vmem:[#allocation31_spill] sm:$0xff] %v5149_v25  ;;  %v530_v26 = vmul.f32 %v5117_v39, %v461_v58  ;;  %v3084_v51 = vpop.f32.mrb[77].mxu0  ;;  %v1014_v38 = vpop.f32.mrb[76].mxu1 }
 0x186   :  { %5752 = vst [vmem:[#allocation32_spill] sm:$0xff] %v5152_v61  ;;  %v1076_v12 = vmul.f32 %v5117_v39, %v1014_v38  ;;  %v3235_v34 = vpop.f32.mrb[77].mxu1 }
 0x187   :  { %v5159_v27 = vadd.f32 %v5126_v1, %v530_v26 }
 0x188   :  { %v5162_v60 = vadd.f32 %v5126_v1, %v1076_v12  ;;  %v466_v6 = vpop.f32.mrb[78].mxu0 }
 0x189   :  { %5753 = vst [vmem:[#allocation33_spill] sm:$0xff] %v5159_v27  ;;  %v531_v36 = vmul.f32 %v5117_v39, %v466_v6  ;;  %v3087_v16 = vpop.f32.mrb[79].mxu0  ;;  %v1019_v57 = vpop.f32.mrb[78].mxu1 }
 0x18a   :  { %5754 = vst [vmem:[#allocation34_spill] sm:$0xff] %v5162_v60  ;;  %v1077_v58 = vmul.f32 %v5117_v39, %v1019_v57  ;;  %v3238_v49 = vpop.f32.mrb[79].mxu1 }
 0x18b   :  { %v5169_v38 = vadd.f32 %v5126_v1, %v531_v36 }
 0x18c   :  { %v5172_v34 = vadd.f32 %v5126_v1, %v1077_v58  ;;  %v471_v26 = vpop.f32.mrb[80].mxu0 }
 0x18d   :  { %5755 = vst [vmem:[#allocation35_spill] sm:$0xff] %v5169_v38  ;;  %v532_v12 = vmul.f32 %v5117_v39, %v471_v26  ;;  %v3090_v61 = vpop.f32.mrb[81].mxu0  ;;  %v1024_v25 = vpop.f32.mrb[80].mxu1 }
 0x18e   :  { %5756 = vst [vmem:[#allocation36_spill] sm:$0xff] %v5172_v34  ;;  %v1078_v6 = vmul.f32 %v5117_v39, %v1024_v25  ;;  %v3241_v51 = vpop.f32.mrb[81].mxu1 }
 0x18f   :  { %v5179_v57 = vadd.f32 %v5126_v1, %v532_v12 }
 0x190   :  { %v5182_v49 = vadd.f32 %v5126_v1, %v1078_v6  ;;  %v476_v36 = vpop.f32.mrb[82].mxu0 }
 0x191   :  { %5757 = vst [vmem:[#allocation37_spill] sm:$0xff] %v5179_v57  ;;  %v533_v58 = vmul.f32 %v5117_v39, %v476_v36  ;;  %v3093_v60 = vpop.f32.mrb[83].mxu0  ;;  %v1029_v27 = vpop.f32.mrb[82].mxu1 }
 0x192   :  { %5758 = vst [vmem:[#allocation38_spill] sm:$0xff] %v5182_v49  ;;  %v1079_v26 = vmul.f32 %v5117_v39, %v1029_v27  ;;  %v3244_v16 = vpop.f32.mrb[83].mxu1 }
 0x193   :  { %v5189_v25 = vadd.f32 %v5126_v1, %v533_v58 }
 0x194   :  { %v5192_v51 = vadd.f32 %v5126_v1, %v1079_v26  ;;  %v481_v12 = vpop.f32.mrb[84].mxu0 }
 0x195   :  { %5759 = vst [vmem:[#allocation39_spill] sm:$0xff] %v5189_v25  ;;  %v534_v6 = vmul.f32 %v5117_v39, %v481_v12  ;;  %v3096_v34 = vpop.f32.mrb[85].mxu0  ;;  %v1034_v38 = vpop.f32.mrb[84].mxu1 }
 0x196   :  { %5760 = vst [vmem:[#allocation40_spill] sm:$0xff] %v5192_v51  ;;  %v1080_v36 = vmul.f32 %v5117_v39, %v1034_v38  ;;  %v3247_v61 = vpop.f32.mrb[85].mxu1 }
 0x197   :  { %v5199_v27 = vadd.f32 %v5126_v1, %v534_v6 }
 0x198   :  { %v5202_v16 = vadd.f32 %v5126_v1, %v1080_v36  ;;  %v1406_v58 = vpop.f32.mrb[86].mxu0  ;;  %v5762_v36 = vmax.f32 %v4390_v9, %v4398_v11 }
 0x199   :  { %v1620_v26 = vmul.f32 %v5117_v39, %v1406_v58  ;;  %v3272_v49 = vpop.f32.mrb[87].mxu0  ;;  %v1988_v57 = vpop.f32.mrb[86].mxu1 }
 0x19a   :  { %5761 = vst [vmem:[#allocation41_spill] sm:$0xff] %v5202_v16  ;;  %v2202_v12 = vmul.f32 %v5117_v39, %v1988_v57  ;;  %v3423_v60 = vpop.f32.mrb[87].mxu1  ;;  %v5763_v16 = vmax.f32 %v4412_v20, %v4420_v22  ;;  %v5764_v22 = vmax.f32 %v4434_v31, %v4442_v33  ;;  %v5765_v33 = vmax.f32 %v4456_v42, %v4464_v44 }
 0x19b   :  { %v1663_v38 = vadd.f32 %v5126_v1, %v1620_v26  ;;  %v5766_v44 = vmax.f32 %v4478_v53, %v4486_v55  ;;  %v5767_v55 = vmax.f32 %v4500_v2, %v4508_v4  ;;  %v5768_v4 = vmax.f32 %v4522_v17, %v4530_v19 }
 0x19c   :  { %v2245_v61 = vadd.f32 %v5126_v1, %v2202_v12  ;;  %v1411_v6 = vpop.f32.mrb[88].mxu0  ;;  %v5769_v19 = vmax.f32 %v4544_v32, %v4552_v35  ;;  %v5770_v35 = vmax.f32 %v4566_v47, %v4574_v50  ;;  %v5771_v50 = vmax.f32 %v4588_v63, %v4596_v3 }
 0x19d   :  { %v1706_v51 = vmax.f32 %v5762_v36, %v1663_v38  ;;  %v1621_v25 = vmul.f32 %v5117_v39, %v1411_v6  ;;  %v3275_v58 = vpop.f32.mrb[89].mxu0  ;;  %v1993_v49 = vpop.f32.mrb[88].mxu1  ;;  %v5772_v3 = vmax.f32 %v4610_v21, %v4618_v24  ;;  %v5773_v24 = vmax.f32 %v4632_v40, %v4640_v45 }
 0x19e   :  { %v2203_v15 = vmul.f32 %v5117_v39, %v1993_v49  ;;  %v3426_v41 = vpop.f32.mrb[89].mxu1  ;;  %v5774_v45 = vmax.f32 %v4654_v62, %v4662_v5  ;;  %v5775_v5 = vmax.f32 %v4676_v28, %v4684_v30  ;;  %v5776_v30 = vmax.f32 %v4698_v56, %v4706_v59 }
 0x19f   :  { %v2288_v34 = vmax.f32 %v1706_v51, %v2245_v61  ;;  %v1664_v57 = vadd.f32 %v5126_v1, %v1621_v25  ;;  %v5777_v59 = vmax.f32 %v4720_v29, %v4728_v37  ;;  %v5778_v37 = vmax.f32 %v4742_v8, %v4750_v18 }
 0x1a0   :  { %v2246_v60 = vadd.f32 %v5126_v1, %v2203_v15  ;;  %v1416_v26 = vpop.f32.mrb[90].mxu0  ;;  %v5779_v18 = vmax.f32 %v4764_v0, %v4772_v23  ;;  %v5780_v23 = vmax.f32 %v4786_v10, %v4794_v52  ;;  %v5781_v52 = vmax.f32 %v4808_v7, %v4816_v46 }
 0x1a1   :  { %v2331_v12 = vmax.f32 %v2288_v34, 0.0  ;;  %v1707_v9 = vmax.f32 %v5763_v16, %v1664_v57  ;;  %v1622_v11 = vmul.f32 %v5117_v39, %v1416_v26  ;;  %v3278_v38 = vpop.f32.mrb[91].mxu0  ;;  %v1998_v6 = vpop.f32.mrb[90].mxu1  ;;  %v5782_v46 = vmax.f32 %v4830_v48, %v4838_v54 }
 0x1a2   :  { %v2204_v36 = vmul.f32 %v5117_v39, %v1998_v6  ;;  %v3429_v58 = vpop.f32.mrb[91].mxu1  ;;  %v5783_v54 = vmax.f32 %v4852_v43, %v4860_v13  ;;  %v5784_v13 = vld [vmem:[#allocation2_spill] sm:$0xff] }
 0x1a3   :  { %2375 = vst.msk [vmem:[%s5678_s4] sm:$0xff] %vm2374_vm3, %v2331_v12  ;;  %v2289_v41 = vmax.f32 %v1707_v9, %v2246_v60  ;;  %v1665_v15 = vadd.f32 %v5126_v1, %v1622_v11 }
 0x1a4   :  { %v2247_v25 = vadd.f32 %v5126_v1, %v2204_v36  ;;  %v1421_v51 = vpop.f32.mrb[92].mxu0 }
 0x1a5   :  { %v2332_v20 = vmax.f32 %v2289_v41, 0.0  ;;  %v1708_v16 = vmax.f32 %v5764_v22, %v1665_v15  ;;  %v1623_v34 = vmul.f32 %v5117_v39, %v1421_v51  ;;  %v3281_v61 = vpop.f32.mrb[93].mxu0  ;;  %v2003_v49 = vpop.f32.mrb[92].mxu1 }
 0x1a6   :  { %v2205_v57 = vmul.f32 %v5117_v39, %v2003_v49  ;;  %v3432_v26 = vpop.f32.mrb[93].mxu1 }
 0x1a7   :  { %2376 = vst.msk [vmem:[%s5678_s4 + $0x8] sm:$0xff] %vm2374_vm3, %v2332_v20  ;;  %v2290_v60 = vmax.f32 %v1708_v16, %v2247_v25  ;;  %v1666_v12 = vadd.f32 %v5126_v1, %v1623_v34 }
 0x1a8   :  { %v2248_v9 = vadd.f32 %v5126_v1, %v2205_v57  ;;  %v1426_v11 = vpop.f32.mrb[94].mxu0 }
 0x1a9   :  { %v2333_v31 = vmax.f32 %v2290_v60, 0.0  ;;  %v1709_v38 = vmax.f32 %v5765_v33, %v1666_v12  ;;  %v1624_v6 = vmul.f32 %v5117_v39, %v1426_v11  ;;  %v3284_v36 = vpop.f32.mrb[95].mxu0  ;;  %v2008_v58 = vpop.f32.mrb[94].mxu1 }
 0x1aa   :  { %v2206_v41 = vmul.f32 %v5117_v39, %v2008_v58  ;;  %v3435_v15 = vpop.f32.mrb[95].mxu1 }
 0x1ab   :  { %2377 = vst.msk [vmem:[%s5678_s4 + $0x10] sm:$0xff] %vm2374_vm3, %v2333_v31  ;;  %v2291_v25 = vmax.f32 %v1709_v38, %v2248_v9  ;;  %v1667_v51 = vadd.f32 %v5126_v1, %v1624_v6 }
 0x1ac   :  { %v2249_v20 = vadd.f32 %v5126_v1, %v2206_v41  ;;  %v1431_v22 = vpop.f32.mrb[96].mxu0 }
 0x1ad   :  { %v2334_v42 = vmax.f32 %v2291_v25, 0.0  ;;  %v1710_v16 = vmax.f32 %v5766_v44, %v1667_v51  ;;  %v1625_v34 = vmul.f32 %v5117_v39, %v1431_v22  ;;  %v3287_v61 = vpop.f32.mrb[97].mxu0  ;;  %v2013_v49 = vpop.f32.mrb[96].mxu1 }
 0x1ae   :  { %v2207_v57 = vmul.f32 %v5117_v39, %v2013_v49  ;;  %v3438_v26 = vpop.f32.mrb[97].mxu1 }
 0x1af   :  { %2378 = vst.msk [vmem:[%s5678_s4 + $0x18] sm:$0xff] %vm2374_vm3, %v2334_v42  ;;  %v2292_v60 = vmax.f32 %v1710_v16, %v2249_v20  ;;  %v1668_v12 = vadd.f32 %v5126_v1, %v1625_v34 }
 0x1b0   :  { %v2250_v9 = vadd.f32 %v5126_v1, %v2207_v57  ;;  %v1436_v11 = vpop.f32.mrb[98].mxu0 }
 0x1b1   :  { %v2335_v53 = vmax.f32 %v2292_v60, 0.0  ;;  %v1711_v31 = vmax.f32 %v5767_v55, %v1668_v12  ;;  %v1626_v33 = vmul.f32 %v5117_v39, %v1436_v11  ;;  %v3290_v38 = vpop.f32.mrb[99].mxu0  ;;  %v2018_v6 = vpop.f32.mrb[98].mxu1 }
 0x1b2   :  { %v2208_v36 = vmul.f32 %v5117_v39, %v2018_v6  ;;  %v3441_v58 = vpop.f32.mrb[99].mxu1 }
 0x1b3   :  { %2379 = vst.msk [vmem:[%s5678_s4 + $0x20] sm:$0xff] %vm2374_vm3, %v2335_v53  ;;  %v2293_v41 = vmax.f32 %v1711_v31, %v2250_v9  ;;  %v1669_v15 = vadd.f32 %v5126_v1, %v1626_v33 }
 0x1b4   :  { %v2251_v25 = vadd.f32 %v5126_v1, %v2208_v36  ;;  %v1441_v51 = vpop.f32.mrb[100].mxu0 }
 0x1b5   :  { %v2336_v2 = vmax.f32 %v2293_v41, 0.0  ;;  %v1712_v20 = vmax.f32 %v5768_v4, %v1669_v15  ;;  %v1627_v22 = vmul.f32 %v5117_v39, %v1441_v51  ;;  %v3293_v42 = vpop.f32.mrb[101].mxu0  ;;  %v2023_v44 = vpop.f32.mrb[100].mxu1 }
 0x1b6   :  { %v2209_v16 = vmul.f32 %v5117_v39, %v2023_v44  ;;  %v3444_v34 = vpop.f32.mrb[101].mxu1 }
 0x1b7   :  { %2380 = vst.msk [vmem:[%s5678_s4 + $0x28] sm:$0xff] %vm2374_vm3, %v2336_v2  ;;  %v2294_v61 = vmax.f32 %v1712_v20, %v2251_v25  ;;  %v1670_v49 = vadd.f32 %v5126_v1, %v1627_v22 }
 0x1b8   :  { %v2252_v57 = vadd.f32 %v5126_v1, %v2209_v16  ;;  %v1446_v26 = vpop.f32.mrb[102].mxu0 }
 0x1b9   :  { %v2337_v17 = vmax.f32 %v2294_v61, 0.0  ;;  %v1713_v60 = vmax.f32 %v5769_v19, %v1670_v49  ;;  %v1628_v12 = vmul.f32 %v5117_v39, %v1446_v26  ;;  %v3296_v9 = vpop.f32.mrb[103].mxu0  ;;  %v2028_v11 = vpop.f32.mrb[102].mxu1 }
 0x1ba   :  { %v2210_v53 = vmul.f32 %v5117_v39, %v2028_v11  ;;  %v3447_v55 = vpop.f32.mrb[103].mxu1 }
 0x1bb   :  { %2381 = vst.msk [vmem:[%s5678_s4 + $0x30] sm:$0xff] %vm2374_vm3, %v2337_v17  ;;  %v2295_v31 = vmax.f32 %v1713_v60, %v2252_v57  ;;  %v1671_v33 = vadd.f32 %v5126_v1, %v1628_v12 }
 0x1bc   :  { %v2253_v38 = vadd.f32 %v5126_v1, %v2210_v53  ;;  %v1451_v6 = vpop.f32.mrb[104].mxu0 }
 0x1bd   :  { %v2338_v32 = vmax.f32 %v2295_v31, 0.0  ;;  %v1714_v36 = vmax.f32 %v5770_v35, %v1671_v33  ;;  %v1629_v58 = vmul.f32 %v5117_v39, %v1451_v6  ;;  %v3299_v41 = vpop.f32.mrb[105].mxu0  ;;  %v2033_v15 = vpop.f32.mrb[104].mxu1 }
 0x1be   :  { %v2211_v25 = vmul.f32 %v5117_v39, %v2033_v15  ;;  %v3450_v51 = vpop.f32.mrb[105].mxu1 }
 0x1bf   :  { %2382 = vst.msk [vmem:[%s5678_s4 + $0x38] sm:$0xff] %vm2374_vm3, %v2338_v32  ;;  %v2296_v2 = vmax.f32 %v1714_v36, %v2253_v38  ;;  %v1672_v4 = vadd.f32 %v5126_v1, %v1629_v58 }
 0x1c0   :  { %v2254_v20 = vadd.f32 %v5126_v1, %v2211_v25  ;;  %v1456_v22 = vpop.f32.mrb[106].mxu0 }
 0x1c1   :  { %v2339_v47 = vmax.f32 %v2296_v2, 0.0  ;;  %v1715_v42 = vmax.f32 %v5771_v50, %v1672_v4  ;;  %v1630_v44 = vmul.f32 %v5117_v39, %v1456_v22  ;;  %v3302_v16 = vpop.f32.mrb[107].mxu0  ;;  %v2038_v34 = vpop.f32.mrb[106].mxu1 }
 0x1c2   :  { %v2212_v61 = vmul.f32 %v5117_v39, %v2038_v34  ;;  %v3453_v49 = vpop.f32.mrb[107].mxu1 }
 0x1c3   :  { %2383 = vst.msk [vmem:[%s5678_s4 + $0x40] sm:$0xff] %vm2374_vm3, %v2339_v47  ;;  %v2297_v57 = vmax.f32 %v1715_v42, %v2254_v20  ;;  %v1673_v26 = vadd.f32 %v5126_v1, %v1630_v44 }
 0x1c4   :  { %v2255_v17 = vadd.f32 %v5126_v1, %v2212_v61  ;;  %v1461_v19 = vpop.f32.mrb[108].mxu0 }
 0x1c5   :  { %v2340_v63 = vmax.f32 %v2297_v57, 0.0  ;;  %v1716_v60 = vmax.f32 %v5772_v3, %v1673_v26  ;;  %v1631_v12 = vmul.f32 %v5117_v39, %v1461_v19  ;;  %v3305_v9 = vpop.f32.mrb[109].mxu0  ;;  %v2043_v11 = vpop.f32.mrb[108].mxu1 }
 0x1c6   :  { %v2213_v53 = vmul.f32 %v5117_v39, %v2043_v11  ;;  %v3456_v55 = vpop.f32.mrb[109].mxu1 }
 0x1c7   :  { %2384 = vst.msk [vmem:[%s5678_s4 + $0x48] sm:$0xff] %vm2374_vm3, %v2340_v63  ;;  %v2298_v31 = vmax.f32 %v1716_v60, %v2255_v17  ;;  %v1674_v33 = vadd.f32 %v5126_v1, %v1631_v12 }
 0x1c8   :  { %v2256_v38 = vadd.f32 %v5126_v1, %v2213_v53  ;;  %v1466_v6 = vpop.f32.mrb[110].mxu0 }
 0x1c9   :  { %v2341_v21 = vmax.f32 %v2298_v31, 0.0  ;;  %v1717_v32 = vmax.f32 %v5773_v24, %v1674_v33  ;;  %v1632_v35 = vmul.f32 %v5117_v39, %v1466_v6  ;;  %v3308_v36 = vpop.f32.mrb[111].mxu0  ;;  %v2048_v58 = vpop.f32.mrb[110].mxu1 }
 0x1ca   :  { %v2214_v41 = vmul.f32 %v5117_v39, %v2048_v58  ;;  %v3459_v15 = vpop.f32.mrb[111].mxu1 }
 0x1cb   :  { %2385 = vst.msk [vmem:[%s5678_s4 + $0x50] sm:$0xff] %vm2374_vm3, %v2341_v21  ;;  %v2299_v25 = vmax.f32 %v1717_v32, %v2256_v38  ;;  %v1675_v51 = vadd.f32 %v5126_v1, %v1632_v35 }
 0x1cc   :  { %v2257_v2 = vadd.f32 %v5126_v1, %v2214_v41  ;;  %v1471_v4 = vpop.f32.mrb[112].mxu0 }
 0x1cd   :  { %v2342_v40 = vmax.f32 %v2299_v25, 0.0  ;;  %v1718_v20 = vmax.f32 %v5774_v45, %v1675_v51  ;;  %v1633_v22 = vmul.f32 %v5117_v39, %v1471_v4  ;;  %v3311_v47 = vpop.f32.mrb[113].mxu0  ;;  %v2053_v50 = vpop.f32.mrb[112].mxu1 }
 0x1ce   :  { %v2215_v42 = vmul.f32 %v5117_v39, %v2053_v50  ;;  %v3462_v44 = vpop.f32.mrb[113].mxu1 }
 0x1cf   :  { %2386 = vst.msk [vmem:[%s5678_s4 + $0x58] sm:$0xff] %vm2374_vm3, %v2342_v40  ;;  %v2300_v16 = vmax.f32 %v1718_v20, %v2257_v2  ;;  %v1676_v34 = vadd.f32 %v5126_v1, %v1633_v22 }
 0x1d0   :  { %v2258_v61 = vadd.f32 %v5126_v1, %v2215_v42  ;;  %v1476_v49 = vpop.f32.mrb[114].mxu0 }
 0x1d1   :  { %v2343_v62 = vmax.f32 %v2300_v16, 0.0  ;;  %v1719_v57 = vmax.f32 %v5775_v5, %v1676_v34  ;;  %v1634_v26 = vmul.f32 %v5117_v39, %v1476_v49  ;;  %v3314_v17 = vpop.f32.mrb[115].mxu0  ;;  %v2058_v19 = vpop.f32.mrb[114].mxu1 }
 0x1d2   :  { %v2216_v63 = vmul.f32 %v5117_v39, %v2058_v19  ;;  %v3465_v3 = vpop.f32.mrb[115].mxu1 }
 0x1d3   :  { %2387 = vst.msk [vmem:[%s5678_s4 + $0x60] sm:$0xff] %vm2374_vm3, %v2343_v62  ;;  %v2301_v60 = vmax.f32 %v1719_v57, %v2258_v61  ;;  %v1677_v12 = vadd.f32 %v5126_v1, %v1634_v26 }
 0x1d4   :  { %v2259_v9 = vadd.f32 %v5126_v1, %v2216_v63  ;;  %v1481_v11 = vpop.f32.mrb[116].mxu0 }
 0x1d5   :  { %v2344_v28 = vmax.f32 %v2301_v60, 0.0  ;;  %v1720_v53 = vmax.f32 %v5776_v30, %v1677_v12  ;;  %v1635_v55 = vmul.f32 %v5117_v39, %v1481_v11  ;;  %v3317_v31 = vpop.f32.mrb[117].mxu0  ;;  %v2063_v33 = vpop.f32.mrb[116].mxu1 }
 0x1d6   :  { %v2217_v38 = vmul.f32 %v5117_v39, %v2063_v33  ;;  %v3468_v6 = vpop.f32.mrb[117].mxu1 }
 0x1d7   :  { %2388 = vst.msk [vmem:[%s5678_s4 + $0x68] sm:$0xff] %vm2374_vm3, %v2344_v28  ;;  %v2302_v21 = vmax.f32 %v1720_v53, %v2259_v9  ;;  %v1678_v24 = vadd.f32 %v5126_v1, %v1635_v55 }
 0x1d8   :  { %v2260_v32 = vadd.f32 %v5126_v1, %v2217_v38  ;;  %v1486_v35 = vpop.f32.mrb[118].mxu0 }
 0x1d9   :  { %v2345_v56 = vmax.f32 %v2302_v21, 0.0  ;;  %v1721_v36 = vmax.f32 %v5777_v59, %v1678_v24  ;;  %v1636_v58 = vmul.f32 %v5117_v39, %v1486_v35  ;;  %v3320_v41 = vpop.f32.mrb[119].mxu0  ;;  %v2068_v15 = vpop.f32.mrb[118].mxu1 }
 0x1da   :  { %v2218_v25 = vmul.f32 %v5117_v39, %v2068_v15  ;;  %v3471_v51 = vpop.f32.mrb[119].mxu1 }
 0x1db   :  { %2389 = vst.msk [vmem:[%s5678_s4 + $0x70] sm:$0xff] %vm2374_vm3, %v2345_v56  ;;  %v2303_v2 = vmax.f32 %v1721_v36, %v2260_v32  ;;  %v1679_v4 = vadd.f32 %v5126_v1, %v1636_v58 }
 0x1dc   :  { %v2261_v40 = vadd.f32 %v5126_v1, %v2218_v25  ;;  %v1491_v45 = vpop.f32.mrb[120].mxu0 }
 0x1dd   :  { %v2346_v29 = vmax.f32 %v2303_v2, 0.0  ;;  %v1722_v20 = vmax.f32 %v5778_v37, %v1679_v4  ;;  %v1637_v22 = vmul.f32 %v5117_v39, %v1491_v45  ;;  %v3323_v47 = vpop.f32.mrb[121].mxu0  ;;  %v2073_v50 = vpop.f32.mrb[120].mxu1 }
 0x1de   :  { %v2219_v42 = vmul.f32 %v5117_v39, %v2073_v50  ;;  %v3474_v44 = vpop.f32.mrb[121].mxu1 }
 0x1df   :  { %2390 = vst.msk [vmem:[%s5678_s4 + $0x78] sm:$0xff] %vm2374_vm3, %v2346_v29  ;;  %v2304_v16 = vmax.f32 %v1722_v20, %v2261_v40  ;;  %v1680_v34 = vadd.f32 %v5126_v1, %v1637_v22 }
 0x1e0   :  { %v2262_v61 = vadd.f32 %v5126_v1, %v2219_v42  ;;  %v1496_v49 = vpop.f32.mrb[122].mxu0 }
 0x1e1   :  { %v2347_v8 = vmax.f32 %v2304_v16, 0.0  ;;  %v1723_v62 = vmax.f32 %v5779_v18, %v1680_v34  ;;  %v1638_v5 = vmul.f32 %v5117_v39, %v1496_v49  ;;  %v3326_v57 = vpop.f32.mrb[123].mxu0  ;;  %v2078_v26 = vpop.f32.mrb[122].mxu1 }
 0x1e2   :  { %v2220_v17 = vmul.f32 %v5117_v39, %v2078_v26  ;;  %v3477_v19 = vpop.f32.mrb[123].mxu1 }
 0x1e3   :  { %2391 = vst.msk [vmem:[%s5678_s4 + $0x80] sm:$0xff] %vm2374_vm3, %v2347_v8  ;;  %v2305_v63 = vmax.f32 %v1723_v62, %v2262_v61  ;;  %v1681_v3 = vadd.f32 %v5126_v1, %v1638_v5  ;;  %v5785_v62 = vmax.f32 %v4874_v14, %v5784_v13 }
 0x1e4   :  { %v2263_v60 = vadd.f32 %v5126_v1, %v2220_v17  ;;  %v1501_v12 = vpop.f32.mrb[124].mxu0 }
 0x1e5   :  { %v2348_v0 = vmax.f32 %v2305_v63, 0.0  ;;  %v1724_v9 = vmax.f32 %v5780_v23, %v1681_v3  ;;  %v1639_v11 = vmul.f32 %v5117_v39, %v1501_v12  ;;  %v3329_v28 = vpop.f32.mrb[125].mxu0  ;;  %v2083_v30 = vpop.f32.mrb[124].mxu1  ;;  %v5786_v23 = vld [vmem:[#allocation3_spill] sm:$0xff] }
 0x1e6   :  { %v2221_v53 = vmul.f32 %v5117_v39, %v2083_v30  ;;  %v3480_v55 = vpop.f32.mrb[125].mxu1 }
 0x1e7   :  { %2392 = vst.msk [vmem:[%s5678_s4 + $0x88] sm:$0xff] %vm2374_vm3, %v2348_v0  ;;  %v2306_v31 = vmax.f32 %v1724_v9, %v2263_v60  ;;  %v1682_v33 = vadd.f32 %v5126_v1, %v1639_v11  ;;  %v5787_v9 = vld [vmem:[#allocation4_spill] sm:$0xff] }
 0x1e8   :  { %v2264_v38 = vadd.f32 %v5126_v1, %v2221_v53  ;;  %v1506_v6 = vpop.f32.mrb[126].mxu0  ;;  %v5788_v11 = vmax.f32 %v5786_v23, %v5787_v9 }
 0x1e9   :  { %v2349_v10 = vmax.f32 %v2306_v31, 0.0  ;;  %v1725_v21 = vmax.f32 %v5781_v52, %v1682_v33  ;;  %v1640_v24 = vmul.f32 %v5117_v39, %v1506_v6  ;;  %v3332_v32 = vpop.f32.mrb[127].mxu0  ;;  %v2088_v35 = vpop.f32.mrb[126].mxu1 }
 0x1ea   :  { %v2222_v56 = vmul.f32 %v5117_v39, %v2088_v35  ;;  %v3483_v59 = vpop.f32.mrb[127].mxu1  ;;  %v5790_v32 = vld [vmem:[#allocation6_spill] sm:$0xff] }
 0x1eb   :  { %2393 = vst.msk [vmem:[%s5678_s4 + $0x90] sm:$0xff] %vm2374_vm3, %v2349_v10  ;;  %v2307_v36 = vmax.f32 %v1725_v21, %v2264_v38  ;;  %v1683_v58 = vadd.f32 %v5126_v1, %v1640_v24  ;;  %v5789_v24 = vld [vmem:[#allocation5_spill] sm:$0xff] }
 0x1ec   :  { %v2265_v41 = vadd.f32 %v5126_v1, %v2222_v56  ;;  %v1511_v15 = vpop.f32.mrb[128].mxu0  ;;  %v5791_v35 = vmax.f32 %v5789_v24, %v5790_v32 }
 0x1ed   :  { %v2350_v7 = vmax.f32 %v2307_v36, 0.0  ;;  %v1726_v25 = vmax.f32 %v5782_v46, %v1683_v58  ;;  %v1641_v51 = vmul.f32 %v5117_v39, %v1511_v15  ;;  %v3335_v2 = vpop.f32.mrb[129].mxu0  ;;  %v2093_v4 = vpop.f32.mrb[128].mxu1 }
 0x1ee   :  { %v2223_v40 = vmul.f32 %v5117_v39, %v2093_v4  ;;  %v3486_v45 = vpop.f32.mrb[129].mxu1  ;;  %v5792_v4 = vld [vmem:[#allocation7_spill] sm:$0xff] }
 0x1ef   :  { %2394 = vst.msk [vmem:[%s5678_s4 + $0x98] sm:$0xff] %vm2374_vm3, %v2350_v7  ;;  %v2308_v29 = vmax.f32 %v1726_v25, %v2265_v41  ;;  %v1684_v37 = vadd.f32 %v5126_v1, %v1641_v51 }
 0x1f0   :  { %v2266_v20 = vadd.f32 %v5126_v1, %v2223_v40  ;;  %v1516_v22 = vpop.f32.mrb[130].mxu0  ;;  %v5793_v40 = vld [vmem:[#allocation8_spill] sm:$0xff] }
 0x1f1   :  { %v2351_v48 = vmax.f32 %v2308_v29, 0.0  ;;  %v1727_v47 = vmax.f32 %v5783_v54, %v1684_v37  ;;  %v1642_v50 = vmul.f32 %v5117_v39, %v1516_v22  ;;  %v3338_v42 = vpop.f32.mrb[131].mxu0  ;;  %v2098_v44 = vpop.f32.mrb[130].mxu1  ;;  %v5794_v45 = vmax.f32 %v5792_v4, %v5793_v40 }
 0x1f2   :  { %v2224_v16 = vmul.f32 %v5117_v39, %v2098_v44  ;;  %v3489_v34 = vpop.f32.mrb[131].mxu1 }
 0x1f3   :  { %2395 = vst.msk [vmem:[%s5678_s4 + $0xa0] sm:$0xff] %vm2374_vm3, %v2351_v48  ;;  %v2309_v61 = vmax.f32 %v1727_v47, %v2266_v20  ;;  %v1685_v49 = vadd.f32 %v5126_v1, %v1642_v50  ;;  %v5795_v34 = vld [vmem:[#allocation9_spill] sm:$0xff] }
 0x1f4   :  { %v2267_v8 = vadd.f32 %v5126_v1, %v2224_v16  ;;  %v1521_v18 = vpop.f32.mrb[132].mxu0 }
 0x1f5   :  { %v2352_v43 = vmax.f32 %v2309_v61, 0.0  ;;  %v1728_v5 = vmax.f32 %v5785_v62, %v1685_v49  ;;  %v1643_v57 = vmul.f32 %v5117_v39, %v1521_v18  ;;  %v3341_v26 = vpop.f32.mrb[133].mxu0  ;;  %v2103_v17 = vpop.f32.mrb[132].mxu1  ;;  %v5796_v61 = vld [vmem:[#allocation10_spill] sm:$0xff] }
 0x1f6   :  { %v2225_v19 = vmul.f32 %v5117_v39, %v2103_v17  ;;  %v3492_v63 = vpop.f32.mrb[133].mxu1  ;;  %v5797_v49 = vmax.f32 %v5795_v34, %v5796_v61 }
 0x1f7   :  { %2396 = vst.msk [vmem:[%s5678_s4 + $0xa8] sm:$0xff] %vm2374_vm3, %v2352_v43  ;;  %v2310_v3 = vmax.f32 %v1728_v5, %v2267_v8  ;;  %v1686_v60 = vadd.f32 %v5126_v1, %v1643_v57 }
 0x1f8   :  { %v2268_v12 = vadd.f32 %v5126_v1, %v2225_v19  ;;  %v1526_v0 = vpop.f32.mrb[134].mxu0 }
 0x1f9   :  { %v2353_v14 = vmax.f32 %v2310_v3, 0.0  ;;  %v1729_v28 = vmax.f32 %v5788_v11, %v1686_v60  ;;  %v1644_v30 = vmul.f32 %v5117_v39, %v1526_v0  ;;  %v3344_v53 = vpop.f32.mrb[135].mxu0  ;;  %v2108_v55 = vpop.f32.mrb[134].mxu1  ;;  %v5798_v3 = vld [vmem:[#allocation11_spill] sm:$0xff]  ;;  %v5799_v60 = vld [vmem:[#allocation12_spill] sm:$0xff] }
 0x1fa   :  { %v2226_v31 = vmul.f32 %v5117_v39, %v2108_v55  ;;  %v3495_v33 = vpop.f32.mrb[135].mxu1 }
 0x1fb   :  { %2397 = vst.msk [vmem:[%s5678_s4 + $0xb0] sm:$0xff] %vm2374_vm3, %v2353_v14  ;;  %v2311_v38 = vmax.f32 %v1729_v28, %v2268_v12  ;;  %v1687_v6 = vadd.f32 %v5126_v1, %v1644_v30  ;;  %v5800_v12 = vmax.f32 %v5798_v3, %v5799_v60 }
 0x1fc   :  { %v2269_v10 = vadd.f32 %v5126_v1, %v2226_v31  ;;  %v1531_v52 = vpop.f32.mrb[136].mxu0 }
 0x1fd   :  { %v2354_v21 = vmax.f32 %v2311_v38, 0.0  ;;  %v1730_v56 = vmax.f32 %v5791_v35, %v1687_v6  ;;  %v1645_v59 = vmul.f32 %v5117_v39, %v1531_v52  ;;  %v3347_v36 = vpop.f32.mrb[137].mxu0  ;;  %v2113_v58 = vpop.f32.mrb[136].mxu1  ;;  %v5801_v38 = vld [vmem:[#allocation13_spill] sm:$0xff]  ;;  %v5802_v6 = vld [vmem:[#allocation14_spill] sm:$0xff] }
 0x1fe   :  { %v2227_v41 = vmul.f32 %v5117_v39, %v2113_v58  ;;  %v3498_v15 = vpop.f32.mrb[137].mxu1 }
 0x1ff   :  { %2398 = vst.msk [vmem:[%s5678_s4 + $0xb8] sm:$0xff] %vm2374_vm3, %v2354_v21  ;;  %v2312_v7 = vmax.f32 %v1730_v56, %v2269_v10  ;;  %v1688_v46 = vadd.f32 %v5126_v1, %v1645_v59  ;;  %v5803_v10 = vmax.f32 %v5801_v38, %v5802_v6 }
 0x200   :  { %v2270_v25 = vadd.f32 %v5126_v1, %v2227_v41  ;;  %v1536_v51 = vpop.f32.mrb[138].mxu0 }
 0x201   :  { %v2355_v2 = vmax.f32 %v2312_v7, 0.0  ;;  %v1731_v29 = vmax.f32 %v5794_v45, %v1688_v46  ;;  %v1646_v37 = vmul.f32 %v5117_v39, %v1536_v51  ;;  %v3350_v20 = vpop.f32.mrb[139].mxu0  ;;  %v2118_v22 = vpop.f32.mrb[138].mxu1  ;;  %v5804_v7 = vld [vmem:[#allocation15_spill] sm:$0xff]  ;;  %v5805_v46 = vld [vmem:[#allocation16_spill] sm:$0xff] }
 0x202   :  { %v2228_v48 = vmul.f32 %v5117_v39, %v2118_v22  ;;  %v3501_v54 = vpop.f32.mrb[139].mxu1 }
 0x203   :  { %2399 = vst.msk [vmem:[%s5678_s4 + $0xc0] sm:$0xff] %vm2374_vm3, %v2355_v2  ;;  %v2313_v47 = vmax.f32 %v1731_v29, %v2270_v25  ;;  %v1689_v50 = vadd.f32 %v5126_v1, %v1646_v37  ;;  %v5806_v25 = vmax.f32 %v5804_v7, %v5805_v46 }
 0x204   :  { %v2271_v42 = vadd.f32 %v5126_v1, %v2228_v48  ;;  %v1541_v44 = vpop.f32.mrb[140].mxu0 }
 0x205   :  { %v2356_v16 = vmax.f32 %v2313_v47, 0.0  ;;  %v1732_v8 = vmax.f32 %v5797_v49, %v1689_v50  ;;  %v1647_v18 = vmul.f32 %v5117_v39, %v1541_v44  ;;  %v3353_v43 = vpop.f32.mrb[141].mxu0  ;;  %v2123_v13 = vpop.f32.mrb[140].mxu1  ;;  %v5807_v47 = vld [vmem:[#allocation17_spill] sm:$0xff]  ;;  %v5808_v50 = vld [vmem:[#allocation18_spill] sm:$0xff] }
 0x206   :  { %v2229_v62 = vmul.f32 %v5117_v39, %v2123_v13  ;;  %v3504_v5 = vpop.f32.mrb[141].mxu1 }
 0x207   :  { %2400 = vst.msk [vmem:[%s5678_s4 + $0xc8] sm:$0xff] %vm2374_vm3, %v2356_v16  ;;  %v2314_v57 = vmax.f32 %v1732_v8, %v2271_v42  ;;  %v1690_v26 = vadd.f32 %v5126_v1, %v1647_v18  ;;  %v5809_v42 = vmax.f32 %v5807_v47, %v5808_v50 }
 0x208   :  { %v2272_v17 = vadd.f32 %v5126_v1, %v2229_v62  ;;  %v1546_v19 = vpop.f32.mrb[142].mxu0 }
 0x209   :  { %v2357_v63 = vmax.f32 %v2314_v57, 0.0  ;;  %v1733_v0 = vmax.f32 %v5800_v12, %v1690_v26  ;;  %v1648_v14 = vmul.f32 %v5117_v39, %v1546_v19  ;;  %v3356_v23 = vpop.f32.mrb[143].mxu0  ;;  %v2128_v9 = vpop.f32.mrb[142].mxu1  ;;  %v5810_v57 = vld [vmem:[#allocation19_spill] sm:$0xff]  ;;  %v5811_v26 = vld [vmem:[#allocation20_spill] sm:$0xff] }
 0x20a   :  { %v2230_v11 = vmul.f32 %v5117_v39, %v2128_v9  ;;  %v3507_v28 = vpop.f32.mrb[143].mxu1 }
 0x20b   :  { %2401 = vst.msk [vmem:[%s5678_s4 + $0xd0] sm:$0xff] %vm2374_vm3, %v2357_v63  ;;  %v2315_v30 = vmax.f32 %v1733_v0, %v2272_v17  ;;  %v1691_v53 = vadd.f32 %v5126_v1, %v1648_v14  ;;  %v5812_v17 = vmax.f32 %v5810_v57, %v5811_v26 }
 0x20c   :  { %v2273_v55 = vadd.f32 %v5126_v1, %v2230_v11  ;;  %v1551_v31 = vpop.f32.mrb[144].mxu0 }
 0x20d   :  { %v2358_v33 = vmax.f32 %v2315_v30, 0.0  ;;  %v1734_v52 = vmax.f32 %v5803_v10, %v1691_v53  ;;  %v1649_v21 = vmul.f32 %v5117_v39, %v1551_v31  ;;  %v3359_v24 = vpop.f32.mrb[145].mxu0  ;;  %v2133_v32 = vpop.f32.mrb[144].mxu1  ;;  %v5813_v30 = vld [vmem:[#allocation21_spill] sm:$0xff]  ;;  %v5814_v53 = vld [vmem:[#allocation22_spill] sm:$0xff] }
 0x20e   :  { %v2231_v35 = vmul.f32 %v5117_v39, %v2133_v32  ;;  %v3510_v56 = vpop.f32.mrb[145].mxu1 }
 0x20f   :  { %2402 = vst.msk [vmem:[%s5678_s4 + $0xd8] sm:$0xff] %vm2374_vm3, %v2358_v33  ;;  %v2316_v59 = vmax.f32 %v1734_v52, %v2273_v55  ;;  %v1692_v36 = vadd.f32 %v5126_v1, %v1649_v21  ;;  %v5815_v55 = vmax.f32 %v5813_v30, %v5814_v53 }
 0x210   :  { %v2274_v58 = vadd.f32 %v5126_v1, %v2231_v35  ;;  %v1556_v41 = vpop.f32.mrb[146].mxu0 }
 0x211   :  { %v2359_v15 = vmax.f32 %v2316_v59, 0.0  ;;  %v1735_v51 = vmax.f32 %v5806_v25, %v1692_v36  ;;  %v1650_v2 = vmul.f32 %v5117_v39, %v1556_v41  ;;  %v3362_v4 = vpop.f32.mrb[147].mxu0  ;;  %v2138_v40 = vpop.f32.mrb[146].mxu1  ;;  %v5816_v59 = vld [vmem:[#allocation23_spill] sm:$0xff]  ;;  %v5817_v36 = vld [vmem:[#allocation24_spill] sm:$0xff] }
 0x212   :  { %v2232_v45 = vmul.f32 %v5117_v39, %v2138_v40  ;;  %v3513_v29 = vpop.f32.mrb[147].mxu1 }
 0x213   :  { %2403 = vst.msk [vmem:[%s5678_s4 + $0xe0] sm:$0xff] %vm2374_vm3, %v2359_v15  ;;  %v2317_v37 = vmax.f32 %v1735_v51, %v2274_v58  ;;  %v1693_v20 = vadd.f32 %v5126_v1, %v1650_v2  ;;  %v5818_v58 = vmax.f32 %v5816_v59, %v5817_v36 }
 0x214   :  { %v2275_v22 = vadd.f32 %v5126_v1, %v2232_v45  ;;  %v1561_v48 = vpop.f32.mrb[148].mxu0 }
 0x215   :  { %v2360_v54 = vmax.f32 %v2317_v37, 0.0  ;;  %v1736_v44 = vmax.f32 %v5809_v42, %v1693_v20  ;;  %v1651_v16 = vmul.f32 %v5117_v39, %v1561_v48  ;;  %v3365_v34 = vpop.f32.mrb[149].mxu0  ;;  %v2143_v61 = vpop.f32.mrb[148].mxu1  ;;  %v5819_v37 = vld [vmem:[#allocation25_spill] sm:$0xff]  ;;  %v5820_v20 = vld [vmem:[#allocation26_spill] sm:$0xff] }
 0x216   :  { %v2233_v49 = vmul.f32 %v5117_v39, %v2143_v61  ;;  %v3516_v8 = vpop.f32.mrb[149].mxu1 }
 0x217   :  { %2404 = vst.msk [vmem:[%s5678_s4 + $0xe8] sm:$0xff] %vm2374_vm3, %v2360_v54  ;;  %v2318_v18 = vmax.f32 %v1736_v44, %v2275_v22  ;;  %v1694_v43 = vadd.f32 %v5126_v1, %v1651_v16  ;;  %v5821_v22 = vmax.f32 %v5819_v37, %v5820_v20 }
 0x218   :  { %v2276_v13 = vadd.f32 %v5126_v1, %v2233_v49  ;;  %v1566_v62 = vpop.f32.mrb[150].mxu0 }
 0x219   :  { %v2361_v5 = vmax.f32 %v2318_v18, 0.0  ;;  %v1737_v19 = vmax.f32 %v5812_v17, %v1694_v43  ;;  %v1652_v63 = vmul.f32 %v5117_v39, %v1566_v62  ;;  %v3368_v3 = vpop.f32.mrb[151].mxu0  ;;  %v2148_v60 = vpop.f32.mrb[150].mxu1  ;;  %v5822_v18 = vld [vmem:[#allocation27_spill] sm:$0xff]  ;;  %v5823_v43 = vld [vmem:[#allocation28_spill] sm:$0xff] }
 0x21a   :  { %v2234_v12 = vmul.f32 %v5117_v39, %v2148_v60  ;;  %v3519_v0 = vpop.f32.mrb[151].mxu1 }
 0x21b   :  { %2405 = vst.msk [vmem:[%s5678_s4 + $0xf0] sm:$0xff] %vm2374_vm3, %v2361_v5  ;;  %v2319_v14 = vmax.f32 %v1737_v19, %v2276_v13  ;;  %v1695_v23 = vadd.f32 %v5126_v1, %v1652_v63  ;;  %v5824_v13 = vmax.f32 %v5822_v18, %v5823_v43 }
 0x21c   :  { %v2277_v9 = vadd.f32 %v5126_v1, %v2234_v12  ;;  %v1571_v11 = vpop.f32.mrb[152].mxu0 }
 0x21d   :  { %v2362_v28 = vmax.f32 %v2319_v14, 0.0  ;;  %v1738_v31 = vmax.f32 %v5815_v55, %v1695_v23  ;;  %v1653_v33 = vmul.f32 %v5117_v39, %v1571_v11  ;;  %v3371_v38 = vpop.f32.mrb[153].mxu0  ;;  %v2153_v6 = vpop.f32.mrb[152].mxu1  ;;  %v5825_v14 = vld [vmem:[#allocation29_spill] sm:$0xff]  ;;  %v5826_v23 = vld [vmem:[#allocation30_spill] sm:$0xff] }
 0x21e   :  { %v2235_v10 = vmul.f32 %v5117_v39, %v2153_v6  ;;  %v3522_v52 = vpop.f32.mrb[153].mxu1 }
 0x21f   :  { %2406 = vst.msk [vmem:[%s5678_s4 + $0xf8] sm:$0xff] %vm2374_vm3, %v2362_v28  ;;  %v2320_v21 = vmax.f32 %v1738_v31, %v2277_v9  ;;  %v1696_v24 = vadd.f32 %v5126_v1, %v1653_v33  ;;  %v5827_v9 = vmax.f32 %v5825_v14, %v5826_v23  ;;  %v3616_v33 = vld [vmem:[%s5677_s3] ss:$0 sm:$0xff] }
 0x220   :  { %v2278_v32 = vadd.f32 %v5126_v1, %v2235_v10  ;;  %v1576_v35 = vpop.f32.mrb[154].mxu0 }
 0x221   :  { %v2363_v56 = vmax.f32 %v2320_v21, 0.0  ;;  %v1739_v41 = vmax.f32 %v5818_v58, %v1696_v24  ;;  %v1654_v15 = vmul.f32 %v5117_v39, %v1576_v35  ;;  %v3374_v7 = vpop.f32.mrb[155].mxu0  ;;  %v2158_v46 = vpop.f32.mrb[154].mxu1  ;;  %v5828_v21 = vld [vmem:[#allocation31_spill] sm:$0xff]  ;;  %v5829_v24 = vld [vmem:[#allocation32_spill] sm:$0xff] }
 0x222   :  { %v2236_v25 = vmul.f32 %v5117_v39, %v2158_v46  ;;  %v3525_v51 = vpop.f32.mrb[155].mxu1 }
 0x223   :  { %2407 = vst.msk [vmem:[%s5678_s4 + $0x100] sm:$0xff] %vm2374_vm3, %v2363_v56  ;;  %v2321_v2 = vmax.f32 %v1739_v41, %v2278_v32  ;;  %v1697_v4 = vadd.f32 %v5126_v1, %v1654_v15  ;;  %v5830_v32 = vmax.f32 %v5828_v21, %v5829_v24 }
 0x224   :  { %v2279_v40 = vadd.f32 %v5126_v1, %v2236_v25  ;;  %v1581_v45 = vpop.f32.mrb[156].mxu0 }
 0x225   :  { %v2364_v29 = vmax.f32 %v2321_v2, 0.0  ;;  %v1740_v48 = vmax.f32 %v5821_v22, %v1697_v4  ;;  %v1655_v54 = vmul.f32 %v5117_v39, %v1581_v45  ;;  %v3377_v47 = vpop.f32.mrb[157].mxu0  ;;  %v2163_v50 = vpop.f32.mrb[156].mxu1  ;;  %v5831_v2 = vld [vmem:[#allocation33_spill] sm:$0xff]  ;;  %v5832_v4 = vld [vmem:[#allocation34_spill] sm:$0xff] }
 0x226   :  { %v2237_v42 = vmul.f32 %v5117_v39, %v2163_v50  ;;  %v3528_v44 = vpop.f32.mrb[157].mxu1 }
 0x227   :  { %2408 = vst.msk [vmem:[%s5678_s4 + $0x108] sm:$0xff] %vm2374_vm3, %v2364_v29  ;;  %v2322_v16 = vmax.f32 %v1740_v48, %v2279_v40  ;;  %v1698_v34 = vadd.f32 %v5126_v1, %v1655_v54  ;;  %v5833_v40 = vmax.f32 %v5831_v2, %v5832_v4 }
 0x228   :  { %v2280_v61 = vadd.f32 %v5126_v1, %v2237_v42  ;;  %v1586_v49 = vpop.f32.mrb[158].mxu0 }
 0x229   :  { %v2365_v8 = vmax.f32 %v2322_v16, 0.0  ;;  %v1741_v62 = vmax.f32 %v5824_v13, %v1698_v34  ;;  %v1656_v5 = vmul.f32 %v5117_v39, %v1586_v49  ;;  %v3380_v57 = vpop.f32.mrb[159].mxu0  ;;  %v2168_v26 = vpop.f32.mrb[158].mxu1  ;;  %v5834_v16 = vld [vmem:[#allocation35_spill] sm:$0xff]  ;;  %v5835_v34 = vld [vmem:[#allocation36_spill] sm:$0xff] }
 0x22a   :  { %v2238_v17 = vmul.f32 %v5117_v39, %v2168_v26  ;;  %v3531_v19 = vpop.f32.mrb[159].mxu1  ;;  %v5608_v39 = vld [vmem:[%s5676_s2] ss:$0 sm:$0xff] }
 0x22b   :  { %2409 = vst.msk [vmem:[%s5678_s4 + $0x110] sm:$0xff] %vm2374_vm3, %v2365_v8  ;;  %v2323_v63 = vmax.f32 %v1741_v62, %v2280_v61  ;;  %v1699_v3 = vadd.f32 %v5126_v1, %v1656_v5  ;;  %v5836_v61 = vmax.f32 %v5834_v16, %v5835_v34 }
 0x22c   :  { %v2281_v60 = vadd.f32 %v5126_v1, %v2238_v17  ;;  %v1591_v12 = vpop.f32.mrb[160].mxu0 }
 0x22d   :  { %v2366_v0 = vmax.f32 %v2323_v63, 0.0  ;;  %v1742_v11 = vmax.f32 %v5827_v9, %v1699_v3  ;;  %v1657_v28 = vmul.f32 %v5608_v39, %v1591_v12  ;;  %v3383_v30 = vpop.f32.mrb[161].mxu0  ;;  %v2173_v53 = vpop.f32.mrb[160].mxu1  ;;  %v5837_v63 = vld [vmem:[#allocation37_spill] sm:$0xff]  ;;  %v5838_v3 = vld [vmem:[#allocation38_spill] sm:$0xff] }
 0x22e   :  { %v2239_v55 = vmul.f32 %v5608_v39, %v2173_v53  ;;  %v3534_v31 = vpop.f32.mrb[161].mxu1 }
 0x22f   :  { %2410 = vst.msk [vmem:[%s5678_s4 + $0x118] sm:$0xff] %vm2374_vm3, %v2366_v0  ;;  %v2324_v1 = vmax.f32 %v1742_v11, %v2281_v60  ;;  %v1700_v38 = vadd.f32 %v3616_v33, %v1657_v28  ;;  %v5839_v60 = vmax.f32 %v5837_v63, %v5838_v3 }
 0x230   :  { %v2282_v6 = vadd.f32 %v3616_v33, %v2239_v55  ;;  %v1596_v10 = vpop.f32.mrb[162].mxu0 }
 0x231   :  { %v2367_v52 = vmax.f32 %v2324_v1, 0.0  ;;  %v1743_v35 = vmax.f32 %v5830_v32, %v1700_v38  ;;  %v1658_v56 = vmul.f32 %v5608_v39, %v1596_v10  ;;  %v3386_v59 = vpop.f32.mrb[163].mxu0  ;;  %v2178_v36 = vpop.f32.mrb[162].mxu1  ;;  %v5840_v1 = vld [vmem:[#allocation39_spill] sm:$0xff]  ;;  %v5841_v38 = vld [vmem:[#allocation40_spill] sm:$0xff] }
 0x232   :  { %v2240_v58 = vmul.f32 %v5608_v39, %v2178_v36  ;;  %v3537_v41 = vpop.f32.mrb[163].mxu1 }
 0x233   :  { %2411 = vst.msk [vmem:[%s5678_s4 + $0x120] sm:$0xff] %vm2374_vm3, %v2367_v52  ;;  %v2325_v15 = vmax.f32 %v1743_v35, %v2282_v6  ;;  %v1701_v7 = vadd.f32 %v3616_v33, %v1658_v56  ;;  %v5842_v6 = vmax.f32 %v5840_v1, %v5841_v38  ;;  %v5843_v41 = vld [vmem:[#allocation41_spill] sm:$0xff] }
 0x234   :  { %v2283_v46 = vadd.f32 %v3616_v33, %v2240_v58  ;;  %v1601_v25 = vpop.f32.mrb[164].mxu0 }
 0x235   :  { %v2368_v51 = vmax.f32 %v2325_v15, 0.0  ;;  %v1744_v45 = vmax.f32 %v5833_v40, %v1701_v7  ;;  %v1659_v29 = vmul.f32 %v5608_v39, %v1601_v25  ;;  %v3389_v37 = vpop.f32.mrb[165].mxu0  ;;  %v2183_v20 = vpop.f32.mrb[164].mxu1  ;;  %v5844_v15 = vmax.f32 %v5199_v27, %v5843_v41 }
 0x236   :  { %v2241_v22 = vmul.f32 %v5608_v39, %v2183_v20  ;;  %v3540_v48 = vpop.f32.mrb[165].mxu1 }
 0x237   :  { %2412 = vst.msk [vmem:[%s5678_s4 + $0x128] sm:$0xff] %vm2374_vm3, %v2368_v51  ;;  %v2326_v54 = vmax.f32 %v1744_v45, %v2283_v46  ;;  %v1702_v47 = vadd.f32 %v3616_v33, %v1659_v29 }
 0x238   :  { %v2284_v50 = vadd.f32 %v3616_v33, %v2241_v22  ;;  %v1606_v42 = vpop.f32.mrb[166].mxu0 }
 0x239   :  { %v2369_v44 = vmax.f32 %v2326_v54, 0.0  ;;  %v1745_v49 = vmax.f32 %v5836_v61, %v1702_v47  ;;  %v1660_v8 = vmul.f32 %v5608_v39, %v1606_v42  ;;  %v3392_v18 = vpop.f32.mrb[167].mxu0  ;;  %v2188_v43 = vpop.f32.mrb[166].mxu1 }
 0x23a   :  { %v2242_v13 = vmul.f32 %v5608_v39, %v2188_v43  ;;  %v3543_v62 = vpop.f32.mrb[167].mxu1 }
 0x23b   :  { %2413 = vst.msk [vmem:[%s5678_s4 + $0x130] sm:$0xff] %vm2374_vm3, %v2369_v44  ;;  %v2327_v5 = vmax.f32 %v1745_v49, %v2284_v50  ;;  %v1703_v57 = vadd.f32 %v3616_v33, %v1660_v8 }
 0x23c   :  { %v2285_v26 = vadd.f32 %v3616_v33, %v2242_v13  ;;  %v1611_v17 = vpop.f32.mrb[168].mxu0 }
 0x23d   :  { %v2370_v19 = vmax.f32 %v2327_v5, 0.0  ;;  %v1746_v12 = vmax.f32 %v5839_v60, %v1703_v57  ;;  %v1661_v0 = vmul.f32 %v5608_v39, %v1611_v17  ;;  %v3395_v14 = vpop.f32.mrb[169].mxu0  ;;  %v2193_v23 = vpop.f32.mrb[168].mxu1 }
 0x23e   :  { %v2243_v9 = vmul.f32 %v5608_v39, %v2193_v23  ;;  %v3546_v11 = vpop.f32.mrb[169].mxu1 }
 0x23f   :  { %2414 = vst.msk [vmem:[%s5678_s4 + $0x138] sm:$0xff] %vm2374_vm3, %v2370_v19  ;;  %v2328_v28 = vmax.f32 %v1746_v12, %v2285_v26  ;;  %v1704_v30 = vadd.f32 %v3616_v33, %v1661_v0 }
 0x240   :  { %v2286_v53 = vadd.f32 %v3616_v33, %v2243_v9  ;;  %v1616_v55 = vpop.f32.mrb[170].mxu0 }
 0x241   :  { %v2371_v31 = vmax.f32 %v2328_v28, 0.0  ;;  %v1747_v10 = vmax.f32 %v5842_v6, %v1704_v30  ;;  %v1662_v52 = vmul.f32 %v5608_v39, %v1616_v55  ;;  %v3398_v21 = vpop.f32.mrb[171].mxu0  ;;  %v2198_v24 = vpop.f32.mrb[170].mxu1 }
 0x242   :  { %v2244_v32 = vmul.f32 %v5608_v39, %v2198_v24  ;;  %v3549_v35 = vpop.f32.mrb[171].mxu1 }
 0x243   :  { %2415 = vst.msk [vmem:[%s5678_s4 + $0x140] sm:$0xff] %vm2374_vm3, %v2371_v31  ;;  %v2329_v56 = vmax.f32 %v1747_v10, %v2286_v53  ;;  %v1705_v59 = vadd.f32 %v3616_v33, %v1662_v52 }
 0x244   :  { %v2287_v36 = vadd.f32 %v3616_v33, %v2244_v32 }
 0x245   :  { %v2372_v58 = vmax.f32 %v2329_v56, 0.0  ;;  %v1748_v7 = vmax.f32 %v5844_v15, %v1705_v59 }
 0x247   :  { %2416 = vst.msk [vmem:[%s5678_s4 + $0x148] sm:$0xff] %vm2374_vm3, %v2372_v58  ;;  %v2330_v39 = vmax.f32 %v1748_v7, %v2287_v36 }
 0x249   :  { %v2373_v46 = vmax.f32 %v2330_v39, 0.0 }
 0x24b   :  { %2418 = vst.msk [vmem:[%s5678_s4 + $0x150] sm:$0x3] %vm2417_vm4, %v2373_v46 }

// kernel: forward_pallas.6
= control target key start
LH: loop header
LB: loop body
LE: loop exit
PB: predicated region body
PF: predicated region fallthrough
CT: control target
= control target key end

     0   :  { %v1009_v0 = vmov 0.0|0.0   ;;  %vm191_vm0 = vcmask 130048   ;;  %vm832_vm1 = vcmask 261120   ;;  %vm863_vm2 = vcmask 254976   ;;  %s1808_s1 = inlined_call_operand.vmem [shape: f32[400,32], index: 1, kind: input, shape index: {}]   ;;  %s1809_s0 = inlined_call_operand.vmem [shape: f32[242,400], index: 0, kind: input, shape index: {}]   ;;  %s1810_s2 = inlined_call_operand.vmem [shape: f32[1,32], index: 2, kind: input, shape index: {}]   ;;  %s1811_s3 = inlined_call_operand.vmem [shape: f32[1,32], index: 3, kind: input, shape index: {}]   ;;  %s1812_s4 = inlined_call_operand.vmem [shape: f32[242,32], index: 4, kind: output, shape index: {}]  }
   0x1   :  { %902 = vmatprep.subr.bf16.mxu1 %v1009_v0  ;;  %v141_v1 = vld [vmem:[%s1808_s1] sm:$0xff]  ;;  %v142_v2 = vld [vmem:[%s1808_s1 + $0x8] sm:$0xff]  ;;  %v143_v3 = vld [vmem:[%s1808_s1 + $0x10] sm:$0xff]  ;;  %950 = vmatprep.subr.bf16.mxu0 %v1009_v0 }
   0x2   :  { %v903_v4 = vpack.c.bf16 %v142_v2, %v141_v1  ;;  %v144_v5 = vld [vmem:[%s1808_s1 + $0x18] sm:$0xff]  ;;  %v145_v7 = vld [vmem:[%s1808_s1 + $0x20] sm:$0xff]  ;;  %v146_v8 = vld [vmem:[%s1808_s1 + $0x28] sm:$0xff] }
   0x3   :  { %v906_v6 = vpack.c.bf16 %v144_v5, %v143_v3  ;;  %v173_v9 = vld [vmem:[%s1808_s1 + $0x100] sm:$0xff]  ;;  %v174_v10 = vld [vmem:[%s1808_s1 + $0x108] sm:$0xff]  ;;  %v175_v12 = vld [vmem:[%s1808_s1 + $0x110] sm:$0xff]  ;;  %v909_v14 = vpack.c.bf16 %v146_v8, %v145_v7 }
   0x4   :  { %904 = vmatpush1.bf16.msra.mxu1 %v903_v4  ;;  %v951_v11 = vpack.c.bf16 %v174_v10, %v173_v9  ;;  %v176_v13 = vld [vmem:[%s1808_s1 + $0x118] sm:$0xff]  ;;  %v147_v15 = vld [vmem:[%s1808_s1 + $0x30] sm:$0xff]  ;;  %v177_v18 = vld [vmem:[%s1808_s1 + $0x120] sm:$0xff] }
   0x5   :  { %905 = vmatprep.subr.bf16.mxu1 %v1009_v0  ;;  %v148_v16 = vld [vmem:[%s1808_s1 + $0x38] sm:$0xff]  ;;  %v954_v17 = vpack.c.bf16 %v176_v13, %v175_v12  ;;  %v178_v19 = vld [vmem:[%s1808_s1 + $0x128] sm:$0xff]  ;;  %v149_v21 = vld [vmem:[%s1808_s1 + $0x40] sm:$0xff] }
   0x6   :  { %952 = vmatpush1.bf16.msra.mxu0 %v951_v11  ;;  %v912_v20 = vpack.c.bf16 %v148_v16, %v147_v15  ;;  %v150_v22 = vld [vmem:[%s1808_s1 + $0x48] sm:$0xff]  ;;  %v957_v23 = vpack.c.bf16 %v178_v19, %v177_v18  ;;  %v179_v24 = vld [vmem:[%s1808_s1 + $0x130] sm:$0xff]  ;;  %v180_v25 = vld [vmem:[%s1808_s1 + $0x138] sm:$0xff] }
   0x7   :  { %953 = vmatprep.subr.bf16.mxu0 %v1009_v0  ;;  %v915_v26 = vpack.c.bf16 %v150_v22, %v149_v21  ;;  %v151_v27 = vld [vmem:[%s1808_s1 + $0x50] sm:$0xff]  ;;  %v152_v28 = vld [vmem:[%s1808_s1 + $0x58] sm:$0xff]  ;;  %v960_v29 = vpack.c.bf16 %v180_v25, %v179_v24  ;;  %v181_v31 = vld [vmem:[%s1808_s1 + $0x140] sm:$0xff] }
   0x8   :  { %907 = vmatpush1.bf16.msra.mxu1 %v906_v6  ;;  %v20_v30 = vld [vmem:[%s1809_s0 + $0x18] sm:$0xff]  ;;  %v182_v32 = vld [vmem:[%s1808_s1 + $0x148] sm:$0xff]  ;;  %v918_v34 = vpack.c.bf16 %v152_v28, %v151_v27  ;;  %v153_v35 = vld [vmem:[%s1808_s1 + $0x60] sm:$0xff] }
   0x9   :  { %908 = vmatprep.subr.bf16.mxu1 %v1009_v0  ;;  %869 = vmatprep.mubr.msk.f32.mxu0 %vm191_vm0, %v20_v30  ;;  %v18_v33 = vld [vmem:[%s1809_s0 + $0x8] sm:$0xff]  ;;  %v963_v37 = vpack.c.bf16 %v182_v32, %v181_v31  ;;  %v183_v38 = vld [vmem:[%s1808_s1 + $0x150] sm:$0xff]  ;;  %v184_v39 = vld [vmem:[%s1808_s1 + $0x158] sm:$0xff] }
   0xa   :  { %955 = vmatpush1.bf16.msra.mxu0 %v954_v17  ;;  %349 = vmatprep.mubr.f32.mxu1 %v18_v33  ;;  %v154_v36 = vld [vmem:[%s1808_s1 + $0x68] sm:$0xff]  ;;  %v155_v41 = vld [vmem:[%s1808_s1 + $0x70] sm:$0xff]  ;;  %v156_v42 = vld [vmem:[%s1808_s1 + $0x78] sm:$0xff]  ;;  %v966_v43 = vpack.c.bf16 %v184_v39, %v183_v38 }
   0xb   :  { %956 = vmatprep.subr.bf16.mxu0 %v1009_v0  ;;  %v921_v40 = vpack.c.bf16 %v154_v36, %v153_v35  ;;  %v185_v44 = vld [vmem:[%s1808_s1 + $0x160] sm:$0xff]  ;;  %v186_v45 = vld [vmem:[%s1808_s1 + $0x168] sm:$0xff]  ;;  %v924_v46 = vpack.c.bf16 %v156_v42, %v155_v41  ;;  %v187_v50 = vld [vmem:[%s1808_s1 + $0x170] sm:$0xff] }
   0xc   :  { %910 = vmatpush1.bf16.msra.mxu1 %v909_v14  ;;  %v157_v47 = vld [vmem:[%s1808_s1 + $0x80] sm:$0xff]  ;;  %v158_v48 = vld [vmem:[%s1808_s1 + $0x88] sm:$0xff]  ;;  %v969_v49 = vpack.c.bf16 %v186_v45, %v185_v44  ;;  %v188_v51 = vld [vmem:[%s1808_s1 + $0x178] sm:$0xff] }
   0xd   :  { %911 = vmatprep.subr.bf16.mxu1 %v1009_v0  ;;  %v927_v52 = vpack.c.bf16 %v158_v48, %v157_v47  ;;  %v159_v53 = vld [vmem:[%s1808_s1 + $0x90] sm:$0xff]  ;;  %v160_v54 = vld [vmem:[%s1808_s1 + $0x98] sm:$0xff]  ;;  %v972_v55 = vpack.c.bf16 %v188_v51, %v187_v50  ;;  %v189_v56 = vld [vmem:[%s1808_s1 + $0x180] sm:$0xff] }
   0xe   :  { %958 = vmatpush1.bf16.msra.mxu0 %v957_v23  ;;  %v190_v57 = vld [vmem:[%s1808_s1 + $0x188] sm:$0xff]  ;;  %v930_v58 = vpack.c.bf16 %v160_v54, %v159_v53  ;;  %v161_v59 = vld [vmem:[%s1808_s1 + $0xa0] sm:$0xff]  ;;  %v163_v63 = vld [vmem:[%s1808_s1 + $0xb0] sm:$0xff] }
   0xf   :  { %959 = vmatprep.subr.bf16.mxu0 %v1009_v0  ;;  %v162_v60 = vld [vmem:[%s1808_s1 + $0xa8] sm:$0xff]  ;;  %v975_v61 = vpack.c.bf16 %v190_v57, %v189_v56  ;;  %v164_v1 = vld [vmem:[%s1808_s1 + $0xb8] sm:$0xff]  ;;  %v19_v2 = vld [vmem:[%s1809_s0 + $0x10] sm:$0xff] }
  0x10   :  { %913 = vmatpush1.bf16.msra.mxu1 %v912_v20  ;;  %v933_v62 = vpack.c.bf16 %v162_v60, %v161_v59  ;;  %v24_v3 = vld [vmem:[%s1809_s0 + $0x38] sm:$0xff]  ;;  %v936_v4 = vpack.c.bf16 %v164_v1, %v163_v63  ;;  %v165_v5 = vld [vmem:[%s1808_s1 + $0xc0] sm:$0xff]  ;;  %v166_v6 = vld [vmem:[%s1808_s1 + $0xc8] sm:$0xff] }
  0x11   :  { %914 = vmatprep.subr.bf16.mxu1 %v1009_v0  ;;  %v23_v7 = vld [vmem:[%s1809_s0 + $0x30] sm:$0xff]  ;;  %v28_v8 = vld [vmem:[%s1809_s0 + $0x58] sm:$0xff]  ;;  %v939_v9 = vpack.c.bf16 %v166_v6, %v165_v5  ;;  %v169_v15 = vld [vmem:[%s1808_s1 + $0xe0] sm:$0xff] }
  0x12   :  { %961 = vmatpush1.bf16.msra.mxu0 %v960_v29  ;;  %v167_v10 = vld [vmem:[%s1808_s1 + $0xd0] sm:$0xff]  ;;  %v168_v11 = vld [vmem:[%s1808_s1 + $0xd8] sm:$0xff]  ;;  %v170_v16 = vld [vmem:[%s1808_s1 + $0xe8] sm:$0xff] }
  0x13   :  { %962 = vmatprep.subr.bf16.mxu0 %v1009_v0  ;;  %v27_v12 = vld [vmem:[%s1809_s0 + $0x50] sm:$0xff]  ;;  %v32_v13 = vld [vmem:[%s1809_s0 + $0x78] sm:$0xff]  ;;  %v942_v14 = vpack.c.bf16 %v168_v11, %v167_v10  ;;  %v945_v19 = vpack.c.bf16 %v170_v16, %v169_v15  ;;  %v17_v27 = vld [vmem:[%s1809_s0] sm:$0xff] }
  0x14   :  { %916 = vmatpush1.bf16.msra.mxu1 %v915_v26  ;;  %v31_v17 = vld [vmem:[%s1809_s0 + $0x70] sm:$0xff]  ;;  %v36_v18 = vld [vmem:[%s1809_s0 + $0x98] sm:$0xff]  ;;  %v21_v30 = vld [vmem:[%s1809_s0 + $0x20] sm:$0xff] }
  0x15   :  { %917 = vmatprep.subr.bf16.mxu1 %v1009_v0  ;;  %v171_v20 = vld [vmem:[%s1808_s1 + $0xf0] sm:$0xff]  ;;  %v172_v21 = vld [vmem:[%s1808_s1 + $0xf8] sm:$0xff]  ;;  %v26_v31 = vld [vmem:[%s1809_s0 + $0x48] sm:$0xff] }
  0x16   :  { %964 = vmatpush1.bf16.msra.mxu0 %v963_v37  ;;  %v35_v22 = vld [vmem:[%s1809_s0 + $0x90] sm:$0xff]  ;;  %v40_v23 = vld [vmem:[%s1809_s0 + $0xb8] sm:$0xff]  ;;  %v948_v24 = vpack.c.bf16 %v172_v21, %v171_v20  ;;  %v30_v35 = vld [vmem:[%s1809_s0 + $0x68] sm:$0xff] }
  0x17   :  { %965 = vmatprep.subr.bf16.mxu0 %v1009_v0  ;;  %v39_v25 = vld [vmem:[%s1809_s0 + $0xb0] sm:$0xff]  ;;  %v44_v26 = vld [vmem:[%s1809_s0 + $0xd8] sm:$0xff]  ;;  %v29_v38 = vld [vmem:[%s1809_s0 + $0x60] sm:$0xff] }
  0x18   :  { %919 = vmatpush1.bf16.msra.mxu1 %v918_v34  ;;  %v43_v28 = vld [vmem:[%s1809_s0 + $0xd0] sm:$0xff]  ;;  %v48_v29 = vld [vmem:[%s1809_s0 + $0xf8] sm:$0xff]  ;;  %v25_v34 = vld [vmem:[%s1809_s0 + $0x40] sm:$0xff] }
  0x19   :  { %920 = vmatprep.subr.bf16.mxu1 %v1009_v0  ;;  %v47_v32 = vld [vmem:[%s1809_s0 + $0xf0] sm:$0xff]  ;;  %v52_v33 = vld [vmem:[%s1809_s0 + $0x118] sm:$0xff]  ;;  %v34_v39 = vld [vmem:[%s1809_s0 + $0x88] sm:$0xff] }
  0x1a   :  { %967 = vmatpush1.bf16.msra.mxu0 %v966_v43  ;;  %v51_v36 = vld [vmem:[%s1809_s0 + $0x110] sm:$0xff]  ;;  %v56_v37 = vld [vmem:[%s1809_s0 + $0x138] sm:$0xff]  ;;  %v33_v42 = vld [vmem:[%s1809_s0 + $0x80] sm:$0xff] }
  0x1b   :  { %968 = vmatprep.subr.bf16.mxu0 %v1009_v0  ;;  %v60_v41 = vld [vmem:[%s1809_s0 + $0x158] sm:$0xff]  ;;  %v38_v43 = vld [vmem:[%s1809_s0 + $0xa8] sm:$0xff]  ;;  %v59_v44 = vld [vmem:[%s1809_s0 + $0x150] sm:$0xff] }
  0x1c   :  { %922 = vmatpush1.bf16.msra.mxu1 %v921_v40  ;;  %v55_v40 = vld [vmem:[%s1809_s0 + $0x130] sm:$0xff]  ;;  %v64_v45 = vld [vmem:[%s1809_s0 + $0x178] sm:$0xff]  ;;  %v42_v47 = vld [vmem:[%s1809_s0 + $0xc8] sm:$0xff] }
  0x1d   :  { %923 = vmatprep.subr.bf16.mxu1 %v1009_v0  ;;  %v63_v48 = vld [vmem:[%s1809_s0 + $0x170] sm:$0xff]  ;;  %v41_v50 = vld [vmem:[%s1809_s0 + $0xc0] sm:$0xff]  ;;  %v46_v51 = vld [vmem:[%s1809_s0 + $0xe8] sm:$0xff] }
  0x1e   :  { %970 = vmatpush1.bf16.msra.mxu0 %v969_v49  ;;  %v68_v49 = vld [vmem:[%s1809_s0 + $0x198] sm:$0xff]  ;;  %v45_v54 = vld [vmem:[%s1809_s0 + $0xe0] sm:$0xff]  ;;  %v71_v56 = vld [vmem:[%s1809_s0 + $0x1b0] sm:$0xff] }
  0x1f   :  { %971 = vmatprep.subr.bf16.mxu0 %v1009_v0  ;;  %v72_v53 = vld [vmem:[%s1809_s0 + $0x1b8] sm:$0xff]  ;;  %v54_v59 = vld [vmem:[%s1809_s0 + $0x128] sm:$0xff]  ;;  %v75_v60 = vld [vmem:[%s1809_s0 + $0x1d0] sm:$0xff] }
  0x20   :  { %925 = vmatpush1.bf16.msra.mxu1 %v924_v46  ;;  %v37_v46 = vld [vmem:[%s1809_s0 + $0xa0] sm:$0xff]  ;;  %v76_v57 = vld [vmem:[%s1809_s0 + $0x1d8] sm:$0xff]  ;;  %v58_v63 = vld [vmem:[%s1809_s0 + $0x148] sm:$0xff] }
  0x21   :  { %926 = vmatprep.subr.bf16.mxu1 %v1009_v0  ;;  %v79_v1 = vld [vmem:[%s1809_s0 + $0x1f0] sm:$0xff]  ;;  %v88_v6 = vld [vmem:[%s1809_s0 + $0x238] sm:$0xff]  ;;  %v65_v11 = vld [vmem:[%s1809_s0 + $0x180] sm:$0xff] }
  0x22   :  { %973 = vmatpush1.bf16.msra.mxu0 %v972_v55  ;;  %v50_v55 = vld [vmem:[%s1809_s0 + $0x108] sm:$0xff]  ;;  %v83_v5 = vld [vmem:[%s1809_s0 + $0x210] sm:$0xff]  ;;  %v92_v10 = vld [vmem:[%s1809_s0 + $0x258] sm:$0xff] }
  0x23   :  { %974 = vmatprep.subr.bf16.mxu0 %v1009_v0  ;;  %v69_v15 = vld [vmem:[%s1809_s0 + $0x1a0] sm:$0xff]  ;;  %v74_v16 = vld [vmem:[%s1809_s0 + $0x1c8] sm:$0xff]  ;;  %v99_v21 = vld [vmem:[%s1809_s0 + $0x290] sm:$0xff] }
  0x24   :  { %928 = vmatpush1.bf16.msra.mxu1 %v927_v52  ;;  %v67_v52 = vld [vmem:[%s1809_s0 + $0x190] sm:$0xff]  ;;  %v78_v20 = vld [vmem:[%s1809_s0 + $0x1e8] sm:$0xff] }
  0x25   :  { %929 = vmatprep.subr.bf16.mxu1 %v1009_v0 }
  0x26   :  { %976 = vmatpush1.bf16.msra.mxu0 %v975_v61  ;;  %v80_v61 = vld [vmem:[%s1809_s0 + $0x1f8] sm:$0xff] }
  0x28   :  { %931 = vmatpush1.bf16.msra.mxu1 %v930_v58  ;;  %v49_v58 = vld [vmem:[%s1809_s0 + $0x100] sm:$0xff] }
  0x29   :  { %932 = vmatprep.subr.bf16.mxu1 %v1009_v0  ;;  %570 = vmatmul.mubr.f32.vlgmr.msra.gmra.mrb[0].mxu0 %v19_v2  ;;  %v84_v2 = vld [vmem:[%s1809_s0 + $0x218] sm:$0xff] }
  0x2a   :  { %870 = vmatprep.mubr.msk.f32.mxu0 %vm191_vm0, %v24_v3  ;;  %v57_v3 = vld [vmem:[%s1809_s0 + $0x140] sm:$0xff] }
  0x2c   :  { %934 = vmatpush1.bf16.msra.mxu1 %v933_v62  ;;  %v53_v62 = vld [vmem:[%s1809_s0 + $0x120] sm:$0xff] }
  0x2d   :  { %935 = vmatprep.subr.bf16.mxu1 %v1009_v0  ;;  %575 = vmatmul.mubr.f32.gmra.mrb[2].mxu0 %v23_v7  ;;  %v61_v7 = vld [vmem:[%s1809_s0 + $0x160] sm:$0xff] }
  0x2e   :  { %871 = vmatprep.mubr.msk.f32.mxu0 %vm191_vm0, %v28_v8  ;;  %v66_v8 = vld [vmem:[%s1809_s0 + $0x188] sm:$0xff] }
  0x30   :  { %937 = vmatpush1.bf16.msra.mxu1 %v936_v4  ;;  %v62_v4 = vld [vmem:[%s1809_s0 + $0x168] sm:$0xff] }
  0x31   :  { %938 = vmatprep.subr.bf16.mxu1 %v1009_v0  ;;  %580 = vmatmul.mubr.f32.gmra.mrb[4].mxu0 %v27_v12  ;;  %v70_v12 = vld [vmem:[%s1809_s0 + $0x1a8] sm:$0xff] }
  0x32   :  { %872 = vmatprep.mubr.msk.f32.mxu0 %vm191_vm0, %v32_v13  ;;  %v91_v13 = vld [vmem:[%s1809_s0 + $0x250] sm:$0xff] }
  0x34   :  { %940 = vmatpush1.bf16.msra.mxu1 %v939_v9  ;;  %v87_v9 = vld [vmem:[%s1809_s0 + $0x230] sm:$0xff] }
  0x35   :  { %941 = vmatprep.subr.bf16.mxu1 %v1009_v0  ;;  %585 = vmatmul.mubr.f32.gmra.mrb[6].mxu0 %v31_v17  ;;  %v95_v17 = vld [vmem:[%s1809_s0 + $0x270] sm:$0xff] }
  0x36   :  { %873 = vmatprep.mubr.msk.f32.mxu0 %vm191_vm0, %v36_v18  ;;  %v100_v18 = vld [vmem:[%s1809_s0 + $0x298] sm:$0xff] }
  0x38   :  { %943 = vmatpush1.bf16.msra.mxu1 %v942_v14  ;;  %v96_v14 = vld [vmem:[%s1809_s0 + $0x278] sm:$0xff] }
  0x39   :  { %944 = vmatprep.subr.bf16.mxu1 %v1009_v0  ;;  %590 = vmatmul.mubr.f32.gmra.mrb[8].mxu0 %v35_v22  ;;  %v104_v22 = vld [vmem:[%s1809_s0 + $0x2b8] sm:$0xff] }
  0x3a   :  { %874 = vmatprep.mubr.msk.f32.mxu0 %vm191_vm0, %v40_v23  ;;  %v77_v23 = vld [vmem:[%s1809_s0 + $0x1e0] sm:$0xff] }
  0x3c   :  { %946 = vmatpush1.bf16.msra.mxu1 %v945_v19  ;;  %v73_v19 = vld [vmem:[%s1809_s0 + $0x1c0] sm:$0xff] }
  0x3d   :  { %947 = vmatprep.subr.bf16.mxu1 %v1009_v0  ;;  %595 = vmatmul.mubr.f32.gmra.mrb[10].mxu0 %v39_v25  ;;  %v22_v0 = vld [vmem:[%s1809_s0 + $0x28] sm:$0xff]  ;;  %v103_v25 = vld [vmem:[%s1809_s0 + $0x2b0] sm:$0xff] }
  0x3e   :  { %875 = vmatprep.mubr.msk.f32.mxu0 %vm191_vm0, %v44_v26  ;;  %v108_v26 = vld [vmem:[%s1809_s0 + $0x2d8] sm:$0xff] }
  0x40   :  { %949 = vmatpush1.bf16.msra.mxu1 %v948_v24  ;;  %v82_v24 = vld [vmem:[%s1809_s0 + $0x208] sm:$0xff] }
  0x41   :  { %600 = vmatmul.mubr.f32.gmra.mrb[12].mxu0 %v43_v28  ;;  %v107_v28 = vld [vmem:[%s1809_s0 + $0x2d0] sm:$0xff] }
  0x42   :  { %876 = vmatprep.mubr.msk.f32.mxu0 %vm191_vm0, %v48_v29  ;;  %v112_v29 = vld [vmem:[%s1809_s0 + $0x2f8] sm:$0xff] }
  0x43   :  { %350 = vmatmul.mubr.f32.vlgmr.msra.gmra.mrb[0].mxu1 %v17_v27  ;;  %v81_v27 = vld [vmem:[%s1809_s0 + $0x200] sm:$0xff] }
  0x44   :  { %354 = vmatprep.mubr.f32.mxu1 %v22_v0  ;;  %v86_v0 = vld [vmem:[%s1809_s0 + $0x228] sm:$0xff] }
  0x45   :  { %605 = vmatmul.mubr.f32.gmra.mrb[14].mxu0 %v47_v32  ;;  %v111_v32 = vld [vmem:[%s1809_s0 + $0x2f0] sm:$0xff] }
  0x46   :  { %877 = vmatprep.mubr.msk.f32.mxu0 %vm191_vm0, %v52_v33  ;;  %v116_v33 = vld [vmem:[%s1809_s0 + $0x318] sm:$0xff] }
  0x47   :  { %355 = vmatmul.mubr.f32.gmra.mrb[2].mxu1 %v21_v30  ;;  %v85_v30 = vld [vmem:[%s1809_s0 + $0x220] sm:$0xff] }
  0x48   :  { %359 = vmatprep.mubr.f32.mxu1 %v26_v31  ;;  %v90_v31 = vld [vmem:[%s1809_s0 + $0x248] sm:$0xff] }
  0x49   :  { %610 = vmatmul.mubr.f32.gmra.mrb[16].mxu0 %v51_v36  ;;  %v115_v36 = vld [vmem:[%s1809_s0 + $0x310] sm:$0xff] }
  0x4a   :  { %878 = vmatprep.mubr.msk.f32.mxu0 %vm191_vm0, %v56_v37  ;;  %v120_v37 = vld [vmem:[%s1809_s0 + $0x338] sm:$0xff] }
  0x4b   :  { %360 = vmatmul.mubr.f32.gmra.mrb[4].mxu1 %v25_v34  ;;  %v89_v34 = vld [vmem:[%s1809_s0 + $0x240] sm:$0xff] }
  0x4c   :  { %364 = vmatprep.mubr.f32.mxu1 %v30_v35  ;;  %v94_v35 = vld [vmem:[%s1809_s0 + $0x268] sm:$0xff] }
  0x4d   :  { %615 = vmatmul.mubr.f32.gmra.mrb[18].mxu0 %v55_v40  ;;  %v119_v40 = vld [vmem:[%s1809_s0 + $0x330] sm:$0xff] }
  0x4e   :  { %879 = vmatprep.mubr.msk.f32.mxu0 %vm191_vm0, %v60_v41  ;;  %v124_v41 = vld [vmem:[%s1809_s0 + $0x358] sm:$0xff] }
  0x4f   :  { %365 = vmatmul.mubr.f32.gmra.mrb[6].mxu1 %v29_v38  ;;  %v93_v38 = vld [vmem:[%s1809_s0 + $0x260] sm:$0xff] }
  0x50   :  { %369 = vmatprep.mubr.f32.mxu1 %v34_v39  ;;  %v98_v39 = vld [vmem:[%s1809_s0 + $0x288] sm:$0xff] }
  0x51   :  { %620 = vmatmul.mubr.f32.gmra.mrb[20].mxu0 %v59_v44  ;;  %v123_v44 = vld [vmem:[%s1809_s0 + $0x350] sm:$0xff] }
  0x52   :  { %880 = vmatprep.mubr.msk.f32.mxu0 %vm191_vm0, %v64_v45  ;;  %v128_v45 = vld [vmem:[%s1809_s0 + $0x378] sm:$0xff] }
  0x53   :  { %370 = vmatmul.mubr.f32.gmra.mrb[8].mxu1 %v33_v42  ;;  %v97_v42 = vld [vmem:[%s1809_s0 + $0x280] sm:$0xff] }
  0x54   :  { %374 = vmatprep.mubr.f32.mxu1 %v38_v43  ;;  %v102_v43 = vld [vmem:[%s1809_s0 + $0x2a8] sm:$0xff] }
  0x55   :  { %625 = vmatmul.mubr.f32.gmra.mrb[22].mxu0 %v63_v48  ;;  %v127_v48 = vld [vmem:[%s1809_s0 + $0x370] sm:$0xff] }
  0x56   :  { %881 = vmatprep.mubr.msk.f32.mxu0 %vm191_vm0, %v68_v49  ;;  %v132_v49 = vld [vmem:[%s1809_s0 + $0x398] sm:$0xff] }
  0x57   :  { %375 = vmatmul.mubr.f32.gmra.mrb[10].mxu1 %v37_v46  ;;  %v101_v46 = vld [vmem:[%s1809_s0 + $0x2a0] sm:$0xff] }
  0x58   :  { %379 = vmatprep.mubr.f32.mxu1 %v42_v47  ;;  %v106_v47 = vld [vmem:[%s1809_s0 + $0x2c8] sm:$0xff] }
  0x59   :  { %630 = vmatmul.mubr.f32.gmra.mrb[24].mxu0 %v67_v52  ;;  %v131_v52 = vld [vmem:[%s1809_s0 + $0x390] sm:$0xff] }
  0x5a   :  { %882 = vmatprep.mubr.msk.f32.mxu0 %vm191_vm0, %v72_v53  ;;  %v136_v53 = vld [vmem:[%s1809_s0 + $0x3b8] sm:$0xff] }
  0x5b   :  { %380 = vmatmul.mubr.f32.gmra.mrb[12].mxu1 %v41_v50  ;;  %v105_v50 = vld [vmem:[%s1809_s0 + $0x2c0] sm:$0xff] }
  0x5c   :  { %384 = vmatprep.mubr.f32.mxu1 %v46_v51  ;;  %v110_v51 = vld [vmem:[%s1809_s0 + $0x2e8] sm:$0xff] }
  0x5d   :  { %635 = vmatmul.mubr.f32.gmra.mrb[26].mxu0 %v71_v56  ;;  %v135_v56 = vld [vmem:[%s1809_s0 + $0x3b0] sm:$0xff] }
  0x5e   :  { %883 = vmatprep.mubr.msk.f32.mxu0 %vm191_vm0, %v76_v57  ;;  %v140_v57 = vld [vmem:[%s1809_s0 + $0x3d8] sm:$0x3] }
  0x5f   :  { %385 = vmatmul.mubr.f32.gmra.mrb[14].mxu1 %v45_v54  ;;  %v109_v54 = vld [vmem:[%s1809_s0 + $0x2e0] sm:$0xff] }
  0x60   :  { %389 = vmatprep.mubr.f32.mxu1 %v50_v55  ;;  %v114_v55 = vld [vmem:[%s1809_s0 + $0x308] sm:$0xff] }
  0x61   :  { %640 = vmatmul.mubr.f32.gmra.mrb[28].mxu0 %v75_v60  ;;  %v139_v60 = vld [vmem:[%s1809_s0 + $0x3d0] sm:$0x3] }
  0x62   :  { %884 = vmatprep.mubr.msk.f32.mxu0 %vm191_vm0, %v80_v61  ;;  %v117_v61 = vld [vmem:[%s1809_s0 + $0x320] sm:$0xff] }
  0x63   :  { %390 = vmatmul.mubr.f32.gmra.mrb[16].mxu1 %v49_v58  ;;  %v113_v58 = vld [vmem:[%s1809_s0 + $0x300] sm:$0xff] }
  0x64   :  { %394 = vmatprep.mubr.f32.mxu1 %v54_v59  ;;  %v118_v59 = vld [vmem:[%s1809_s0 + $0x328] sm:$0xff] }
  0x65   :  { %645 = vmatmul.mubr.f32.gmra.mrb[30].mxu0 %v79_v1  ;;  %v126_v1 = vld [vmem:[%s1809_s0 + $0x368] sm:$0xff] }
  0x66   :  { %885 = vmatprep.mubr.msk.f32.mxu0 %vm191_vm0, %v84_v2  ;;  %v125_v2 = vld [vmem:[%s1809_s0 + $0x360] sm:$0xff] }
  0x67   :  { %395 = vmatmul.mubr.f32.gmra.mrb[18].mxu1 %v53_v62  ;;  %v122_v62 = vld [vmem:[%s1809_s0 + $0x348] sm:$0xff] }
  0x68   :  { %399 = vmatprep.mubr.f32.mxu1 %v58_v63  ;;  %v121_v63 = vld [vmem:[%s1809_s0 + $0x340] sm:$0xff] }
  0x69   :  { %650 = vmatmul.mubr.f32.gmra.mrb[32].mxu0 %v83_v5  ;;  %v134_v5 = vld [vmem:[%s1809_s0 + $0x3a8] sm:$0xff] }
  0x6a   :  { %886 = vmatprep.mubr.msk.f32.mxu0 %vm191_vm0, %v88_v6  ;;  %v133_v6 = vld [vmem:[%s1809_s0 + $0x3a0] sm:$0xff] }
  0x6b   :  { %400 = vmatmul.mubr.f32.gmra.mrb[20].mxu1 %v57_v3  ;;  %v130_v3 = vld [vmem:[%s1809_s0 + $0x388] sm:$0xff] }
  0x6c   :  { %404 = vmatprep.mubr.f32.mxu1 %v62_v4  ;;  %v129_v4 = vld [vmem:[%s1809_s0 + $0x380] sm:$0xff] }
  0x6d   :  { %655 = vmatmul.mubr.f32.gmra.mrb[34].mxu0 %v87_v9 }
  0x6e   :  { %887 = vmatprep.mubr.msk.f32.mxu0 %vm191_vm0, %v92_v10 }
  0x6f   :  { %405 = vmatmul.mubr.f32.gmra.mrb[22].mxu1 %v61_v7  ;;  %v138_v7 = vld [vmem:[%s1809_s0 + $0x3c8] sm:$0x3] }
  0x70   :  { %409 = vmatprep.mubr.f32.mxu1 %v66_v8  ;;  %v137_v8 = vld [vmem:[%s1809_s0 + $0x3c0] sm:$0x3] }
  0x71   :  { %660 = vmatmul.mubr.f32.gmra.mrb[36].mxu0 %v91_v13 }
  0x72   :  { %888 = vmatprep.mubr.msk.f32.mxu0 %vm191_vm0, %v96_v14 }
  0x73   :  { %410 = vmatmul.mubr.f32.gmra.mrb[24].mxu1 %v65_v11 }
  0x74   :  { %414 = vmatprep.mubr.f32.mxu1 %v70_v12 }
  0x75   :  { %665 = vmatmul.mubr.f32.gmra.mrb[38].mxu0 %v95_v17 }
  0x76   :  { %889 = vmatprep.mubr.msk.f32.mxu0 %vm191_vm0, %v100_v18 }
  0x77   :  { %415 = vmatmul.mubr.f32.gmra.mrb[26].mxu1 %v69_v15 }
  0x78   :  { %419 = vmatprep.mubr.f32.mxu1 %v74_v16 }
  0x79   :  { %670 = vmatmul.mubr.f32.gmra.mrb[40].mxu0 %v99_v21 }
  0x7a   :  { %890 = vmatprep.mubr.msk.f32.mxu0 %vm191_vm0, %v104_v22  ;;  %v1616_v22 = vld [vmem:[%s1810_s2] ss:$0 sm:$0xff] }
  0x7b   :  { %420 = vmatmul.mubr.f32.gmra.mrb[28].mxu1 %v73_v19 }
  0x7c   :  { %424 = vmatprep.mubr.f32.mxu1 %v78_v20 }
  0x7d   :  { %675 = vmatmul.mubr.f32.gmra.mrb[42].mxu0 %v103_v25 }
  0x7e   :  { %891 = vmatprep.mubr.msk.f32.mxu0 %vm191_vm0, %v108_v26  ;;  %v1621_v26 = vld [vmem:[%s1811_s3] ss:$0 sm:$0xff] }
  0x7f   :  { %425 = vmatmul.mubr.f32.gmra.mrb[30].mxu1 %v77_v23 }
  0x80   :  { %429 = vmatprep.mubr.f32.mxu1 %v82_v24 }
  0x81   :  { %680 = vmatmul.mubr.f32.gmra.mrb[44].mxu0 %v107_v28 }
  0x82   :  { %892 = vmatprep.mubr.msk.f32.mxu0 %vm191_vm0, %v112_v29 }
  0x83   :  { %430 = vmatmul.mubr.f32.gmra.mrb[32].mxu1 %v81_v27 }
  0x84   :  { %434 = vmatprep.mubr.f32.mxu1 %v86_v0 }
  0x85   :  { %685 = vmatmul.mubr.f32.gmra.mrb[46].mxu0 %v111_v32 }
  0x86   :  { %893 = vmatprep.mubr.msk.f32.mxu0 %vm191_vm0, %v116_v33 }
  0x87   :  { %435 = vmatmul.mubr.f32.gmra.mrb[34].mxu1 %v85_v30 }
  0x88   :  { %439 = vmatprep.mubr.f32.mxu1 %v90_v31 }
  0x89   :  { %690 = vmatmul.mubr.f32.gmra.mrb[48].mxu0 %v115_v36 }
  0x8a   :  { %894 = vmatprep.mubr.msk.f32.mxu0 %vm191_vm0, %v120_v37 }
  0x8b   :  { %440 = vmatmul.mubr.f32.gmra.mrb[36].mxu1 %v89_v34 }
  0x8c   :  { %444 = vmatprep.mubr.f32.mxu1 %v94_v35 }
  0x8d   :  { %695 = vmatmul.mubr.f32.gmra.mrb[50].mxu0 %v119_v40 }
  0x8e   :  { %895 = vmatprep.mubr.msk.f32.mxu0 %vm191_vm0, %v124_v41 }
  0x8f   :  { %445 = vmatmul.mubr.f32.gmra.mrb[38].mxu1 %v93_v38 }
  0x90   :  { %449 = vmatprep.mubr.f32.mxu1 %v98_v39 }
  0x91   :  { %700 = vmatmul.mubr.f32.gmra.mrb[52].mxu0 %v123_v44 }
  0x92   :  { %896 = vmatprep.mubr.msk.f32.mxu0 %vm191_vm0, %v128_v45 }
  0x93   :  { %450 = vmatmul.mubr.f32.gmra.mrb[40].mxu1 %v97_v42 }
  0x94   :  { %454 = vmatprep.mubr.f32.mxu1 %v102_v43 }
  0x95   :  { %705 = vmatmul.mubr.f32.gmra.mrb[54].mxu0 %v127_v48 }
  0x96   :  { %897 = vmatprep.mubr.msk.f32.mxu0 %vm191_vm0, %v132_v49 }
  0x97   :  { %455 = vmatmul.mubr.f32.gmra.mrb[42].mxu1 %v101_v46 }
  0x98   :  { %459 = vmatprep.mubr.f32.mxu1 %v106_v47 }
  0x99   :  { %710 = vmatmul.mubr.f32.gmra.mrb[56].mxu0 %v131_v52 }
  0x9a   :  { %898 = vmatprep.mubr.msk.f32.mxu0 %vm191_vm0, %v136_v53 }
  0x9b   :  { %460 = vmatmul.mubr.f32.gmra.mrb[44].mxu1 %v105_v50 }
  0x9c   :  { %464 = vmatprep.mubr.f32.mxu1 %v110_v51 }
  0x9d   :  { %715 = vmatmul.mubr.f32.gmra.mrb[58].mxu0 %v135_v56 }
  0x9e   :  { %899 = vmatprep.mubr.msk.f32.mxu0 %vm191_vm0, %v140_v57 }
  0x9f   :  { %465 = vmatmul.mubr.f32.gmra.mrb[46].mxu1 %v109_v54 }
  0xa0   :  { %469 = vmatprep.mubr.f32.mxu1 %v114_v55 }
  0xa1   :  { %720 = vmatmul.mubr.f32.gmra.mrb[60].mxu0 %v139_v60 }
  0xa3   :  { %470 = vmatmul.mubr.f32.gmra.mrb[48].mxu1 %v113_v58 }
  0xa4   :  { %474 = vmatprep.mubr.f32.mxu1 %v118_v59 }
  0xa7   :  { %475 = vmatmul.mubr.f32.gmra.mrb[50].mxu1 %v117_v61 }
  0xa8   :  { %479 = vmatprep.mubr.f32.mxu1 %v122_v62 }
  0xab   :  { %480 = vmatmul.mubr.f32.gmra.mrb[52].mxu1 %v121_v63 }
  0xac   :  { %484 = vmatprep.mubr.f32.mxu1 %v126_v1 }
  0xaf   :  { %485 = vmatmul.mubr.f32.gmra.mrb[54].mxu1 %v125_v2 }
  0xb0   :  { %489 = vmatprep.mubr.f32.mxu1 %v130_v3 }
  0xb3   :  { %490 = vmatmul.mubr.f32.gmra.mrb[56].mxu1 %v129_v4 }
  0xb4   :  { %494 = vmatprep.mubr.f32.mxu1 %v134_v5 }
  0xb7   :  { %495 = vmatmul.mubr.f32.gmra.mrb[58].mxu1 %v133_v6 }
  0xb8   :  { %499 = vmatprep.mubr.f32.mxu1 %v138_v7 }
  0xbb   :  { %500 = vmatmul.mubr.f32.gmra.mrb[60].mxu1 %v137_v8 }
  0xfc   :  { %v571_v9 = vpop.f32.mrb[0].mxu0 }
  0xfd   :  { %v573_v10 = vpop.f32.mrb[1].mxu0 }
 0x100   :  { %v576_v11 = vpop.f32.mrb[2].mxu0 }
 0x101   :  { %v578_v12 = vpop.f32.mrb[3].mxu0 }
 0x104   :  { %v581_v13 = vpop.f32.mrb[4].mxu0 }
 0x105   :  { %v583_v14 = vpop.f32.mrb[5].mxu0 }
 0x108   :  { %v586_v15 = vpop.f32.mrb[6].mxu0 }
 0x109   :  { %v588_v16 = vpop.f32.mrb[7].mxu0 }
 0x10c   :  { %v591_v17 = vpop.f32.mrb[8].mxu0 }
 0x10d   :  { %v593_v18 = vpop.f32.mrb[9].mxu0 }
 0x110   :  { %v596_v19 = vpop.f32.mrb[10].mxu0 }
 0x111   :  { %v598_v20 = vpop.f32.mrb[11].mxu0 }
 0x114   :  { %v601_v25 = vpop.f32.mrb[12].mxu0 }
 0x115   :  { %v603_v27 = vpop.f32.mrb[13].mxu0 }
 0x116   :  { %v351_v21 = vpop.f32.mrb[0].mxu1 }
 0x117   :  { %v572_v23 = vadd.f32 %v571_v9, %v351_v21  ;;  %v353_v24 = vpop.f32.mrb[1].mxu1 }
 0x118   :  { %v606_v32 = vpop.f32.mrb[14].mxu0 }
 0x119   :  { %v732_v0 = vmul.f32 %v1616_v22, %v572_v23  ;;  %v608_v33 = vpop.f32.mrb[15].mxu0 }
 0x11a   :  { %v356_v28 = vpop.f32.mrb[2].mxu1 }
 0x11b   :  { %v770_v29 = vadd.f32 %v1621_v26, %v732_v0  ;;  %v577_v30 = vadd.f32 %v576_v11, %v356_v28  ;;  %v358_v31 = vpop.f32.mrb[3].mxu1 }
 0x11c   :  { %v611_v40 = vpop.f32.mrb[16].mxu0 }
 0x11d   :  { %v801_v34 = vmax.f32 %v770_v29, 0.0  ;;  %v733_v35 = vmul.f32 %v1616_v22, %v577_v30  ;;  %v613_v41 = vpop.f32.mrb[17].mxu0 }
 0x11e   :  { %v361_v36 = vpop.f32.mrb[4].mxu1 }
 0x11f   :  { %833 = vst.msk [vmem:[%s1812_s4] sm:$0xff] %vm832_vm1, %v801_v34  ;;  %v771_v37 = vadd.f32 %v1621_v26, %v733_v35  ;;  %v582_v38 = vadd.f32 %v581_v13, %v361_v36  ;;  %v363_v39 = vpop.f32.mrb[5].mxu1 }
 0x120   :  { %v616_v48 = vpop.f32.mrb[18].mxu0 }
 0x121   :  { %v802_v42 = vmax.f32 %v771_v37, 0.0  ;;  %v734_v43 = vmul.f32 %v1616_v22, %v582_v38  ;;  %v618_v49 = vpop.f32.mrb[19].mxu0 }
 0x122   :  { %v366_v44 = vpop.f32.mrb[6].mxu1 }
 0x123   :  { %834 = vst.msk [vmem:[%s1812_s4 + $0x8] sm:$0xff] %vm832_vm1, %v802_v42  ;;  %v772_v45 = vadd.f32 %v1621_v26, %v734_v43  ;;  %v587_v46 = vadd.f32 %v586_v15, %v366_v44  ;;  %v368_v47 = vpop.f32.mrb[7].mxu1 }
 0x124   :  { %v621_v56 = vpop.f32.mrb[20].mxu0 }
 0x125   :  { %v803_v50 = vmax.f32 %v772_v45, 0.0  ;;  %v735_v51 = vmul.f32 %v1616_v22, %v587_v46  ;;  %v623_v57 = vpop.f32.mrb[21].mxu0 }
 0x126   :  { %v371_v52 = vpop.f32.mrb[8].mxu1 }
 0x127   :  { %835 = vst.msk [vmem:[%s1812_s4 + $0x10] sm:$0xff] %vm832_vm1, %v803_v50  ;;  %v773_v53 = vadd.f32 %v1621_v26, %v735_v51  ;;  %v592_v54 = vadd.f32 %v591_v17, %v371_v52  ;;  %v373_v55 = vpop.f32.mrb[9].mxu1 }
 0x128   :  { %v626_v1 = vpop.f32.mrb[22].mxu0 }
 0x129   :  { %v804_v58 = vmax.f32 %v773_v53, 0.0  ;;  %v736_v59 = vmul.f32 %v1616_v22, %v592_v54  ;;  %v628_v2 = vpop.f32.mrb[23].mxu0 }
 0x12a   :  { %v376_v60 = vpop.f32.mrb[10].mxu1 }
 0x12b   :  { %836 = vst.msk [vmem:[%s1812_s4 + $0x18] sm:$0xff] %vm832_vm1, %v804_v58  ;;  %v774_v61 = vadd.f32 %v1621_v26, %v736_v59  ;;  %v597_v62 = vadd.f32 %v596_v19, %v376_v60  ;;  %v378_v63 = vpop.f32.mrb[11].mxu1 }
 0x12c   :  { %v631_v9 = vpop.f32.mrb[24].mxu0 }
 0x12d   :  { %v805_v3 = vmax.f32 %v774_v61, 0.0  ;;  %v737_v4 = vmul.f32 %v1616_v22, %v597_v62  ;;  %v633_v10 = vpop.f32.mrb[25].mxu0 }
 0x12e   :  { %v381_v5 = vpop.f32.mrb[12].mxu1 }
 0x12f   :  { %837 = vst.msk [vmem:[%s1812_s4 + $0x20] sm:$0xff] %vm832_vm1, %v805_v3  ;;  %v775_v6 = vadd.f32 %v1621_v26, %v737_v4  ;;  %v602_v7 = vadd.f32 %v601_v25, %v381_v5  ;;  %v383_v8 = vpop.f32.mrb[13].mxu1 }
 0x130   :  { %v636_v17 = vpop.f32.mrb[26].mxu0 }
 0x131   :  { %v806_v11 = vmax.f32 %v775_v6, 0.0  ;;  %v738_v12 = vmul.f32 %v1616_v22, %v602_v7  ;;  %v638_v18 = vpop.f32.mrb[27].mxu0 }
 0x132   :  { %v386_v13 = vpop.f32.mrb[14].mxu1 }
 0x133   :  { %838 = vst.msk [vmem:[%s1812_s4 + $0x28] sm:$0xff] %vm832_vm1, %v806_v11  ;;  %v776_v14 = vadd.f32 %v1621_v26, %v738_v12  ;;  %v607_v15 = vadd.f32 %v606_v32, %v386_v13  ;;  %v388_v16 = vpop.f32.mrb[15].mxu1 }
 0x134   :  { %v641_v27 = vpop.f32.mrb[28].mxu0 }
 0x135   :  { %v807_v19 = vmax.f32 %v776_v14, 0.0  ;;  %v739_v20 = vmul.f32 %v1616_v22, %v607_v15  ;;  %v643_v0 = vpop.f32.mrb[29].mxu0 }
 0x136   :  { %v391_v21 = vpop.f32.mrb[16].mxu1 }
 0x137   :  { %839 = vst.msk [vmem:[%s1812_s4 + $0x30] sm:$0xff] %vm832_vm1, %v807_v19  ;;  %v777_v23 = vadd.f32 %v1621_v26, %v739_v20  ;;  %v612_v24 = vadd.f32 %v611_v40, %v391_v21  ;;  %v393_v25 = vpop.f32.mrb[17].mxu1 }
 0x138   :  { %v646_v34 = vpop.f32.mrb[30].mxu0 }
 0x139   :  { %v808_v28 = vmax.f32 %v777_v23, 0.0  ;;  %v740_v29 = vmul.f32 %v1616_v22, %v612_v24  ;;  %v648_v35 = vpop.f32.mrb[31].mxu0 }
 0x13a   :  { %v396_v30 = vpop.f32.mrb[18].mxu1 }
 0x13b   :  { %840 = vst.msk [vmem:[%s1812_s4 + $0x38] sm:$0xff] %vm832_vm1, %v808_v28  ;;  %v778_v31 = vadd.f32 %v1621_v26, %v740_v29  ;;  %v617_v32 = vadd.f32 %v616_v48, %v396_v30  ;;  %v398_v33 = vpop.f32.mrb[19].mxu1 }
 0x13c   :  { %v651_v42 = vpop.f32.mrb[32].mxu0 }
 0x13d   :  { %v809_v36 = vmax.f32 %v778_v31, 0.0  ;;  %v741_v37 = vmul.f32 %v1616_v22, %v617_v32  ;;  %v653_v43 = vpop.f32.mrb[33].mxu0 }
 0x13e   :  { %v401_v38 = vpop.f32.mrb[20].mxu1 }
 0x13f   :  { %841 = vst.msk [vmem:[%s1812_s4 + $0x40] sm:$0xff] %vm832_vm1, %v809_v36  ;;  %v779_v39 = vadd.f32 %v1621_v26, %v741_v37  ;;  %v622_v40 = vadd.f32 %v621_v56, %v401_v38  ;;  %v403_v41 = vpop.f32.mrb[21].mxu1 }
 0x140   :  { %v656_v50 = vpop.f32.mrb[34].mxu0 }
 0x141   :  { %v810_v44 = vmax.f32 %v779_v39, 0.0  ;;  %v742_v45 = vmul.f32 %v1616_v22, %v622_v40  ;;  %v658_v51 = vpop.f32.mrb[35].mxu0 }
 0x142   :  { %v406_v46 = vpop.f32.mrb[22].mxu1 }
 0x143   :  { %842 = vst.msk [vmem:[%s1812_s4 + $0x48] sm:$0xff] %vm832_vm1, %v810_v44  ;;  %v780_v47 = vadd.f32 %v1621_v26, %v742_v45  ;;  %v627_v48 = vadd.f32 %v626_v1, %v406_v46  ;;  %v408_v49 = vpop.f32.mrb[23].mxu1 }
 0x144   :  { %v661_v58 = vpop.f32.mrb[36].mxu0 }
 0x145   :  { %v811_v52 = vmax.f32 %v780_v47, 0.0  ;;  %v743_v53 = vmul.f32 %v1616_v22, %v627_v48  ;;  %v663_v59 = vpop.f32.mrb[37].mxu0 }
 0x146   :  { %v411_v54 = vpop.f32.mrb[24].mxu1 }
 0x147   :  { %843 = vst.msk [vmem:[%s1812_s4 + $0x50] sm:$0xff] %vm832_vm1, %v811_v52  ;;  %v781_v55 = vadd.f32 %v1621_v26, %v743_v53  ;;  %v632_v56 = vadd.f32 %v631_v9, %v411_v54  ;;  %v413_v57 = vpop.f32.mrb[25].mxu1 }
 0x148   :  { %v666_v3 = vpop.f32.mrb[38].mxu0 }
 0x149   :  { %v812_v60 = vmax.f32 %v781_v55, 0.0  ;;  %v744_v61 = vmul.f32 %v1616_v22, %v632_v56  ;;  %v668_v4 = vpop.f32.mrb[39].mxu0 }
 0x14a   :  { %v416_v62 = vpop.f32.mrb[26].mxu1 }
 0x14b   :  { %844 = vst.msk [vmem:[%s1812_s4 + $0x58] sm:$0xff] %vm832_vm1, %v812_v60  ;;  %v782_v63 = vadd.f32 %v1621_v26, %v744_v61  ;;  %v637_v1 = vadd.f32 %v636_v17, %v416_v62  ;;  %v418_v2 = vpop.f32.mrb[27].mxu1 }
 0x14c   :  { %v671_v11 = vpop.f32.mrb[40].mxu0 }
 0x14d   :  { %v813_v5 = vmax.f32 %v782_v63, 0.0  ;;  %v745_v6 = vmul.f32 %v1616_v22, %v637_v1  ;;  %v673_v12 = vpop.f32.mrb[41].mxu0 }
 0x14e   :  { %v421_v7 = vpop.f32.mrb[28].mxu1 }
 0x14f   :  { %845 = vst.msk [vmem:[%s1812_s4 + $0x60] sm:$0xff] %vm832_vm1, %v813_v5  ;;  %v783_v8 = vadd.f32 %v1621_v26, %v745_v6  ;;  %v642_v9 = vadd.f32 %v641_v27, %v421_v7  ;;  %v423_v10 = vpop.f32.mrb[29].mxu1 }
 0x150   :  { %v676_v19 = vpop.f32.mrb[42].mxu0 }
 0x151   :  { %v814_v13 = vmax.f32 %v783_v8, 0.0  ;;  %v746_v14 = vmul.f32 %v1616_v22, %v642_v9  ;;  %v678_v20 = vpop.f32.mrb[43].mxu0 }
 0x152   :  { %v426_v15 = vpop.f32.mrb[30].mxu1 }
 0x153   :  { %846 = vst.msk [vmem:[%s1812_s4 + $0x68] sm:$0xff] %vm832_vm1, %v814_v13  ;;  %v784_v16 = vadd.f32 %v1621_v26, %v746_v14  ;;  %v647_v17 = vadd.f32 %v646_v34, %v426_v15  ;;  %v428_v18 = vpop.f32.mrb[31].mxu1 }
 0x154   :  { %v681_v28 = vpop.f32.mrb[44].mxu0 }
 0x155   :  { %v815_v21 = vmax.f32 %v784_v16, 0.0  ;;  %v747_v23 = vmul.f32 %v1616_v22, %v647_v17  ;;  %v683_v29 = vpop.f32.mrb[45].mxu0 }
 0x156   :  { %v431_v24 = vpop.f32.mrb[32].mxu1 }
 0x157   :  { %847 = vst.msk [vmem:[%s1812_s4 + $0x70] sm:$0xff] %vm832_vm1, %v815_v21  ;;  %v785_v25 = vadd.f32 %v1621_v26, %v747_v23  ;;  %v652_v27 = vadd.f32 %v651_v42, %v431_v24  ;;  %v433_v0 = vpop.f32.mrb[33].mxu1 }
 0x158   :  { %v686_v36 = vpop.f32.mrb[46].mxu0 }
 0x159   :  { %v816_v30 = vmax.f32 %v785_v25, 0.0  ;;  %v748_v31 = vmul.f32 %v1616_v22, %v652_v27  ;;  %v688_v37 = vpop.f32.mrb[47].mxu0 }
 0x15a   :  { %v436_v32 = vpop.f32.mrb[34].mxu1 }
 0x15b   :  { %848 = vst.msk [vmem:[%s1812_s4 + $0x78] sm:$0xff] %vm832_vm1, %v816_v30  ;;  %v786_v33 = vadd.f32 %v1621_v26, %v748_v31  ;;  %v657_v34 = vadd.f32 %v656_v50, %v436_v32  ;;  %v438_v35 = vpop.f32.mrb[35].mxu1 }
 0x15c   :  { %v691_v44 = vpop.f32.mrb[48].mxu0 }
 0x15d   :  { %v817_v38 = vmax.f32 %v786_v33, 0.0  ;;  %v749_v39 = vmul.f32 %v1616_v22, %v657_v34  ;;  %v693_v45 = vpop.f32.mrb[49].mxu0 }
 0x15e   :  { %v441_v40 = vpop.f32.mrb[36].mxu1 }
 0x15f   :  { %849 = vst.msk [vmem:[%s1812_s4 + $0x80] sm:$0xff] %vm832_vm1, %v817_v38  ;;  %v787_v41 = vadd.f32 %v1621_v26, %v749_v39  ;;  %v662_v42 = vadd.f32 %v661_v58, %v441_v40  ;;  %v443_v43 = vpop.f32.mrb[37].mxu1 }
 0x160   :  { %v696_v52 = vpop.f32.mrb[50].mxu0 }
 0x161   :  { %v818_v46 = vmax.f32 %v787_v41, 0.0  ;;  %v750_v47 = vmul.f32 %v1616_v22, %v662_v42  ;;  %v698_v53 = vpop.f32.mrb[51].mxu0 }
 0x162   :  { %v446_v48 = vpop.f32.mrb[38].mxu1 }
 0x163   :  { %850 = vst.msk [vmem:[%s1812_s4 + $0x88] sm:$0xff] %vm832_vm1, %v818_v46  ;;  %v788_v49 = vadd.f32 %v1621_v26, %v750_v47  ;;  %v667_v50 = vadd.f32 %v666_v3, %v446_v48  ;;  %v448_v51 = vpop.f32.mrb[39].mxu1 }
 0x164   :  { %v701_v60 = vpop.f32.mrb[52].mxu0 }
 0x165   :  { %v819_v54 = vmax.f32 %v788_v49, 0.0  ;;  %v751_v55 = vmul.f32 %v1616_v22, %v667_v50  ;;  %v703_v61 = vpop.f32.mrb[53].mxu0 }
 0x166   :  { %v451_v56 = vpop.f32.mrb[40].mxu1 }
 0x167   :  { %851 = vst.msk [vmem:[%s1812_s4 + $0x90] sm:$0xff] %vm832_vm1, %v819_v54  ;;  %v789_v57 = vadd.f32 %v1621_v26, %v751_v55  ;;  %v672_v58 = vadd.f32 %v671_v11, %v451_v56  ;;  %v453_v59 = vpop.f32.mrb[41].mxu1 }
 0x168   :  { %v706_v5 = vpop.f32.mrb[54].mxu0 }
 0x169   :  { %v820_v62 = vmax.f32 %v789_v57, 0.0  ;;  %v752_v63 = vmul.f32 %v1616_v22, %v672_v58  ;;  %v708_v6 = vpop.f32.mrb[55].mxu0 }
 0x16a   :  { %v456_v1 = vpop.f32.mrb[42].mxu1 }
 0x16b   :  { %852 = vst.msk [vmem:[%s1812_s4 + $0x98] sm:$0xff] %vm832_vm1, %v820_v62  ;;  %v790_v2 = vadd.f32 %v1621_v26, %v752_v63  ;;  %v677_v3 = vadd.f32 %v676_v19, %v456_v1  ;;  %v458_v4 = vpop.f32.mrb[43].mxu1 }
 0x16c   :  { %v711_v13 = vpop.f32.mrb[56].mxu0 }
 0x16d   :  { %v821_v7 = vmax.f32 %v790_v2, 0.0  ;;  %v753_v8 = vmul.f32 %v1616_v22, %v677_v3  ;;  %v713_v14 = vpop.f32.mrb[57].mxu0 }
 0x16e   :  { %v461_v9 = vpop.f32.mrb[44].mxu1 }
 0x16f   :  { %853 = vst.msk [vmem:[%s1812_s4 + $0xa0] sm:$0xff] %vm832_vm1, %v821_v7  ;;  %v791_v10 = vadd.f32 %v1621_v26, %v753_v8  ;;  %v682_v11 = vadd.f32 %v681_v28, %v461_v9  ;;  %v463_v12 = vpop.f32.mrb[45].mxu1 }
 0x170   :  { %v716_v21 = vpop.f32.mrb[58].mxu0 }
 0x171   :  { %v822_v15 = vmax.f32 %v791_v10, 0.0  ;;  %v754_v16 = vmul.f32 %v1616_v22, %v682_v11  ;;  %v718_v23 = vpop.f32.mrb[59].mxu0 }
 0x172   :  { %v466_v17 = vpop.f32.mrb[46].mxu1 }
 0x173   :  { %854 = vst.msk [vmem:[%s1812_s4 + $0xa8] sm:$0xff] %vm832_vm1, %v822_v15  ;;  %v792_v18 = vadd.f32 %v1621_v26, %v754_v16  ;;  %v687_v19 = vadd.f32 %v686_v36, %v466_v17  ;;  %v468_v20 = vpop.f32.mrb[47].mxu1 }
 0x174   :  { %v721_v30 = vpop.f32.mrb[60].mxu0 }
 0x175   :  { %v823_v24 = vmax.f32 %v792_v18, 0.0  ;;  %v755_v25 = vmul.f32 %v1616_v22, %v687_v19  ;;  %v723_v31 = vpop.f32.mrb[61].mxu0 }
 0x176   :  { %v471_v27 = vpop.f32.mrb[48].mxu1 }
 0x177   :  { %855 = vst.msk [vmem:[%s1812_s4 + $0xb0] sm:$0xff] %vm832_vm1, %v823_v24  ;;  %v793_v0 = vadd.f32 %v1621_v26, %v755_v25  ;;  %v692_v28 = vadd.f32 %v691_v44, %v471_v27  ;;  %v473_v29 = vpop.f32.mrb[49].mxu1 }
 0x179   :  { %v824_v32 = vmax.f32 %v793_v0, 0.0  ;;  %v756_v33 = vmul.f32 %v1616_v22, %v692_v28 }
 0x17a   :  { %v476_v34 = vpop.f32.mrb[50].mxu1 }
 0x17b   :  { %856 = vst.msk [vmem:[%s1812_s4 + $0xb8] sm:$0xff] %vm832_vm1, %v824_v32  ;;  %v794_v35 = vadd.f32 %v1621_v26, %v756_v33  ;;  %v697_v36 = vadd.f32 %v696_v52, %v476_v34  ;;  %v478_v37 = vpop.f32.mrb[51].mxu1 }
 0x17d   :  { %v825_v38 = vmax.f32 %v794_v35, 0.0  ;;  %v757_v39 = vmul.f32 %v1616_v22, %v697_v36 }
 0x17e   :  { %v481_v40 = vpop.f32.mrb[52].mxu1 }
 0x17f   :  { %857 = vst.msk [vmem:[%s1812_s4 + $0xc0] sm:$0xff] %vm832_vm1, %v825_v38  ;;  %v795_v41 = vadd.f32 %v1621_v26, %v757_v39  ;;  %v702_v42 = vadd.f32 %v701_v60, %v481_v40  ;;  %v483_v43 = vpop.f32.mrb[53].mxu1 }
 0x181   :  { %v826_v44 = vmax.f32 %v795_v41, 0.0  ;;  %v758_v45 = vmul.f32 %v1616_v22, %v702_v42 }
 0x182   :  { %v486_v46 = vpop.f32.mrb[54].mxu1 }
 0x183   :  { %858 = vst.msk [vmem:[%s1812_s4 + $0xc8] sm:$0xff] %vm832_vm1, %v826_v44  ;;  %v796_v47 = vadd.f32 %v1621_v26, %v758_v45  ;;  %v707_v48 = vadd.f32 %v706_v5, %v486_v46  ;;  %v488_v49 = vpop.f32.mrb[55].mxu1 }
 0x185   :  { %v827_v50 = vmax.f32 %v796_v47, 0.0  ;;  %v759_v51 = vmul.f32 %v1616_v22, %v707_v48 }
 0x186   :  { %v491_v52 = vpop.f32.mrb[56].mxu1 }
 0x187   :  { %859 = vst.msk [vmem:[%s1812_s4 + $0xd0] sm:$0xff] %vm832_vm1, %v827_v50  ;;  %v797_v53 = vadd.f32 %v1621_v26, %v759_v51  ;;  %v712_v54 = vadd.f32 %v711_v13, %v491_v52  ;;  %v493_v55 = vpop.f32.mrb[57].mxu1 }
 0x189   :  { %v828_v56 = vmax.f32 %v797_v53, 0.0  ;;  %v760_v57 = vmul.f32 %v1616_v22, %v712_v54 }
 0x18a   :  { %v496_v58 = vpop.f32.mrb[58].mxu1 }
 0x18b   :  { %860 = vst.msk [vmem:[%s1812_s4 + $0xd8] sm:$0xff] %vm832_vm1, %v828_v56  ;;  %v798_v59 = vadd.f32 %v1621_v26, %v760_v57  ;;  %v717_v60 = vadd.f32 %v716_v21, %v496_v58  ;;  %v498_v61 = vpop.f32.mrb[59].mxu1 }
 0x18d   :  { %v829_v62 = vmax.f32 %v798_v59, 0.0  ;;  %v761_v63 = vmul.f32 %v1616_v22, %v717_v60 }
 0x18e   :  { %v501_v1 = vpop.f32.mrb[60].mxu1 }
 0x18f   :  { %861 = vst.msk [vmem:[%s1812_s4 + $0xe0] sm:$0xff] %vm832_vm1, %v829_v62  ;;  %v799_v2 = vadd.f32 %v1621_v26, %v761_v63  ;;  %v722_v3 = vadd.f32 %v721_v30, %v501_v1  ;;  %v503_v4 = vpop.f32.mrb[61].mxu1 }
 0x191   :  { %v830_v5 = vmax.f32 %v799_v2, 0.0  ;;  %v762_v6 = vmul.f32 %v1616_v22, %v722_v3 }
 0x193   :  { %862 = vst.msk [vmem:[%s1812_s4 + $0xe8] sm:$0xff] %vm832_vm1, %v830_v5  ;;  %v800_v7 = vadd.f32 %v1621_v26, %v762_v6 }
 0x195   :  { %v831_v8 = vmax.f32 %v800_v7, 0.0 }
 0x197   :  { %864 = vst.msk [vmem:[%s1812_s4 + $0xf0] sm:$0x3] %vm863_vm2, %v831_v8 }

// kernel: forward_pallas.7
= control target key start
LH: loop header
LB: loop body
LE: loop exit
PB: predicated region body
PF: predicated region fallthrough
CT: control target
= control target key end

     0   :  { %v542_v3 = vmov 0.0|0.0   ;;  %vm543_vm0 = vmmov 0   ;;  %v544_v4 = vmov 0.0   ;;  %vm80_vm1 = vcmask 261120   ;;  %s850_s1 = inlined_call_operand.vmem [shape: f32[288,64], index: 1, kind: input, shape index: {}]   ;;  %s851_s0 = inlined_call_operand.vmem [shape: f32[72,288], index: 0, kind: input, shape index: {}]   ;;  %s852_s2 = inlined_call_operand.vmem [shape: f32[1,64], index: 2, kind: input, shape index: {}]   ;;  %s853_s3 = inlined_call_operand.vmem [shape: f32[1,64], index: 3, kind: input, shape index: {}]   ;;  %s854_s4 = inlined_call_operand.vmem [shape: f32[72,64], index: 4, kind: output, shape index: {}]  }
   0x1   :  { %v60_v0 = vld [vmem:[%s850_s1 + $0x80] sm:$0xff]  ;;  %v61_v1 = vld [vmem:[%s850_s1 + $0x88] sm:$0xff]  ;;  %533 = vmatprep.subr.bf16.mxu1 %v542_v3  ;;  %474 = vmatprep.mubr.msk.f32.mxu1 %vm543_vm0, %v544_v4  ;;  %v62_v7 = vld [vmem:[%s850_s1 + $0x90] sm:$0xff]  ;;  %vm369_vm2 = vcmask 523264  }
   0x2   :  { %v44_v2 = vld [vmem:[%s850_s1] sm:$0xff]  ;;  %v501_v5 = vpack.c.bf16 %v61_v1, %v60_v0  ;;  %v45_v6 = vld [vmem:[%s850_s1 + $0x8] sm:$0xff]  ;;  %v63_v8 = vld [vmem:[%s850_s1 + $0x98] sm:$0xff] }
   0x3   :  { %v503_v9 = vpack.c.bf16 %v45_v6, %v44_v2  ;;  %v505_v10 = vpack.c.bf16 %v63_v8, %v62_v7  ;;  %v46_v11 = vld [vmem:[%s850_s1 + $0x10] sm:$0xff]  ;;  %v47_v12 = vld [vmem:[%s850_s1 + $0x18] sm:$0xff]  ;;  %v64_v13 = vld [vmem:[%s850_s1 + $0xa0] sm:$0xff] }
   0x4   :  { %502 = vmatprep.subr.bf16.mxu0 %v501_v5  ;;  %v65_v14 = vld [vmem:[%s850_s1 + $0xa8] sm:$0xff]  ;;  %v507_v15 = vpack.c.bf16 %v47_v12, %v46_v11  ;;  %v48_v17 = vld [vmem:[%s850_s1 + $0x20] sm:$0xff]  ;;  %v66_v19 = vld [vmem:[%s850_s1 + $0xb0] sm:$0xff] }
   0x5   :  { %504 = vmatpush3.bf16.msra.mxu0 %v503_v9  ;;  %v509_v16 = vpack.c.bf16 %v65_v14, %v64_v13  ;;  %v49_v18 = vld [vmem:[%s850_s1 + $0x28] sm:$0xff]  ;;  %v67_v20 = vld [vmem:[%s850_s1 + $0xb8] sm:$0xff]  ;;  %v50_v22 = vld [vmem:[%s850_s1 + $0x30] sm:$0xff] }
   0x6   :  { %506 = vmatprep.subr.bf16.mxu0 %v505_v10  ;;  %v511_v21 = vpack.c.bf16 %v49_v18, %v48_v17  ;;  %v513_v23 = vpack.c.bf16 %v67_v20, %v66_v19  ;;  %v51_v24 = vld [vmem:[%s850_s1 + $0x38] sm:$0xff]  ;;  %v76_v25 = vld [vmem:[%s850_s1 + $0x100] sm:$0xff]  ;;  %v77_v26 = vld [vmem:[%s850_s1 + $0x108] sm:$0xff] }
   0x7   :  { %v68_v27 = vld [vmem:[%s850_s1 + $0xc0] sm:$0xff]  ;;  %v69_v28 = vld [vmem:[%s850_s1 + $0xc8] sm:$0xff]  ;;  %v534_v29 = vpack.c.bf16 %v77_v26, %v76_v25  ;;  %v78_v31 = vld [vmem:[%s850_s1 + $0x110] sm:$0xff]  ;;  %v515_v32 = vpack.c.bf16 %v51_v24, %v50_v22 }
   0x8   :  { %v18_v30 = vld [vmem:[%s851_s0 + $0x8] sm:$0xff]  ;;  %v79_v33 = vld [vmem:[%s850_s1 + $0x118] sm:$0xff]  ;;  %v517_v34 = vpack.c.bf16 %v69_v28, %v68_v27  ;;  %v52_v35 = vld [vmem:[%s850_s1 + $0x40] sm:$0xff] }
   0x9   :  { %508 = vmatpush3.bf16.msra.mxu0 %v507_v15  ;;  %535 = vmatpush3.bf16.msra.mxu1 %v534_v29  ;;  %v53_v36 = vld [vmem:[%s850_s1 + $0x48] sm:$0xff]  ;;  %v537_v37 = vpack.c.bf16 %v79_v33, %v78_v31  ;;  %v70_v38 = vld [vmem:[%s850_s1 + $0xd0] sm:$0xff]  ;;  %v71_v39 = vld [vmem:[%s850_s1 + $0xd8] sm:$0xff] }
   0xa   :  { %510 = vmatprep.subr.bf16.mxu0 %v509_v16  ;;  %536 = vmatprep.subr.bf16.mxu1 %v542_v3  ;;  %v519_v40 = vpack.c.bf16 %v53_v36, %v52_v35  ;;  %v19_v41 = vld [vmem:[%s851_s0 + $0x10] sm:$0xff]  ;;  %v521_v42 = vpack.c.bf16 %v71_v39, %v70_v38  ;;  %v55_v44 = vld [vmem:[%s850_s1 + $0x58] sm:$0xff]  ;;  %v72_v45 = vld [vmem:[%s850_s1 + $0xe0] sm:$0xff] }
   0xb   :  { %172 = vmatprep.mubr.f32.mxu0 %v18_v30  ;;  %v54_v43 = vld [vmem:[%s850_s1 + $0x50] sm:$0xff]  ;;  %v73_v46 = vld [vmem:[%s850_s1 + $0xe8] sm:$0xff]  ;;  %v56_v50 = vld [vmem:[%s850_s1 + $0x60] sm:$0xff] }
   0xc   :  { %v523_v47 = vpack.c.bf16 %v55_v44, %v54_v43  ;;  %v22_v48 = vld [vmem:[%s851_s0 + $0x28] sm:$0xff]  ;;  %v525_v49 = vpack.c.bf16 %v73_v46, %v72_v45  ;;  %v74_v52 = vld [vmem:[%s850_s1 + $0xf0] sm:$0xff]  ;;  %v75_v53 = vld [vmem:[%s850_s1 + $0xf8] sm:$0xff] }
   0xd   :  { %512 = vmatpush3.bf16.msra.mxu0 %v511_v21  ;;  %538 = vmatpush3.bf16.msra.mxu1 %v537_v37  ;;  %v57_v51 = vld [vmem:[%s850_s1 + $0x68] sm:$0xff]  ;;  %v25_v55 = vld [vmem:[%s851_s0 + $0x40] sm:$0xff]  ;;  %v529_v56 = vpack.c.bf16 %v75_v53, %v74_v52  ;;  %v58_v57 = vld [vmem:[%s850_s1 + $0x70] sm:$0xff] }
   0xe   :  { %514 = vmatprep.subr.bf16.mxu0 %v513_v23  ;;  %v527_v54 = vpack.c.bf16 %v57_v51, %v56_v50  ;;  %v59_v58 = vld [vmem:[%s850_s1 + $0x78] sm:$0xff]  ;;  %v17_v61 = vld [vmem:[%s851_s0] sm:$0xff]  ;;  %v31_v62 = vld [vmem:[%s851_s0 + $0x70] sm:$0xff] }
   0xf   :  { %v531_v59 = vpack.c.bf16 %v59_v58, %v58_v57  ;;  %v28_v60 = vld [vmem:[%s851_s0 + $0x58] sm:$0xff]  ;;  %v21_v63 = vld [vmem:[%s851_s0 + $0x20] sm:$0xff]  ;;  %v34_v1 = vld [vmem:[%s851_s0 + $0x88] sm:$0xff] }
  0x10   :  { %475 = vmatmul.mubr.msk.f32.vlgmr.msra.gmra.mrb[0].mxu1 %vm80_vm1, %v19_v41  ;;  %v20_v0 = vld [vmem:[%s851_s0 + $0x18] sm:$0xff]  ;;  %v23_v3 = vld [vmem:[%s851_s0 + $0x30] sm:$0xff]  ;;  %v37_v5 = vld [vmem:[%s851_s0 + $0xa0] sm:$0xff] }
  0x11   :  { %516 = vmatpush3.bf16.msra.mxu0 %v515_v32  ;;  %477 = vmatprep.mubr.msk.f32.mxu1 %vm543_vm0, %v544_v4  ;;  %v24_v2 = vld [vmem:[%s851_s0 + $0x38] sm:$0xff]  ;;  %v27_v6 = vld [vmem:[%s851_s0 + $0x50] sm:$0xff]  ;;  %v26_v7 = vld [vmem:[%s851_s0 + $0x48] sm:$0xff] }
  0x12   :  { %518 = vmatprep.subr.bf16.mxu0 %v517_v34  ;;  %v40_v8 = vld [vmem:[%s851_s0 + $0xb8] sm:$0xff]  ;;  %v30_v9 = vld [vmem:[%s851_s0 + $0x68] sm:$0xff]  ;;  %v29_v10 = vld [vmem:[%s851_s0 + $0x60] sm:$0xff] }
  0x13   :  { %v43_v11 = vld [vmem:[%s851_s0 + $0xd0] sm:$0xff]  ;;  %v33_v12 = vld [vmem:[%s851_s0 + $0x80] sm:$0xff]  ;;  %v32_v13 = vld [vmem:[%s851_s0 + $0x78] sm:$0xff] }
  0x14   :  { %478 = vmatmul.mubr.msk.f32.gmra.mrb[2].mxu1 %vm80_vm1, %v22_v48  ;;  %v35_v14 = vld [vmem:[%s851_s0 + $0x90] sm:$0xff]  ;;  %v38_v16 = vld [vmem:[%s851_s0 + $0xa8] sm:$0xff]  ;;  %v41_v18 = vld [vmem:[%s851_s0 + $0xc0] sm:$0xff] }
  0x15   :  { %520 = vmatpush3.bf16.msra.mxu0 %v519_v40  ;;  %480 = vmatprep.mubr.msk.f32.mxu1 %vm543_vm0, %v544_v4  ;;  %v39_v15 = vld [vmem:[%s851_s0 + $0xb0] sm:$0xff]  ;;  %v42_v17 = vld [vmem:[%s851_s0 + $0xc8] sm:$0xff]  ;;  %v789_v32 = vld [vmem:[%s852_s2] ss:$0 sm:$0xff] }
  0x16   :  { %522 = vmatprep.subr.bf16.mxu0 %v521_v42  ;;  %v794_v36 = vld [vmem:[%s853_s3] ss:$0 sm:$0xff] }
  0x18   :  { %481 = vmatmul.mubr.msk.f32.gmra.mrb[4].mxu1 %vm80_vm1, %v25_v55 }
  0x19   :  { %524 = vmatpush3.bf16.msra.mxu0 %v523_v47  ;;  %483 = vmatprep.mubr.msk.f32.mxu1 %vm543_vm0, %v544_v4 }
  0x1a   :  { %526 = vmatprep.subr.bf16.mxu0 %v525_v49 }
  0x1c   :  { %484 = vmatmul.mubr.msk.f32.gmra.mrb[6].mxu1 %vm80_vm1, %v28_v60 }
  0x1d   :  { %528 = vmatpush3.bf16.msra.mxu0 %v527_v54  ;;  %486 = vmatprep.mubr.msk.f32.mxu1 %vm543_vm0, %v544_v4 }
  0x1e   :  { %530 = vmatprep.subr.bf16.mxu0 %v529_v56 }
  0x20   :  { %487 = vmatmul.mubr.msk.f32.gmra.mrb[8].mxu1 %vm80_vm1, %v31_v62 }
  0x21   :  { %532 = vmatpush3.bf16.msra.mxu0 %v531_v59  ;;  %489 = vmatprep.mubr.msk.f32.mxu1 %vm543_vm0, %v544_v4 }
  0x24   :  { %173 = vmatmul.mubr.f32.vlgmr.msra.gmra.mrb[0].mxu0 %v17_v61  ;;  %490 = vmatmul.mubr.msk.f32.gmra.mrb[10].mxu1 %vm80_vm1, %v34_v1 }
  0x25   :  { %177 = vmatprep.mubr.f32.mxu0 %v21_v63  ;;  %492 = vmatprep.mubr.msk.f32.mxu1 %vm543_vm0, %v544_v4 }
  0x28   :  { %178 = vmatmul.mubr.f32.gmra.mrb[2].mxu0 %v20_v0  ;;  %493 = vmatmul.mubr.msk.f32.gmra.mrb[12].mxu1 %vm80_vm1, %v37_v5 }
  0x29   :  { %182 = vmatprep.mubr.f32.mxu0 %v24_v2  ;;  %495 = vmatprep.mubr.msk.f32.mxu1 %vm543_vm0, %v544_v4 }
  0x2c   :  { %183 = vmatmul.mubr.f32.gmra.mrb[4].mxu0 %v23_v3  ;;  %496 = vmatmul.mubr.msk.f32.gmra.mrb[14].mxu1 %vm80_vm1, %v40_v8 }
  0x2d   :  { %187 = vmatprep.mubr.f32.mxu0 %v27_v6  ;;  %498 = vmatprep.mubr.msk.f32.mxu1 %vm543_vm0, %v544_v4  ;;  %v36_v4 = vld [vmem:[%s851_s0 + $0x98] sm:$0xff] }
  0x30   :  { %188 = vmatmul.mubr.f32.gmra.mrb[6].mxu0 %v26_v7  ;;  %499 = vmatmul.mubr.msk.f32.gmra.mrb[16].mxu1 %vm80_vm1, %v43_v11 }
  0x31   :  { %192 = vmatprep.mubr.f32.mxu0 %v30_v9 }
  0x34   :  { %193 = vmatmul.mubr.f32.gmra.mrb[8].mxu0 %v29_v10 }
  0x35   :  { %197 = vmatprep.mubr.f32.mxu0 %v33_v12 }
  0x38   :  { %198 = vmatmul.mubr.f32.gmra.mrb[10].mxu0 %v32_v13 }
  0x39   :  { %202 = vmatprep.mubr.f32.mxu0 %v36_v4 }
  0x3c   :  { %203 = vmatmul.mubr.f32.gmra.mrb[12].mxu0 %v35_v14 }
  0x3d   :  { %207 = vmatprep.mubr.f32.mxu0 %v39_v15 }
  0x40   :  { %208 = vmatmul.mubr.f32.gmra.mrb[14].mxu0 %v38_v16 }
  0x41   :  { %212 = vmatprep.mubr.f32.mxu0 %v42_v17 }
  0x44   :  { %213 = vmatmul.mubr.f32.gmra.mrb[16].mxu0 %v41_v18 }
  0xe3   :  { %v284_v19 = vpop.f32.mrb[0].mxu1 }
  0xe4   :  { %v476_v20 = vpop.f32.mrb[1].mxu1 }
  0xe7   :  { %v289_v21 = vpop.f32.mrb[2].mxu1 }
  0xe8   :  { %v479_v22 = vpop.f32.mrb[3].mxu1 }
  0xeb   :  { %v294_v23 = vpop.f32.mrb[4].mxu1 }
  0xec   :  { %v482_v24 = vpop.f32.mrb[5].mxu1 }
  0xef   :  { %v299_v25 = vpop.f32.mrb[6].mxu1 }
  0xf0   :  { %v485_v26 = vpop.f32.mrb[7].mxu1 }
  0xf3   :  { %v304_v28 = vpop.f32.mrb[8].mxu1 }
  0xf4   :  { %v488_v30 = vpop.f32.mrb[9].mxu1 }
  0xf7   :  { %v426_v27 = vpop.f32.mrb[0].mxu0  ;;  %v309_v35 = vpop.f32.mrb[10].mxu1 }
  0xf8   :  { %v427_v29 = vpop.f32.mrb[1].mxu0  ;;  %v491_v38 = vpop.f32.mrb[11].mxu1 }
  0xf9   :  { %v428_v31 = vadd.f32 %v427_v29, %v426_v27 }
  0xfb   :  { %v285_v33 = vadd.f32 %v428_v31, %v284_v19  ;;  %v429_v34 = vpop.f32.mrb[2].mxu0  ;;  %v314_v44 = vpop.f32.mrb[12].mxu1 }
  0xfc   :  { %v430_v37 = vpop.f32.mrb[3].mxu0  ;;  %v494_v46 = vpop.f32.mrb[13].mxu1 }
  0xfd   :  { %v335_v39 = vmul.f32 %v789_v32, %v285_v33  ;;  %v431_v40 = vadd.f32 %v430_v37, %v429_v34 }
  0xff   :  { %v351_v41 = vadd.f32 %v794_v36, %v335_v39  ;;  %v290_v42 = vadd.f32 %v431_v40, %v289_v21  ;;  %v432_v43 = vpop.f32.mrb[4].mxu0  ;;  %v319_v53 = vpop.f32.mrb[14].mxu1 }
 0x100   :  { %v433_v45 = vpop.f32.mrb[5].mxu0  ;;  %v497_v55 = vpop.f32.mrb[15].mxu1 }
 0x101   :  { %v360_v47 = vmax.f32 %v351_v41, 0.0  ;;  %v336_v48 = vmul.f32 %v789_v32, %v290_v42  ;;  %v434_v49 = vadd.f32 %v433_v45, %v432_v43 }
 0x103   :  { %370 = vst.msk [vmem:[%s854_s4] sm:$0xff] %vm369_vm2, %v360_v47  ;;  %v352_v50 = vadd.f32 %v794_v36, %v336_v48  ;;  %v295_v51 = vadd.f32 %v434_v49, %v294_v23  ;;  %v435_v52 = vpop.f32.mrb[6].mxu0  ;;  %v324_v62 = vpop.f32.mrb[16].mxu1 }
 0x104   :  { %v436_v54 = vpop.f32.mrb[7].mxu0  ;;  %v500_v0 = vpop.f32.mrb[17].mxu1 }
 0x105   :  { %v361_v56 = vmax.f32 %v352_v50, 0.0  ;;  %v337_v57 = vmul.f32 %v789_v32, %v295_v51  ;;  %v437_v58 = vadd.f32 %v436_v54, %v435_v52 }
 0x107   :  { %371 = vst.msk [vmem:[%s854_s4 + $0x8] sm:$0xff] %vm369_vm2, %v361_v56  ;;  %v353_v59 = vadd.f32 %v794_v36, %v337_v57  ;;  %v300_v60 = vadd.f32 %v437_v58, %v299_v25  ;;  %v438_v61 = vpop.f32.mrb[8].mxu0 }
 0x108   :  { %v439_v63 = vpop.f32.mrb[9].mxu0 }
 0x109   :  { %v362_v1 = vmax.f32 %v353_v59, 0.0  ;;  %v338_v2 = vmul.f32 %v789_v32, %v300_v60  ;;  %v440_v3 = vadd.f32 %v439_v63, %v438_v61 }
 0x10b   :  { %372 = vst.msk [vmem:[%s854_s4 + $0x10] sm:$0xff] %vm369_vm2, %v362_v1  ;;  %v354_v5 = vadd.f32 %v794_v36, %v338_v2  ;;  %v305_v6 = vadd.f32 %v440_v3, %v304_v28  ;;  %v441_v7 = vpop.f32.mrb[10].mxu0 }
 0x10c   :  { %v442_v8 = vpop.f32.mrb[11].mxu0 }
 0x10d   :  { %v363_v9 = vmax.f32 %v354_v5, 0.0  ;;  %v339_v10 = vmul.f32 %v789_v32, %v305_v6  ;;  %v443_v11 = vadd.f32 %v442_v8, %v441_v7 }
 0x10f   :  { %373 = vst.msk [vmem:[%s854_s4 + $0x18] sm:$0xff] %vm369_vm2, %v363_v9  ;;  %v355_v12 = vadd.f32 %v794_v36, %v339_v10  ;;  %v310_v13 = vadd.f32 %v443_v11, %v309_v35  ;;  %v444_v4 = vpop.f32.mrb[12].mxu0 }
 0x110   :  { %v445_v14 = vpop.f32.mrb[13].mxu0 }
 0x111   :  { %v364_v15 = vmax.f32 %v355_v12, 0.0  ;;  %v340_v16 = vmul.f32 %v789_v32, %v310_v13  ;;  %v446_v17 = vadd.f32 %v445_v14, %v444_v4 }
 0x113   :  { %374 = vst.msk [vmem:[%s854_s4 + $0x20] sm:$0xff] %vm369_vm2, %v364_v15  ;;  %v356_v18 = vadd.f32 %v794_v36, %v340_v16  ;;  %v315_v19 = vadd.f32 %v446_v17, %v314_v44  ;;  %v447_v20 = vpop.f32.mrb[14].mxu0 }
 0x114   :  { %v448_v21 = vpop.f32.mrb[15].mxu0 }
 0x115   :  { %v365_v22 = vmax.f32 %v356_v18, 0.0  ;;  %v341_v23 = vmul.f32 %v789_v32, %v315_v19  ;;  %v449_v24 = vadd.f32 %v448_v21, %v447_v20 }
 0x117   :  { %375 = vst.msk [vmem:[%s854_s4 + $0x28] sm:$0xff] %vm369_vm2, %v365_v22  ;;  %v357_v25 = vadd.f32 %v794_v36, %v341_v23  ;;  %v320_v26 = vadd.f32 %v449_v24, %v319_v53  ;;  %v450_v27 = vpop.f32.mrb[16].mxu0 }
 0x118   :  { %v451_v28 = vpop.f32.mrb[17].mxu0 }
 0x119   :  { %v366_v29 = vmax.f32 %v357_v25, 0.0  ;;  %v342_v30 = vmul.f32 %v789_v32, %v320_v26  ;;  %v452_v31 = vadd.f32 %v451_v28, %v450_v27 }
 0x11b   :  { %376 = vst.msk [vmem:[%s854_s4 + $0x30] sm:$0xff] %vm369_vm2, %v366_v29  ;;  %v358_v33 = vadd.f32 %v794_v36, %v342_v30  ;;  %v325_v34 = vadd.f32 %v452_v31, %v324_v62 }
 0x11d   :  { %v367_v35 = vmax.f32 %v358_v33, 0.0  ;;  %v343_v37 = vmul.f32 %v789_v32, %v325_v34 }
 0x11f   :  { %377 = vst.msk [vmem:[%s854_s4 + $0x38] sm:$0xff] %vm369_vm2, %v367_v35  ;;  %v359_v38 = vadd.f32 %v794_v36, %v343_v37 }
 0x121   :  { %v368_v39 = vmax.f32 %v359_v38, 0.0 }
 0x123   :  { %378 = vst.msk [vmem:[%s854_s4 + $0x40] sm:$0xff] %vm369_vm2, %v368_v39 }

// kernel: forward_pallas.8
= control target key start
LH: loop header
LB: loop body
LE: loop exit
PB: predicated region body
PF: predicated region fallthrough
CT: control target
= control target key end

     0   :  { %vm823_vm0 = vmmov 0   ;;  %vm134_vm1 = vcmask 523264   ;;  %s1270_s1 = inlined_call_operand.vmem [shape: f32[576,64], index: 1, kind: input, shape index: {}]   ;;  %s1271_s0 = inlined_call_operand.vmem [shape: f32[72,576], index: 0, kind: input, shape index: {}]   ;;  %s1272_s2 = inlined_call_operand.vmem [shape: f32[1,64], index: 2, kind: input, shape index: {}]   ;;  %s1273_s3 = inlined_call_operand.vmem [shape: f32[1,64], index: 3, kind: input, shape index: {}]   ;;  %s1274_s4 = inlined_call_operand.vmem [shape: f32[72,64], index: 4, kind: output, shape index: {}]  }
   0x1   :  { %v78_v0 = vld [vmem:[%s1270_s1 + $0x80] sm:$0xff]  ;;  %v79_v1 = vld [vmem:[%s1270_s1 + $0x88] sm:$0xff]  ;;  %v80_v11 = vld [vmem:[%s1270_s1 + $0x90] sm:$0xff] }
   0x2   :  { %v110_v2 = vld [vmem:[%s1270_s1 + $0x180] sm:$0xff]  ;;  %v735_v3 = vpack.c.bf16 %v79_v1, %v78_v0  ;;  %v111_v4 = vld [vmem:[%s1270_s1 + $0x188] sm:$0xff]  ;;  %v81_v13 = vld [vmem:[%s1270_s1 + $0x98] sm:$0xff] }
   0x3   :  { %v62_v5 = vld [vmem:[%s1270_s1] sm:$0xff]  ;;  %v63_v6 = vld [vmem:[%s1270_s1 + $0x8] sm:$0xff]  ;;  %v767_v7 = vpack.c.bf16 %v111_v4, %v110_v2  ;;  %v112_v14 = vld [vmem:[%s1270_s1 + $0x190] sm:$0xff]  ;;  %v739_v16 = vpack.c.bf16 %v81_v13, %v80_v11 }
   0x4   :  { %v737_v8 = vpack.c.bf16 %v63_v6, %v62_v5  ;;  %v94_v9 = vld [vmem:[%s1270_s1 + $0x100] sm:$0xff]  ;;  %v95_v10 = vld [vmem:[%s1270_s1 + $0x108] sm:$0xff]  ;;  %736 = vmatprep.subr.bf16.mxu0 %v735_v3  ;;  %v113_v15 = vld [vmem:[%s1270_s1 + $0x198] sm:$0xff] }
   0x5   :  { %v769_v12 = vpack.c.bf16 %v95_v10, %v94_v9  ;;  %768 = vmatprep.subr.bf16.mxu1 %v767_v7  ;;  %v771_v17 = vpack.c.bf16 %v113_v15, %v112_v14  ;;  %v64_v18 = vld [vmem:[%s1270_s1 + $0x10] sm:$0xff]  ;;  %v65_v19 = vld [vmem:[%s1270_s1 + $0x18] sm:$0xff]  ;;  %v82_v23 = vld [vmem:[%s1270_s1 + $0xa0] sm:$0xff] }
   0x6   :  { %738 = vmatpush3.bf16.msra.mxu0 %v737_v8  ;;  %v96_v20 = vld [vmem:[%s1270_s1 + $0x110] sm:$0xff]  ;;  %v741_v21 = vpack.c.bf16 %v65_v19, %v64_v18  ;;  %v97_v22 = vld [vmem:[%s1270_s1 + $0x118] sm:$0xff]  ;;  %v83_v24 = vld [vmem:[%s1270_s1 + $0xa8] sm:$0xff] }
   0x7   :  { %770 = vmatpush3.bf16.msra.mxu1 %v769_v12  ;;  %740 = vmatprep.subr.bf16.mxu0 %v739_v16  ;;  %v773_v25 = vpack.c.bf16 %v97_v22, %v96_v20  ;;  %v743_v26 = vpack.c.bf16 %v83_v24, %v82_v23  ;;  %v114_v27 = vld [vmem:[%s1270_s1 + $0x1a0] sm:$0xff]  ;;  %v115_v28 = vld [vmem:[%s1270_s1 + $0x1a8] sm:$0xff]  ;;  %v84_v35 = vld [vmem:[%s1270_s1 + $0xb0] sm:$0xff] }
   0x8   :  { %772 = vmatprep.subr.bf16.mxu1 %v771_v17  ;;  %v66_v29 = vld [vmem:[%s1270_s1 + $0x20] sm:$0xff]  ;;  %v775_v30 = vpack.c.bf16 %v115_v28, %v114_v27  ;;  %v67_v31 = vld [vmem:[%s1270_s1 + $0x28] sm:$0xff]  ;;  %v85_v36 = vld [vmem:[%s1270_s1 + $0xb8] sm:$0xff] }
   0x9   :  { %v98_v32 = vld [vmem:[%s1270_s1 + $0x120] sm:$0xff]  ;;  %v99_v33 = vld [vmem:[%s1270_s1 + $0x128] sm:$0xff]  ;;  %v745_v34 = vpack.c.bf16 %v67_v31, %v66_v29  ;;  %v116_v37 = vld [vmem:[%s1270_s1 + $0x1b0] sm:$0xff]  ;;  %v747_v39 = vpack.c.bf16 %v85_v36, %v84_v35 }
   0xa   :  { %742 = vmatpush3.bf16.msra.mxu0 %v741_v21  ;;  %v777_v38 = vpack.c.bf16 %v99_v33, %v98_v32  ;;  %v117_v40 = vld [vmem:[%s1270_s1 + $0x1b8] sm:$0xff]  ;;  %v68_v41 = vld [vmem:[%s1270_s1 + $0x30] sm:$0xff]  ;;  %v86_v46 = vld [vmem:[%s1270_s1 + $0xc0] sm:$0xff] }
   0xb   :  { %774 = vmatpush3.bf16.msra.mxu1 %v773_v25  ;;  %744 = vmatprep.subr.bf16.mxu0 %v743_v26  ;;  %v69_v42 = vld [vmem:[%s1270_s1 + $0x38] sm:$0xff]  ;;  %v779_v43 = vpack.c.bf16 %v117_v40, %v116_v37  ;;  %v100_v44 = vld [vmem:[%s1270_s1 + $0x130] sm:$0xff]  ;;  %v87_v47 = vld [vmem:[%s1270_s1 + $0xc8] sm:$0xff] }
   0xc   :  { %776 = vmatprep.subr.bf16.mxu1 %v775_v30  ;;  %v101_v45 = vld [vmem:[%s1270_s1 + $0x138] sm:$0xff]  ;;  %v118_v48 = vld [vmem:[%s1270_s1 + $0x1c0] sm:$0xff]  ;;  %v119_v49 = vld [vmem:[%s1270_s1 + $0x1c8] sm:$0xff]  ;;  %v749_v50 = vpack.c.bf16 %v69_v42, %v68_v41  ;;  %v751_v52 = vpack.c.bf16 %v87_v47, %v86_v46 }
   0xd   :  { %v781_v51 = vpack.c.bf16 %v101_v45, %v100_v44  ;;  %v70_v53 = vld [vmem:[%s1270_s1 + $0x40] sm:$0xff]  ;;  %v71_v54 = vld [vmem:[%s1270_s1 + $0x48] sm:$0xff]  ;;  %v783_v56 = vpack.c.bf16 %v119_v49, %v118_v48  ;;  %v88_v58 = vld [vmem:[%s1270_s1 + $0xd0] sm:$0xff] }
   0xe   :  { %746 = vmatpush3.bf16.msra.mxu0 %v745_v34  ;;  %v102_v55 = vld [vmem:[%s1270_s1 + $0x140] sm:$0xff]  ;;  %v103_v57 = vld [vmem:[%s1270_s1 + $0x148] sm:$0xff]  ;;  %v89_v59 = vld [vmem:[%s1270_s1 + $0xd8] sm:$0xff]  ;;  %v753_v62 = vpack.c.bf16 %v71_v54, %v70_v53 }
   0xf   :  { %778 = vmatpush3.bf16.msra.mxu1 %v777_v38  ;;  %748 = vmatprep.subr.bf16.mxu0 %v747_v39  ;;  %v120_v60 = vld [vmem:[%s1270_s1 + $0x1d0] sm:$0xff]  ;;  %v121_v61 = vld [vmem:[%s1270_s1 + $0x1d8] sm:$0xff]  ;;  %v785_v63 = vpack.c.bf16 %v103_v57, %v102_v55  ;;  %v755_v0 = vpack.c.bf16 %v89_v59, %v88_v58  ;;  %v90_v6 = vld [vmem:[%s1270_s1 + $0xe0] sm:$0xff]  ;;  %v822_v39 = vmov 0.0|0.0  }
  0x10   :  { %780 = vmatprep.subr.bf16.mxu1 %v779_v43  ;;  %v72_v1 = vld [vmem:[%s1270_s1 + $0x50] sm:$0xff]  ;;  %v73_v2 = vld [vmem:[%s1270_s1 + $0x58] sm:$0xff]  ;;  %v787_v4 = vpack.c.bf16 %v121_v61, %v120_v60  ;;  %v91_v7 = vld [vmem:[%s1270_s1 + $0xe8] sm:$0xff] }
  0x11   :  { %v104_v3 = vld [vmem:[%s1270_s1 + $0x150] sm:$0xff]  ;;  %v105_v5 = vld [vmem:[%s1270_s1 + $0x158] sm:$0xff]  ;;  %v122_v8 = vld [vmem:[%s1270_s1 + $0x1e0] sm:$0xff]  ;;  %v757_v10 = vpack.c.bf16 %v73_v2, %v72_v1  ;;  %v759_v14 = vpack.c.bf16 %v91_v7, %v90_v6 }
  0x12   :  { %750 = vmatpush3.bf16.msra.mxu0 %v749_v50  ;;  %v123_v9 = vld [vmem:[%s1270_s1 + $0x1e8] sm:$0xff]  ;;  %v74_v11 = vld [vmem:[%s1270_s1 + $0x60] sm:$0xff]  ;;  %v789_v13 = vpack.c.bf16 %v105_v5, %v104_v3  ;;  %v20_v17 = vld [vmem:[%s1271_s0 + $0x18] sm:$0xff] }
  0x13   :  { %782 = vmatpush3.bf16.msra.mxu1 %v781_v51  ;;  %752 = vmatprep.subr.bf16.mxu0 %v751_v52  ;;  %v75_v12 = vld [vmem:[%s1270_s1 + $0x68] sm:$0xff]  ;;  %v106_v15 = vld [vmem:[%s1270_s1 + $0x160] sm:$0xff]  ;;  %v791_v18 = vpack.c.bf16 %v123_v9, %v122_v8  ;;  %v92_v20 = vld [vmem:[%s1270_s1 + $0xf0] sm:$0xff] }
  0x14   :  { %784 = vmatprep.subr.bf16.mxu1 %v783_v56  ;;  %v18_v16 = vld [vmem:[%s1271_s0 + $0x8] sm:$0xff]  ;;  %v93_v21 = vld [vmem:[%s1270_s1 + $0xf8] sm:$0xff]  ;;  %v124_v22 = vld [vmem:[%s1270_s1 + $0x1f0] sm:$0xff]  ;;  %336 = vmatprep.mubr.f32.mxu1 %v20_v17  ;;  %v761_v24 = vpack.c.bf16 %v75_v12, %v74_v11  ;;  %v824_v17 = vmov 0.0  }
  0x15   :  { %v107_v19 = vld [vmem:[%s1270_s1 + $0x168] sm:$0xff]  ;;  %226 = vmatprep.mubr.f32.mxu0 %v18_v16  ;;  %v125_v23 = vld [vmem:[%s1270_s1 + $0x1f8] sm:$0xff]  ;;  %v763_v26 = vpack.c.bf16 %v93_v21, %v92_v20  ;;  %v76_v27 = vld [vmem:[%s1270_s1 + $0x70] sm:$0xff] }
  0x16   :  { %754 = vmatpush3.bf16.msra.mxu0 %v753_v62  ;;  %v793_v25 = vpack.c.bf16 %v107_v19, %v106_v15  ;;  %v77_v28 = vld [vmem:[%s1270_s1 + $0x78] sm:$0xff]  ;;  %v795_v29 = vpack.c.bf16 %v125_v23, %v124_v22  ;;  %v108_v30 = vld [vmem:[%s1270_s1 + $0x170] sm:$0xff]  ;;  %v126_v34 = vld [vmem:[%s1270_s1 + $0x200] sm:$0xff] }
  0x17   :  { %786 = vmatpush3.bf16.msra.mxu1 %v785_v63  ;;  %756 = vmatprep.subr.bf16.mxu0 %v755_v0  ;;  %v109_v31 = vld [vmem:[%s1270_s1 + $0x178] sm:$0xff]  ;;  %v765_v32 = vpack.c.bf16 %v77_v28, %v76_v27  ;;  %v127_v35 = vld [vmem:[%s1270_s1 + $0x208] sm:$0xff]  ;;  %v17_v36 = vld [vmem:[%s1271_s0] sm:$0xff] }
  0x18   :  { %788 = vmatprep.subr.bf16.mxu1 %v787_v4  ;;  %v797_v33 = vpack.c.bf16 %v109_v31, %v108_v30  ;;  %v800_v37 = vpack.c.bf16 %v127_v35, %v126_v34  ;;  %v19_v38 = vld [vmem:[%s1271_s0 + $0x10] sm:$0xff]  ;;  %v25_v41 = vld [vmem:[%s1271_s0 + $0x40] sm:$0xff]  ;;  %v129_v43 = vld [vmem:[%s1270_s1 + $0x218] sm:$0xff] }
  0x19   :  { %v23_v40 = vld [vmem:[%s1271_s0 + $0x30] sm:$0xff]  ;;  %v22_v44 = vld [vmem:[%s1271_s0 + $0x28] sm:$0xff]  ;;  %v24_v45 = vld [vmem:[%s1271_s0 + $0x38] sm:$0xff] }
  0x1a   :  { %758 = vmatpush3.bf16.msra.mxu0 %v757_v10  ;;  %v128_v42 = vld [vmem:[%s1270_s1 + $0x210] sm:$0xff]  ;;  %v28_v46 = vld [vmem:[%s1271_s0 + $0x58] sm:$0xff]  ;;  %v30_v48 = vld [vmem:[%s1271_s0 + $0x68] sm:$0xff] }
  0x1b   :  { %790 = vmatpush3.bf16.msra.mxu1 %v789_v13  ;;  %760 = vmatprep.subr.bf16.mxu0 %v759_v14  ;;  %v803_v47 = vpack.c.bf16 %v129_v43, %v128_v42  ;;  %v130_v49 = vld [vmem:[%s1270_s1 + $0x220] sm:$0xff]  ;;  %v131_v50 = vld [vmem:[%s1270_s1 + $0x228] sm:$0xff]  ;;  %v27_v51 = vld [vmem:[%s1271_s0 + $0x50] sm:$0xff] }
  0x1c   :  { %792 = vmatprep.subr.bf16.mxu1 %v791_v18  ;;  %v29_v52 = vld [vmem:[%s1271_s0 + $0x60] sm:$0xff]  ;;  %v806_v54 = vpack.c.bf16 %v131_v50, %v130_v49  ;;  %v35_v55 = vld [vmem:[%s1271_s0 + $0x90] sm:$0xff]  ;;  %v133_v57 = vld [vmem:[%s1270_s1 + $0x238] sm:$0xff] }
  0x1d   :  { %v33_v53 = vld [vmem:[%s1271_s0 + $0x80] sm:$0xff]  ;;  %v132_v56 = vld [vmem:[%s1270_s1 + $0x230] sm:$0xff]  ;;  %v32_v58 = vld [vmem:[%s1271_s0 + $0x78] sm:$0xff] }
  0x1e   :  { %762 = vmatpush3.bf16.msra.mxu0 %v761_v24  ;;  %v34_v59 = vld [vmem:[%s1271_s0 + $0x88] sm:$0xff]  ;;  %v809_v61 = vpack.c.bf16 %v133_v57, %v132_v56  ;;  %v40_v62 = vld [vmem:[%s1271_s0 + $0xb8] sm:$0xff]  ;;  %v37_v63 = vld [vmem:[%s1271_s0 + $0xa0] sm:$0xff] }
  0x1f   :  { %794 = vmatpush3.bf16.msra.mxu1 %v793_v25  ;;  %764 = vmatprep.subr.bf16.mxu0 %v763_v26  ;;  %v38_v60 = vld [vmem:[%s1271_s0 + $0xa8] sm:$0xff]  ;;  %v39_v0 = vld [vmem:[%s1271_s0 + $0xb0] sm:$0xff]  ;;  %v45_v2 = vld [vmem:[%s1271_s0 + $0xe0] sm:$0xff] }
  0x20   :  { %796 = vmatprep.subr.bf16.mxu1 %v795_v29  ;;  %v43_v1 = vld [vmem:[%s1271_s0 + $0xd0] sm:$0xff]  ;;  %v42_v3 = vld [vmem:[%s1271_s0 + $0xc8] sm:$0xff]  ;;  %v44_v4 = vld [vmem:[%s1271_s0 + $0xd8] sm:$0xff] }
  0x21   :  { %v48_v5 = vld [vmem:[%s1271_s0 + $0xf8] sm:$0xff]  ;;  %v50_v6 = vld [vmem:[%s1271_s0 + $0x108] sm:$0xff]  ;;  %v47_v7 = vld [vmem:[%s1271_s0 + $0xf0] sm:$0xff] }
  0x22   :  { %766 = vmatpush3.bf16.msra.mxu0 %v765_v32  ;;  %v49_v8 = vld [vmem:[%s1271_s0 + $0x100] sm:$0xff]  ;;  %v55_v10 = vld [vmem:[%s1271_s0 + $0x130] sm:$0xff]  ;;  %v52_v11 = vld [vmem:[%s1271_s0 + $0x118] sm:$0xff] }
  0x23   :  { %798 = vmatpush3.bf16.msra.mxu1 %v797_v33  ;;  %799 = vmatprep.subr.bf16.mxu0 %v822_v39  ;;  %v53_v9 = vld [vmem:[%s1271_s0 + $0x120] sm:$0xff]  ;;  %v54_v12 = vld [vmem:[%s1271_s0 + $0x128] sm:$0xff]  ;;  %v60_v14 = vld [vmem:[%s1271_s0 + $0x158] sm:$0xff] }
  0x24   :  { %811 = vmatprep.subr.bf16.mxu1 %v822_v39  ;;  %v58_v13 = vld [vmem:[%s1271_s0 + $0x148] sm:$0xff]  ;;  %v57_v15 = vld [vmem:[%s1271_s0 + $0x140] sm:$0xff]  ;;  %v59_v16 = vld [vmem:[%s1271_s0 + $0x150] sm:$0xff] }
  0x25   :  { %227 = vmatmul.mubr.f32.vlgmr.msra.gmra.mrb[0].mxu0 %v17_v36  ;;  %v21_v18 = vld [vmem:[%s1271_s0 + $0x20] sm:$0xff]  ;;  %v46_v19 = vld [vmem:[%s1271_s0 + $0xe8] sm:$0xff]  ;;  %v51_v21 = vld [vmem:[%s1271_s0 + $0x110] sm:$0xff] }
  0x26   :  { %337 = vmatmul.mubr.f32.vlgmr.msra.gmra.mrb[0].mxu1 %v19_v38  ;;  %801 = vmatpush3.bf16.msra.mxu0 %v800_v37  ;;  %v26_v20 = vld [vmem:[%s1271_s0 + $0x48] sm:$0xff]  ;;  %v31_v22 = vld [vmem:[%s1271_s0 + $0x70] sm:$0xff]  ;;  %v56_v23 = vld [vmem:[%s1271_s0 + $0x138] sm:$0xff] }
  0x27   :  { %231 = vmatprep.mubr.f32.mxu0 %v23_v40  ;;  %341 = vmatprep.mubr.f32.mxu1 %v25_v41  ;;  %v36_v24 = vld [vmem:[%s1271_s0 + $0x98] sm:$0xff]  ;;  %v61_v25 = vld [vmem:[%s1271_s0 + $0x160] sm:$0xff] }
  0x28   :  { %815 = vmatpush3.bf16.msra.mxu1 %v800_v37  ;;  %802 = vmatprep.subr.bf16.mxu0 %v822_v39  ;;  %v41_v26 = vld [vmem:[%s1271_s0 + $0xc0] sm:$0xff] }
  0x29   :  { %232 = vmatmul.mubr.f32.gmra.mrb[2].mxu0 %v22_v44  ;;  %812 = vmatprep.subr.bf16.mxu1 %v822_v39 }
  0x2a   :  { %342 = vmatmul.mubr.f32.gmra.mrb[2].mxu1 %v24_v45  ;;  %236 = vmatprep.mubr.f32.mxu0 %v28_v46 }
  0x2b   :  { %346 = vmatprep.mubr.f32.mxu1 %v30_v48  ;;  %804 = vmatpush3.bf16.msra.mxu0 %v803_v47 }
  0x2c   :  { %816 = vmatpush3.bf16.msra.mxu1 %v803_v47  ;;  %805 = vmatprep.subr.bf16.mxu0 %v822_v39 }
  0x2d   :  { %237 = vmatmul.mubr.f32.gmra.mrb[4].mxu0 %v27_v51  ;;  %813 = vmatprep.subr.bf16.mxu1 %v822_v39 }
  0x2e   :  { %347 = vmatmul.mubr.f32.gmra.mrb[4].mxu1 %v29_v52  ;;  %241 = vmatprep.mubr.f32.mxu0 %v33_v53 }
  0x2f   :  { %351 = vmatprep.mubr.f32.mxu1 %v35_v55  ;;  %807 = vmatpush3.bf16.msra.mxu0 %v806_v54 }
  0x30   :  { %817 = vmatpush3.bf16.msra.mxu1 %v806_v54  ;;  %808 = vmatprep.subr.bf16.mxu0 %v822_v39 }
  0x31   :  { %242 = vmatmul.mubr.f32.gmra.mrb[6].mxu0 %v32_v58  ;;  %814 = vmatprep.subr.bf16.mxu1 %v822_v39 }
  0x32   :  { %352 = vmatmul.mubr.f32.gmra.mrb[6].mxu1 %v34_v59  ;;  %246 = vmatprep.mubr.f32.mxu0 %v38_v60 }
  0x33   :  { %356 = vmatprep.mubr.f32.mxu1 %v40_v62  ;;  %810 = vmatpush3.bf16.msra.mxu0 %v809_v61 }
  0x34   :  { %818 = vmatpush3.bf16.msra.mxu1 %v809_v61 }
  0x35   :  { %247 = vmatmul.mubr.f32.gmra.mrb[8].mxu0 %v37_v63 }
  0x36   :  { %357 = vmatmul.mubr.f32.gmra.mrb[8].mxu1 %v39_v0  ;;  %251 = vmatprep.mubr.f32.mxu0 %v43_v1 }
  0x37   :  { %361 = vmatprep.mubr.f32.mxu1 %v45_v2 }
  0x39   :  { %252 = vmatmul.mubr.f32.gmra.mrb[10].mxu0 %v42_v3 }
  0x3a   :  { %362 = vmatmul.mubr.f32.gmra.mrb[10].mxu1 %v44_v4  ;;  %256 = vmatprep.mubr.f32.mxu0 %v48_v5 }
  0x3b   :  { %366 = vmatprep.mubr.f32.mxu1 %v50_v6 }
  0x3d   :  { %257 = vmatmul.mubr.f32.gmra.mrb[12].mxu0 %v47_v7 }
  0x3e   :  { %367 = vmatmul.mubr.f32.gmra.mrb[12].mxu1 %v49_v8  ;;  %261 = vmatprep.mubr.f32.mxu0 %v53_v9 }
  0x3f   :  { %371 = vmatprep.mubr.f32.mxu1 %v55_v10 }
  0x41   :  { %262 = vmatmul.mubr.f32.gmra.mrb[14].mxu0 %v52_v11 }
  0x42   :  { %372 = vmatmul.mubr.f32.gmra.mrb[14].mxu1 %v54_v12  ;;  %266 = vmatprep.mubr.f32.mxu0 %v58_v13 }
  0x43   :  { %376 = vmatprep.mubr.f32.mxu1 %v60_v14 }
  0x45   :  { %267 = vmatmul.mubr.f32.gmra.mrb[16].mxu0 %v57_v15 }
  0x46   :  { %377 = vmatmul.mubr.f32.gmra.mrb[16].mxu1 %v59_v16  ;;  %708 = vmatprep.mubr.msk.f32.mxu0 %vm823_vm0, %v824_v17 }
  0x47   :  { %723 = vmatprep.mubr.msk.f32.mxu1 %vm823_vm0, %v824_v17 }
  0x49   :  { %709 = vmatmul.mubr.msk.f32.vlgmr.msra.gmra.mrb[18].mxu0 %vm134_vm1, %v21_v18 }
  0x4a   :  { %724 = vmatmul.mubr.msk.f32.vlgmr.msra.gmra.mrb[18].mxu1 %vm134_vm1, %v46_v19  ;;  %711 = vmatprep.mubr.msk.f32.mxu0 %vm823_vm0, %v824_v17 }
  0x4b   :  { %726 = vmatprep.mubr.msk.f32.mxu1 %vm823_vm0, %v824_v17 }
  0x4d   :  { %712 = vmatmul.mubr.msk.f32.gmra.mrb[20].mxu0 %vm134_vm1, %v26_v20 }
  0x4e   :  { %727 = vmatmul.mubr.msk.f32.gmra.mrb[20].mxu1 %vm134_vm1, %v51_v21  ;;  %714 = vmatprep.mubr.msk.f32.mxu0 %vm823_vm0, %v824_v17 }
  0x4f   :  { %729 = vmatprep.mubr.msk.f32.mxu1 %vm823_vm0, %v824_v17 }
  0x51   :  { %715 = vmatmul.mubr.msk.f32.gmra.mrb[22].mxu0 %vm134_vm1, %v31_v22 }
  0x52   :  { %730 = vmatmul.mubr.msk.f32.gmra.mrb[22].mxu1 %vm134_vm1, %v56_v23  ;;  %717 = vmatprep.mubr.msk.f32.mxu0 %vm823_vm0, %v824_v17 }
  0x53   :  { %732 = vmatprep.mubr.msk.f32.mxu1 %vm823_vm0, %v824_v17 }
  0x55   :  { %718 = vmatmul.mubr.msk.f32.gmra.mrb[24].mxu0 %vm134_vm1, %v36_v24 }
  0x56   :  { %733 = vmatmul.mubr.msk.f32.gmra.mrb[24].mxu1 %vm134_vm1, %v61_v25  ;;  %720 = vmatprep.mubr.msk.f32.mxu0 %vm823_vm0, %v824_v17 }
  0x59   :  { %721 = vmatmul.mubr.msk.f32.gmra.mrb[26].mxu0 %vm134_vm1, %v41_v26  ;;  %v555_v26 = vld [vmem:[%s1272_s2] ss:$0 sm:$0xff] }
  0xf8   :  { %v589_v27 = vpop.f32.mrb[0].mxu0 }
  0xf9   :  { %v648_v28 = vpop.f32.mrb[0].mxu1  ;;  %v590_v29 = vpop.f32.mrb[1].mxu0 }
  0xfa   :  { %v591_v30 = vadd.f32 %v590_v29, %v589_v27  ;;  %v649_v31 = vpop.f32.mrb[1].mxu1 }
  0xfb   :  { %v650_v32 = vadd.f32 %v649_v31, %v648_v28  ;;  %v556_v31 = vld [vmem:[%s1273_s3] ss:$0 sm:$0xff] }
  0xfc   :  { %v592_v33 = vpop.f32.mrb[2].mxu0 }
  0xfd   :  { %v651_v34 = vpop.f32.mrb[2].mxu1  ;;  %v593_v35 = vpop.f32.mrb[3].mxu0  ;;  %v339_v36 = vadd.f32 %v650_v32, %v591_v30 }
  0xfe   :  { %v594_v37 = vadd.f32 %v593_v35, %v592_v33  ;;  %v652_v38 = vpop.f32.mrb[3].mxu1 }
  0xff   :  { %v653_v39 = vadd.f32 %v652_v38, %v651_v34 }
 0x100   :  { %v595_v40 = vpop.f32.mrb[4].mxu0 }
 0x101   :  { %v654_v41 = vpop.f32.mrb[4].mxu1  ;;  %v596_v42 = vpop.f32.mrb[5].mxu0  ;;  %v344_v43 = vadd.f32 %v653_v39, %v594_v37 }
 0x102   :  { %v597_v44 = vadd.f32 %v596_v42, %v595_v40  ;;  %v655_v45 = vpop.f32.mrb[5].mxu1 }
 0x103   :  { %v656_v46 = vadd.f32 %v655_v45, %v654_v41 }
 0x104   :  { %v598_v47 = vpop.f32.mrb[6].mxu0 }
 0x105   :  { %v657_v48 = vpop.f32.mrb[6].mxu1  ;;  %v599_v49 = vpop.f32.mrb[7].mxu0  ;;  %v1219_v50 = vadd.f32 %v656_v46, %v597_v44 }
 0x106   :  { %v600_v51 = vadd.f32 %v599_v49, %v598_v47  ;;  %v658_v52 = vpop.f32.mrb[7].mxu1 }
 0x107   :  { %v659_v53 = vadd.f32 %v658_v52, %v657_v48 }
 0x108   :  { %v601_v54 = vpop.f32.mrb[8].mxu0 }
 0x109   :  { %v660_v55 = vpop.f32.mrb[8].mxu1  ;;  %v602_v56 = vpop.f32.mrb[9].mxu0  ;;  %v1221_v57 = vadd.f32 %v659_v53, %v600_v51 }
 0x10a   :  { %v603_v58 = vadd.f32 %v602_v56, %v601_v54  ;;  %v661_v59 = vpop.f32.mrb[9].mxu1 }
 0x10b   :  { %v662_v60 = vadd.f32 %v661_v59, %v660_v55 }
 0x10c   :  { %v604_v61 = vpop.f32.mrb[10].mxu0 }
 0x10d   :  { %v663_v62 = vpop.f32.mrb[10].mxu1  ;;  %v605_v63 = vpop.f32.mrb[11].mxu0  ;;  %v1223_v0 = vadd.f32 %v662_v60, %v603_v58 }
 0x10e   :  { %v606_v1 = vadd.f32 %v605_v63, %v604_v61  ;;  %v664_v2 = vpop.f32.mrb[11].mxu1 }
 0x10f   :  { %v665_v3 = vadd.f32 %v664_v2, %v663_v62 }
 0x110   :  { %v607_v4 = vpop.f32.mrb[12].mxu0 }
 0x111   :  { %v666_v5 = vpop.f32.mrb[12].mxu1  ;;  %v608_v6 = vpop.f32.mrb[13].mxu0  ;;  %v364_v7 = vadd.f32 %v665_v3, %v606_v1 }
 0x112   :  { %v609_v8 = vadd.f32 %v608_v6, %v607_v4  ;;  %v667_v9 = vpop.f32.mrb[13].mxu1 }
 0x113   :  { %v668_v10 = vadd.f32 %v667_v9, %v666_v5 }
 0x114   :  { %v610_v11 = vpop.f32.mrb[14].mxu0 }
 0x115   :  { %v669_v12 = vpop.f32.mrb[14].mxu1  ;;  %v611_v13 = vpop.f32.mrb[15].mxu0  ;;  %v369_v14 = vadd.f32 %v668_v10, %v609_v8 }
 0x116   :  { %v612_v15 = vadd.f32 %v611_v13, %v610_v11  ;;  %v670_v16 = vpop.f32.mrb[15].mxu1 }
 0x117   :  { %v671_v17 = vadd.f32 %v670_v16, %v669_v12 }
 0x118   :  { %v613_v18 = vpop.f32.mrb[16].mxu0 }
 0x119   :  { %v672_v19 = vpop.f32.mrb[16].mxu1  ;;  %v614_v20 = vpop.f32.mrb[17].mxu0  ;;  %v374_v21 = vadd.f32 %v671_v17, %v612_v15 }
 0x11a   :  { %v615_v22 = vadd.f32 %v614_v20, %v613_v18  ;;  %v673_v23 = vpop.f32.mrb[17].mxu1 }
 0x11b   :  { %v674_v24 = vadd.f32 %v673_v23, %v672_v19 }
 0x11c   :  { %v448_v25 = vpop.f32.mrb[18].mxu0 }
 0x11d   :  { %v449_v27 = vadd.f32 %v448_v25, %v339_v36  ;;  %v473_v28 = vpop.f32.mrb[18].mxu1  ;;  %v710_v29 = vpop.f32.mrb[19].mxu0  ;;  %v379_v30 = vadd.f32 %v674_v24, %v615_v22 }
 0x11e   :  { %v474_v32 = vadd.f32 %v473_v28, %v364_v7  ;;  %v725_v33 = vpop.f32.mrb[19].mxu1 }
 0x11f   :  { %v499_v34 = vmul.f32 %v555_v26, %v449_v27 }
 0x120   :  { %v504_v35 = vmul.f32 %v555_v26, %v474_v32  ;;  %v453_v37 = vpop.f32.mrb[20].mxu0 }
 0x121   :  { %v515_v38 = vadd.f32 %v556_v31, %v499_v34  ;;  %v454_v39 = vadd.f32 %v453_v37, %v344_v43  ;;  %v478_v40 = vpop.f32.mrb[20].mxu1  ;;  %v713_v41 = vpop.f32.mrb[21].mxu0 }
 0x122   :  { %v520_v42 = vadd.f32 %v556_v31, %v504_v35  ;;  %v479_v44 = vadd.f32 %v478_v40, %v369_v14  ;;  %v728_v45 = vpop.f32.mrb[21].mxu1 }
 0x123   :  { %v524_v36 = vmax.f32 %v515_v38, 0.0  ;;  %v500_v46 = vmul.f32 %v555_v26, %v454_v39 }
 0x124   :  { %v529_v47 = vmax.f32 %v520_v42, 0.0  ;;  %v505_v48 = vmul.f32 %v555_v26, %v479_v44  ;;  %v458_v49 = vpop.f32.mrb[22].mxu0 }
 0x125   :  { %533 = vst.msk [vmem:[%s1274_s4] sm:$0xff] %vm134_vm1, %v524_v36  ;;  %v516_v51 = vadd.f32 %v556_v31, %v500_v46  ;;  %v459_v52 = vadd.f32 %v458_v49, %v1219_v50  ;;  %v483_v53 = vpop.f32.mrb[22].mxu1  ;;  %v716_v43 = vpop.f32.mrb[23].mxu0 }
 0x126   :  { %538 = vst.msk [vmem:[%s1274_s4 + $0x28] sm:$0xff] %vm134_vm1, %v529_v47  ;;  %v521_v54 = vadd.f32 %v556_v31, %v505_v48  ;;  %v484_v55 = vadd.f32 %v483_v53, %v374_v21  ;;  %v731_v56 = vpop.f32.mrb[23].mxu1 }
 0x127   :  { %v525_v58 = vmax.f32 %v516_v51, 0.0  ;;  %v501_v59 = vmul.f32 %v555_v26, %v459_v52 }
 0x128   :  { %v530_v60 = vmax.f32 %v521_v54, 0.0  ;;  %v506_v61 = vmul.f32 %v555_v26, %v484_v55  ;;  %v463_v62 = vpop.f32.mrb[24].mxu0 }
 0x129   :  { %534 = vst.msk [vmem:[%s1274_s4 + $0x8] sm:$0xff] %vm134_vm1, %v525_v58  ;;  %v517_v50 = vadd.f32 %v556_v31, %v501_v59  ;;  %v464_v63 = vadd.f32 %v463_v62, %v1221_v57  ;;  %v488_v1 = vpop.f32.mrb[24].mxu1  ;;  %v719_v2 = vpop.f32.mrb[25].mxu0 }
 0x12a   :  { %539 = vst.msk [vmem:[%s1274_s4 + $0x30] sm:$0xff] %vm134_vm1, %v530_v60  ;;  %v522_v3 = vadd.f32 %v556_v31, %v506_v61  ;;  %v489_v4 = vadd.f32 %v488_v1, %v379_v30  ;;  %v734_v5 = vpop.f32.mrb[25].mxu1 }
 0x12b   :  { %v526_v6 = vmax.f32 %v517_v50, 0.0  ;;  %v502_v7 = vmul.f32 %v555_v26, %v464_v63 }
 0x12c   :  { %v531_v8 = vmax.f32 %v522_v3, 0.0  ;;  %v507_v9 = vmul.f32 %v555_v26, %v489_v4  ;;  %v468_v10 = vpop.f32.mrb[26].mxu0 }
 0x12d   :  { %535 = vst.msk [vmem:[%s1274_s4 + $0x10] sm:$0xff] %vm134_vm1, %v526_v6  ;;  %v518_v57 = vadd.f32 %v556_v31, %v502_v7  ;;  %v469_v11 = vadd.f32 %v468_v10, %v1223_v0  ;;  %v722_v12 = vpop.f32.mrb[27].mxu0 }
 0x12e   :  { %540 = vst.msk [vmem:[%s1274_s4 + $0x38] sm:$0xff] %vm134_vm1, %v531_v8  ;;  %v523_v13 = vadd.f32 %v556_v31, %v507_v9 }
 0x12f   :  { %v527_v14 = vmax.f32 %v518_v57, 0.0  ;;  %v503_v15 = vmul.f32 %v555_v26, %v469_v11 }
 0x130   :  { %v532_v16 = vmax.f32 %v523_v13, 0.0 }
 0x131   :  { %536 = vst.msk [vmem:[%s1274_s4 + $0x18] sm:$0xff] %vm134_vm1, %v527_v14  ;;  %v519_v17 = vadd.f32 %v556_v31, %v503_v15 }
 0x132   :  { %541 = vst.msk [vmem:[%s1274_s4 + $0x40] sm:$0xff] %vm134_vm1, %v532_v16 }
 0x133   :  { %v528_v0 = vmax.f32 %v519_v17, 0.0 }
 0x135   :  { %537 = vst.msk [vmem:[%s1274_s4 + $0x20] sm:$0xff] %vm134_vm1, %v528_v0 }

// kernel: forward_pallas.9
= control target key start
LH: loop header
LB: loop body
LE: loop exit
PB: predicated region body
PF: predicated region fallthrough
CT: control target
= control target key end

     0   :  { %vm864_vm0 = vmmov 0   ;;  %vm115_vm1 = vcmask 523264   ;;  %vm393_vm2 = vcmask 1041408   ;;  %vm389_vm3 = vcmask 146432   ;;  %s1249_s1 = inlined_call_operand.vmem [shape: f32[576,128], index: 1, kind: input, shape index: {}]   ;;  %s1250_s0 = inlined_call_operand.vmem [shape: f32[18,576], index: 0, kind: input, shape index: {}]   ;;  %s1251_s5 = inlined_call_operand.vmem [shape: f32[128,1], index: 5, kind: input, shape index: {}]   ;;  %s1252_s2 = inlined_call_operand.vmem [shape: f32[1,128], index: 2, kind: input, shape index: {}]   ;;  %s1253_s3 = inlined_call_operand.vmem [shape: f32[1,128], index: 3, kind: input, shape index: {}]   ;;  %s1254_s4 = inlined_call_operand.vmem [shape: f32[2,18], index: 4, kind: input, shape index: {}]   ;;  %s1255_s6 = inlined_call_operand.<no memory space> [shape: f32[1,1], index: 6, kind: input, shape index: {}]   ;;  %s1256_s7 = inlined_call_operand.vmem [shape: f32[2,1], index: 7, kind: output, shape index: {}]  }
   0x1   :  { %v59_v0 = vld [vmem:[%s1249_s1 + $0x80] sm:$0xff]  ;;  %v60_v1 = vld [vmem:[%s1249_s1 + $0x88] sm:$0xff]  ;;  %v61_v11 = vld [vmem:[%s1249_s1 + $0x90] sm:$0xff]  ;;  %vm560_vm4 = vcmask 1024  }
   0x2   :  { %v91_v2 = vld [vmem:[%s1249_s1 + $0x180] sm:$0xff]  ;;  %v757_v3 = vpack.c.bf16 %v60_v1, %v59_v0  ;;  %v92_v4 = vld [vmem:[%s1249_s1 + $0x188] sm:$0xff]  ;;  %v62_v13 = vld [vmem:[%s1249_s1 + $0x98] sm:$0xff] }
   0x3   :  { %v43_v5 = vld [vmem:[%s1249_s1] sm:$0xff]  ;;  %v44_v6 = vld [vmem:[%s1249_s1 + $0x8] sm:$0xff]  ;;  %v789_v7 = vpack.c.bf16 %v92_v4, %v91_v2  ;;  %v93_v14 = vld [vmem:[%s1249_s1 + $0x190] sm:$0xff]  ;;  %v761_v16 = vpack.c.bf16 %v62_v13, %v61_v11 }
   0x4   :  { %v759_v8 = vpack.c.bf16 %v44_v6, %v43_v5  ;;  %v75_v9 = vld [vmem:[%s1249_s1 + $0x100] sm:$0xff]  ;;  %v76_v10 = vld [vmem:[%s1249_s1 + $0x108] sm:$0xff]  ;;  %758 = vmatprep.subr.bf16.mxu0 %v757_v3  ;;  %v94_v15 = vld [vmem:[%s1249_s1 + $0x198] sm:$0xff] }
   0x5   :  { %v791_v12 = vpack.c.bf16 %v76_v10, %v75_v9  ;;  %790 = vmatprep.subr.bf16.mxu1 %v789_v7  ;;  %v793_v17 = vpack.c.bf16 %v94_v15, %v93_v14  ;;  %v45_v18 = vld [vmem:[%s1249_s1 + $0x10] sm:$0xff]  ;;  %v46_v19 = vld [vmem:[%s1249_s1 + $0x18] sm:$0xff]  ;;  %v63_v23 = vld [vmem:[%s1249_s1 + $0xa0] sm:$0xff] }
   0x6   :  { %760 = vmatpush3.bf16.msra.mxu0 %v759_v8  ;;  %v77_v20 = vld [vmem:[%s1249_s1 + $0x110] sm:$0xff]  ;;  %v763_v21 = vpack.c.bf16 %v46_v19, %v45_v18  ;;  %v78_v22 = vld [vmem:[%s1249_s1 + $0x118] sm:$0xff]  ;;  %v64_v24 = vld [vmem:[%s1249_s1 + $0xa8] sm:$0xff] }
   0x7   :  { %792 = vmatpush3.bf16.msra.mxu1 %v791_v12  ;;  %762 = vmatprep.subr.bf16.mxu0 %v761_v16  ;;  %v795_v25 = vpack.c.bf16 %v78_v22, %v77_v20  ;;  %v765_v26 = vpack.c.bf16 %v64_v24, %v63_v23  ;;  %v95_v27 = vld [vmem:[%s1249_s1 + $0x1a0] sm:$0xff]  ;;  %v96_v28 = vld [vmem:[%s1249_s1 + $0x1a8] sm:$0xff]  ;;  %v65_v35 = vld [vmem:[%s1249_s1 + $0xb0] sm:$0xff] }
   0x8   :  { %794 = vmatprep.subr.bf16.mxu1 %v793_v17  ;;  %v47_v29 = vld [vmem:[%s1249_s1 + $0x20] sm:$0xff]  ;;  %v797_v30 = vpack.c.bf16 %v96_v28, %v95_v27  ;;  %v48_v31 = vld [vmem:[%s1249_s1 + $0x28] sm:$0xff]  ;;  %v66_v36 = vld [vmem:[%s1249_s1 + $0xb8] sm:$0xff] }
   0x9   :  { %v79_v32 = vld [vmem:[%s1249_s1 + $0x120] sm:$0xff]  ;;  %v80_v33 = vld [vmem:[%s1249_s1 + $0x128] sm:$0xff]  ;;  %v767_v34 = vpack.c.bf16 %v48_v31, %v47_v29  ;;  %v97_v37 = vld [vmem:[%s1249_s1 + $0x1b0] sm:$0xff]  ;;  %v769_v39 = vpack.c.bf16 %v66_v36, %v65_v35 }
   0xa   :  { %764 = vmatpush3.bf16.msra.mxu0 %v763_v21  ;;  %v799_v38 = vpack.c.bf16 %v80_v33, %v79_v32  ;;  %v98_v40 = vld [vmem:[%s1249_s1 + $0x1b8] sm:$0xff]  ;;  %v49_v41 = vld [vmem:[%s1249_s1 + $0x30] sm:$0xff]  ;;  %v67_v46 = vld [vmem:[%s1249_s1 + $0xc0] sm:$0xff] }
   0xb   :  { %796 = vmatpush3.bf16.msra.mxu1 %v795_v25  ;;  %766 = vmatprep.subr.bf16.mxu0 %v765_v26  ;;  %v50_v42 = vld [vmem:[%s1249_s1 + $0x38] sm:$0xff]  ;;  %v801_v43 = vpack.c.bf16 %v98_v40, %v97_v37  ;;  %v81_v44 = vld [vmem:[%s1249_s1 + $0x130] sm:$0xff]  ;;  %v68_v47 = vld [vmem:[%s1249_s1 + $0xc8] sm:$0xff] }
   0xc   :  { %798 = vmatprep.subr.bf16.mxu1 %v797_v30  ;;  %v82_v45 = vld [vmem:[%s1249_s1 + $0x138] sm:$0xff]  ;;  %v99_v48 = vld [vmem:[%s1249_s1 + $0x1c0] sm:$0xff]  ;;  %v100_v49 = vld [vmem:[%s1249_s1 + $0x1c8] sm:$0xff]  ;;  %v771_v50 = vpack.c.bf16 %v50_v42, %v49_v41  ;;  %v773_v52 = vpack.c.bf16 %v68_v47, %v67_v46 }
   0xd   :  { %v803_v51 = vpack.c.bf16 %v82_v45, %v81_v44  ;;  %v51_v53 = vld [vmem:[%s1249_s1 + $0x40] sm:$0xff]  ;;  %v52_v54 = vld [vmem:[%s1249_s1 + $0x48] sm:$0xff]  ;;  %v805_v56 = vpack.c.bf16 %v100_v49, %v99_v48  ;;  %v69_v58 = vld [vmem:[%s1249_s1 + $0xd0] sm:$0xff] }
   0xe   :  { %768 = vmatpush3.bf16.msra.mxu0 %v767_v34  ;;  %v83_v55 = vld [vmem:[%s1249_s1 + $0x140] sm:$0xff]  ;;  %v84_v57 = vld [vmem:[%s1249_s1 + $0x148] sm:$0xff]  ;;  %v70_v59 = vld [vmem:[%s1249_s1 + $0xd8] sm:$0xff]  ;;  %v775_v62 = vpack.c.bf16 %v52_v54, %v51_v53 }
   0xf   :  { %800 = vmatpush3.bf16.msra.mxu1 %v799_v38  ;;  %770 = vmatprep.subr.bf16.mxu0 %v769_v39  ;;  %v101_v60 = vld [vmem:[%s1249_s1 + $0x1d0] sm:$0xff]  ;;  %v102_v61 = vld [vmem:[%s1249_s1 + $0x1d8] sm:$0xff]  ;;  %v807_v63 = vpack.c.bf16 %v84_v57, %v83_v55  ;;  %v777_v0 = vpack.c.bf16 %v70_v59, %v69_v58  ;;  %v71_v6 = vld [vmem:[%s1249_s1 + $0xe0] sm:$0xff]  ;;  %v863_v39 = vmov 0.0|0.0   ;;  %v865_v57 = vmov 0.0  }
  0x10   :  { %802 = vmatprep.subr.bf16.mxu1 %v801_v43  ;;  %v53_v1 = vld [vmem:[%s1249_s1 + $0x50] sm:$0xff]  ;;  %v54_v2 = vld [vmem:[%s1249_s1 + $0x58] sm:$0xff]  ;;  %v809_v4 = vpack.c.bf16 %v102_v61, %v101_v60  ;;  %v72_v7 = vld [vmem:[%s1249_s1 + $0xe8] sm:$0xff] }
  0x11   :  { %v85_v3 = vld [vmem:[%s1249_s1 + $0x150] sm:$0xff]  ;;  %v86_v5 = vld [vmem:[%s1249_s1 + $0x158] sm:$0xff]  ;;  %v103_v8 = vld [vmem:[%s1249_s1 + $0x1e0] sm:$0xff]  ;;  %v779_v10 = vpack.c.bf16 %v54_v2, %v53_v1  ;;  %v781_v14 = vpack.c.bf16 %v72_v7, %v71_v6 }
  0x12   :  { %772 = vmatpush3.bf16.msra.mxu0 %v771_v50  ;;  %v104_v9 = vld [vmem:[%s1249_s1 + $0x1e8] sm:$0xff]  ;;  %v55_v11 = vld [vmem:[%s1249_s1 + $0x60] sm:$0xff]  ;;  %v811_v13 = vpack.c.bf16 %v86_v5, %v85_v3  ;;  %v31_v17 = vld [vmem:[%s1250_s0 + $0x18] sm:$0xff] }
  0x13   :  { %804 = vmatpush3.bf16.msra.mxu1 %v803_v51  ;;  %774 = vmatprep.subr.bf16.mxu0 %v773_v52  ;;  %v56_v12 = vld [vmem:[%s1249_s1 + $0x68] sm:$0xff]  ;;  %v87_v15 = vld [vmem:[%s1249_s1 + $0x160] sm:$0xff]  ;;  %v813_v18 = vpack.c.bf16 %v104_v9, %v103_v8  ;;  %v73_v20 = vld [vmem:[%s1249_s1 + $0xf0] sm:$0xff] }
  0x14   :  { %806 = vmatprep.subr.bf16.mxu1 %v805_v56  ;;  %v29_v16 = vld [vmem:[%s1250_s0 + $0x8] sm:$0xff]  ;;  %v74_v21 = vld [vmem:[%s1249_s1 + $0xf8] sm:$0xff]  ;;  %v105_v22 = vld [vmem:[%s1249_s1 + $0x1f0] sm:$0xff]  ;;  %269 = vmatprep.mubr.f32.mxu1 %v31_v17  ;;  %v783_v24 = vpack.c.bf16 %v56_v12, %v55_v11 }
  0x15   :  { %v88_v19 = vld [vmem:[%s1249_s1 + $0x168] sm:$0xff]  ;;  %189 = vmatprep.mubr.f32.mxu0 %v29_v16  ;;  %v106_v23 = vld [vmem:[%s1249_s1 + $0x1f8] sm:$0xff]  ;;  %v785_v26 = vpack.c.bf16 %v74_v21, %v73_v20  ;;  %v57_v27 = vld [vmem:[%s1249_s1 + $0x70] sm:$0xff] }
  0x16   :  { %776 = vmatpush3.bf16.msra.mxu0 %v775_v62  ;;  %v815_v25 = vpack.c.bf16 %v88_v19, %v87_v15  ;;  %v58_v28 = vld [vmem:[%s1249_s1 + $0x78] sm:$0xff]  ;;  %v817_v29 = vpack.c.bf16 %v106_v23, %v105_v22  ;;  %v89_v30 = vld [vmem:[%s1249_s1 + $0x170] sm:$0xff]  ;;  %v107_v34 = vld [vmem:[%s1249_s1 + $0x200] sm:$0xff] }
  0x17   :  { %808 = vmatpush3.bf16.msra.mxu1 %v807_v63  ;;  %778 = vmatprep.subr.bf16.mxu0 %v777_v0  ;;  %v90_v31 = vld [vmem:[%s1249_s1 + $0x178] sm:$0xff]  ;;  %v787_v32 = vpack.c.bf16 %v58_v28, %v57_v27  ;;  %v108_v35 = vld [vmem:[%s1249_s1 + $0x208] sm:$0xff]  ;;  %v28_v36 = vld [vmem:[%s1250_s0] sm:$0xff] }
  0x18   :  { %810 = vmatprep.subr.bf16.mxu1 %v809_v4  ;;  %v819_v33 = vpack.c.bf16 %v90_v31, %v89_v30  ;;  %v822_v37 = vpack.c.bf16 %v108_v35, %v107_v34  ;;  %v30_v38 = vld [vmem:[%s1250_s0 + $0x10] sm:$0xff]  ;;  %v110_v41 = vld [vmem:[%s1249_s1 + $0x218] sm:$0xff]  ;;  %v36_v43 = vld [vmem:[%s1250_s0 + $0x40] sm:$0xff] }
  0x19   :  { %v109_v40 = vld [vmem:[%s1249_s1 + $0x210] sm:$0xff]  ;;  %v33_v45 = vld [vmem:[%s1250_s0 + $0x28] sm:$0xff]  ;;  %v35_v46 = vld [vmem:[%s1250_s0 + $0x38] sm:$0xff] }
  0x1a   :  { %780 = vmatpush3.bf16.msra.mxu0 %v779_v10  ;;  %v34_v42 = vld [vmem:[%s1250_s0 + $0x30] sm:$0xff]  ;;  %v825_v44 = vpack.c.bf16 %v110_v41, %v109_v40  ;;  %v111_v47 = vld [vmem:[%s1249_s1 + $0x220] sm:$0xff]  ;;  %v112_v48 = vld [vmem:[%s1249_s1 + $0x228] sm:$0xff] }
  0x1b   :  { %812 = vmatpush3.bf16.msra.mxu1 %v811_v13  ;;  %782 = vmatprep.subr.bf16.mxu0 %v781_v14  ;;  %v39_v49 = vld [vmem:[%s1250_s0 + $0x58] sm:$0x3]  ;;  %v41_v50 = vld [vmem:[%s1250_s0 + $0x68] sm:$0x3]  ;;  %v828_v51 = vpack.c.bf16 %v112_v48, %v111_v47  ;;  %v38_v52 = vld [vmem:[%s1250_s0 + $0x50] sm:$0x3] }
  0x1c   :  { %814 = vmatprep.subr.bf16.mxu1 %v813_v18  ;;  %v40_v53 = vld [vmem:[%s1250_s0 + $0x60] sm:$0x3]  ;;  %v113_v54 = vld [vmem:[%s1249_s1 + $0x230] sm:$0xff]  ;;  %v114_v55 = vld [vmem:[%s1249_s1 + $0x238] sm:$0xff] }
  0x1d   :  { %v831_v56 = vpack.c.bf16 %v114_v55, %v113_v54  ;;  %v32_v58 = vld [vmem:[%s1250_s0 + $0x20] sm:$0xff]  ;;  %v37_v59 = vld [vmem:[%s1250_s0 + $0x48] sm:$0xff]  ;;  %v42_v60 = vld [vmem:[%s1250_s0 + $0x70] sm:$0x3] }
  0x1e   :  { %784 = vmatpush3.bf16.msra.mxu0 %v783_v24  ;;  %v467_v61 = vld [vmem:[%s1251_s5] sm:$0xff]  ;;  %v468_v62 = vld [vmem:[%s1251_s5 + $0x8] sm:$0xff]  ;;  %v469_v63 = vld [vmem:[%s1251_s5 + $0x10] sm:$0xff] }
  0x1f   :  { %816 = vmatpush3.bf16.msra.mxu1 %v815_v25  ;;  %786 = vmatprep.subr.bf16.mxu0 %v785_v26  ;;  %v837_v0 = vpack.c.bf16 %v468_v62, %v467_v61  ;;  %v470_v1 = vld [vmem:[%s1251_s5 + $0x18] sm:$0xff]  ;;  %v471_v3 = vld [vmem:[%s1251_s5 + $0x20] sm:$0xff]  ;;  %v472_v4 = vld [vmem:[%s1251_s5 + $0x28] sm:$0xff] }
  0x20   :  { %818 = vmatprep.subr.bf16.mxu1 %v817_v29  ;;  %v840_v2 = vpack.c.bf16 %v470_v1, %v469_v63  ;;  %v843_v5 = vpack.c.bf16 %v472_v4, %v471_v3  ;;  %v473_v6 = vld [vmem:[%s1251_s5 + $0x30] sm:$0xff]  ;;  %v474_v7 = vld [vmem:[%s1251_s5 + $0x38] sm:$0xff]  ;;  %v475_v9 = vld [vmem:[%s1251_s5 + $0x40] sm:$0xff]  ;;  %v12_v1 = vstv %s1255_s6 }
  0x21   :  { %v846_v8 = vpack.c.bf16 %v474_v7, %v473_v6  ;;  %v476_v10 = vld [vmem:[%s1251_s5 + $0x48] sm:$0xff]  ;;  %v477_v12 = vld [vmem:[%s1251_s5 + $0x50] sm:$0xff]  ;;  %v478_v13 = vld [vmem:[%s1251_s5 + $0x58] sm:$0xff]  ;;  %13 = vst [vmem:[#allocation2] sm:$0x1] %v12_v1 }
  0x22   :  { %788 = vmatpush3.bf16.msra.mxu0 %v787_v32  ;;  %v849_v11 = vpack.c.bf16 %v476_v10, %v475_v9  ;;  %v852_v14 = vpack.c.bf16 %v478_v13, %v477_v12  ;;  %v479_v15 = vld [vmem:[%s1251_s5 + $0x60] sm:$0xff]  ;;  %v480_v16 = vld [vmem:[%s1251_s5 + $0x68] sm:$0xff]  ;;  %v481_v18 = vld [vmem:[%s1251_s5 + $0x70] sm:$0xff] }
  0x23   :  { %820 = vmatpush3.bf16.msra.mxu1 %v819_v33  ;;  %821 = vmatprep.subr.bf16.mxu0 %v863_v39  ;;  %v855_v17 = vpack.c.bf16 %v480_v16, %v479_v15  ;;  %v482_v19 = vld [vmem:[%s1251_s5 + $0x78] sm:$0xff]  ;;  %v570_v47 = vld [vmem:[%s1253_s3] ss:$0 sm:$0xff] }
  0x24   :  { %836 = vmatprep.subr.bf16.mxu1 %v863_v39  ;;  %v858_v20 = vpack.c.bf16 %v482_v19, %v481_v18 }
  0x25   :  { %190 = vmatmul.mubr.f32.vlgmr.msra.gmra.mrb[0].mxu0 %v28_v36 }
  0x26   :  { %270 = vmatmul.mubr.f32.vlgmr.msra.gmra.mrb[0].mxu1 %v30_v38  ;;  %823 = vmatpush3.bf16.msra.mxu0 %v822_v37 }
  0x27   :  { %824 = vmatprep.subr.bf16.mxu0 %v863_v39  ;;  %194 = vmatprep.mubr.f32.mxu0 %v34_v42 }
  0x28   :  { %274 = vmatprep.mubr.f32.mxu1 %v36_v43  ;;  %838 = vmatpush3.bf16.msra.mxu1 %v837_v0  ;;  %v569_v43 = vld [vmem:[%s1252_s2] ss:$0 sm:$0xff]  ;;  %v573_v4 = vld [vmem:[#allocation2] ss:$0 sm:$0xff] }
  0x29   :  { %195 = vmatmul.mubr.f32.gmra.mrb[2].mxu0 %v33_v45  ;;  %839 = vmatprep.subr.bf16.mxu1 %v863_v39  ;;  %v388_v0 = vld [vmem:[%s1254_s4] sm:$0x3] }
  0x2a   :  { %826 = vmatpush3.bf16.msra.mxu0 %v825_v44  ;;  %275 = vmatmul.mubr.f32.gmra.mrb[2].mxu1 %v35_v46 }
  0x2b   :  { %827 = vmatprep.subr.bf16.mxu0 %v863_v39  ;;  %199 = vmatprep.mubr.f32.mxu0 %v39_v49 }
  0x2c   :  { %279 = vmatprep.mubr.f32.mxu1 %v41_v50  ;;  %841 = vmatpush3.bf16.msra.mxu1 %v840_v2 }
  0x2d   :  { %200 = vmatmul.mubr.f32.gmra.mrb[4].mxu0 %v38_v52  ;;  %842 = vmatprep.subr.bf16.mxu1 %v863_v39 }
  0x2e   :  { %829 = vmatpush3.bf16.msra.mxu0 %v828_v51  ;;  %280 = vmatmul.mubr.f32.gmra.mrb[4].mxu1 %v40_v53 }
  0x2f   :  { %830 = vmatprep.subr.bf16.mxu0 %v863_v39  ;;  %704 = vmatprep.mubr.msk.f32.mxu0 %vm864_vm0, %v865_v57 }
  0x30   :  { %754 = vmatprep.mubr.msk.f32.mxu1 %vm864_vm0, %v865_v57  ;;  %844 = vmatpush3.bf16.msra.mxu1 %v843_v5 }
  0x31   :  { %845 = vmatprep.subr.bf16.mxu1 %v863_v39 }
  0x32   :  { %832 = vmatpush3.bf16.msra.mxu0 %v831_v56 }
  0x33   :  { %833 = vmatprep.subr.bf16.mxu0 %v863_v39 }
  0x34   :  { %847 = vmatpush3.bf16.msra.mxu1 %v846_v8 }
  0x35   :  { %705 = vmatmul.mubr.msk.f32.vlgmr.msra.gmra.mrb[6].mxu0 %vm115_vm1, %v32_v58  ;;  %848 = vmatprep.subr.bf16.mxu1 %v863_v39 }
  0x36   :  { %707 = vmatprep.mubr.msk.f32.mxu0 %vm864_vm0, %v865_v57 }
  0x38   :  { %850 = vmatpush3.bf16.msra.mxu1 %v849_v11 }
  0x39   :  { %708 = vmatmul.mubr.msk.f32.gmra.mrb[8].mxu0 %vm115_vm1, %v37_v59  ;;  %851 = vmatprep.subr.bf16.mxu1 %v863_v39 }
  0x3a   :  { %710 = vmatprep.mubr.msk.f32.mxu0 %vm864_vm0, %v865_v57 }
  0x3c   :  { %853 = vmatpush3.bf16.msra.mxu1 %v852_v14 }
  0x3d   :  { %711 = vmatmul.mubr.msk.f32.gmra.mrb[10].mxu0 %vm115_vm1, %v42_v60  ;;  %854 = vmatprep.subr.bf16.mxu1 %v863_v39 }
  0x3e   :  { %719 = vmatprep.mubr.msk.f32.mxu0 %vm864_vm0, %v865_v57 }
  0x40   :  { %856 = vmatpush3.bf16.msra.mxu1 %v855_v17 }
  0x41   :  { %857 = vmatprep.subr.bf16.mxu1 %v863_v39 }
  0x44   :  { %859 = vmatpush3.bf16.msra.mxu1 %v858_v20 }
  0xf8   :  { %v606_v21 = vpop.f32.mrb[0].mxu0 }
  0xf9   :  { %v647_v22 = vpop.f32.mrb[0].mxu1  ;;  %v607_v23 = vpop.f32.mrb[1].mxu0 }
  0xfa   :  { %v608_v24 = vadd.f32 %v607_v23, %v606_v21  ;;  %v648_v25 = vpop.f32.mrb[1].mxu1 }
  0xfb   :  { %v649_v26 = vadd.f32 %v648_v25, %v647_v22 }
  0xfc   :  { %v609_v27 = vpop.f32.mrb[2].mxu0 }
  0xfd   :  { %v650_v28 = vpop.f32.mrb[2].mxu1  ;;  %v610_v29 = vpop.f32.mrb[3].mxu0  ;;  %v272_v30 = vadd.f32 %v649_v26, %v608_v24 }
  0xfe   :  { %v611_v31 = vadd.f32 %v610_v29, %v609_v27  ;;  %v651_v32 = vpop.f32.mrb[3].mxu1 }
  0xff   :  { %v652_v33 = vadd.f32 %v651_v32, %v650_v28 }
 0x100   :  { %v612_v34 = vpop.f32.mrb[4].mxu0 }
 0x101   :  { %v653_v35 = vpop.f32.mrb[4].mxu1  ;;  %v613_v36 = vpop.f32.mrb[5].mxu0  ;;  %v277_v37 = vadd.f32 %v652_v33, %v611_v31 }
 0x102   :  { %v614_v38 = vadd.f32 %v613_v36, %v612_v34  ;;  %v654_v39 = vpop.f32.mrb[5].mxu1 }
 0x103   :  { %v655_v40 = vadd.f32 %v654_v39, %v653_v35 }
 0x105   :  { %v282_v41 = vadd.f32 %v655_v40, %v614_v38 }
 0x108   :  { %v351_v42 = vpop.f32.mrb[6].mxu0 }
 0x109   :  { %v352_v44 = vadd.f32 %v351_v42, %v272_v30  ;;  %v706_v45 = vpop.f32.mrb[7].mxu0 }
 0x10b   :  { %v372_v46 = vmul.f32 %v569_v43, %v352_v44 }
 0x10c   :  { %v356_v48 = vpop.f32.mrb[8].mxu0 }
 0x10d   :  { %v357_v49 = vadd.f32 %v356_v48, %v277_v37  ;;  %v709_v50 = vpop.f32.mrb[9].mxu0  ;;  %v382_v51 = vadd.f32 %v570_v47, %v372_v46 }
 0x10f   :  { %v373_v52 = vmul.f32 %v569_v43, %v357_v49  ;;  %v385_v58 = vmax.f32 %v382_v51, 0.0 }
 0x110   :  { %v361_v53 = vpop.f32.mrb[10].mxu0 }
 0x111   :  { %v383_v54 = vadd.f32 %v570_v47, %v373_v52  ;;  %v362_v55 = vadd.f32 %v361_v53, %v282_v41  ;;  %v712_v56 = vpop.f32.mrb[11].mxu0 }
 0x113   :  { %v386_v59 = vmax.f32 %v383_v54, 0.0  ;;  %v374_v60 = vmul.f32 %v569_v43, %v362_v55 }
 0x115   :  { %v834_v61 = vpack.c.bf16 %v386_v59, %v385_v58  ;;  %v384_v62 = vadd.f32 %v570_v47, %v374_v60 }
 0x117   :  { %835 = vmatpush3.bf16.msra.mxu0 %v834_v61  ;;  %v387_v63 = vmax.f32 %v384_v62, 0.0 }
 0x118   :  { %717 = vmatprep.subr.mxu0 %v865_v57 }
 0x11b   :  { %718 = vmatpush3.msk.msra.mxu0 %vm393_vm2, %v387_v63 }
 0x11c   :  { %720 = vmatmul.mubr.msk.f32.vlgmr.msra.gmra.mrb[12].mxu0 %vm389_vm3, %v388_v0 }
 0x1ef   :  { %v463_v2 = vpop.f32.mrb[12].mxu0 }
 0x1f0   :  { %v721_v3 = vpop.f32.mrb[13].mxu0  ;;  %755 = vmatmul.mubr.f32.vlgmr.msra.gmra.mrb[6].mxu1 %v463_v2 }
 0x2c3   :  { %v556_v5 = vpop.f32.mrb[6].mxu1 }
 0x2c4   :  { %v557_v57 = vadd.f32 %v573_v4, %v556_v5  ;;  %v756_v6 = vpop.f32.mrb[7].mxu1 }
 0x2c6   :  { %561 = vst.msk [vmem:[%s1256_s7] sm:$0x3] %vm560_vm4, %v557_v57 }

</bundles_post_ra>
